<compile_context>
chip_gen: v7x
topology: tpu7x:2x2x1
jax: 0.10.0
libtpu: 0.0.40
codegen_flags: <defaults>
</compile_context>

<pallas_src>
import jax
import jax.numpy as jnp
from jax.experimental import pallas as pl
from jax.experimental.pallas import tpu as pltpu


def _elu(v):
    """ELU(alpha=1). Single EUP transcendental per element.

    exp is applied to min(v, 0) so it never overflows in the branch that
    jnp.where discards; for v <= 0 the clamp is a no-op and the result is
    exactly exp(v) - 1.
    """
    return jnp.where(v > 0, v, jnp.exp(jnp.minimum(v, 0.0)) - 1.0)


def _make_mlp_kernel(normalize):
    """(x @ W1 + b1) -ELU-> (@ W2 + b2) -ELU-> (@ W3 + b3) [-> L2 normalize]."""

    def kernel(x_ref, w1_ref, b1_ref, w2_ref, b2_ref, w3_ref, b3_ref, o_ref):
        cd = w1_ref.dtype  # matmul operand dtype (bf16 on v6e/v7x MXU fast path)
        h = jnp.dot(x_ref[...].astype(cd), w1_ref[...],
                    preferred_element_type=jnp.float32) + b1_ref[...]
        h = _elu(h)
        h = jnp.dot(h.astype(cd), w2_ref[...],
                    preferred_element_type=jnp.float32) + b2_ref[...]
        h = _elu(h)
        y = jnp.dot(h.astype(cd), w3_ref[...],
                    preferred_element_type=jnp.float32) + b3_ref[...]
        if normalize:
            # Fused InnerNetwork.embed: y / ||y||_2 along the feature axis.
            inv = jax.lax.rsqrt(jnp.sum(y * y, axis=-1, keepdims=True) + 1e-30)
            y = y * inv
        o_ref[...] = y.astype(o_ref.dtype)

    return kernel


def _tensorcores_per_chip():
    """1 on v5e/v6e (single TC); 2 on dual-core chips (v4/v5p/v7x)."""
    try:
        kind = jax.devices()[0].device_kind.lower()
    except Exception:
        return 1
    return 2 if any(tag in kind for tag in ("v7", "v5p", "v4")) else 1


_MAX_TILE_ROWS = 4096  # per-step VMEM stays tiny (< ~2 MB) even at this cap


def _pick_batch_tile(batch, batch_tile, num_cores):
    """Sublane-aligned batch tile; num_cores grid steps on multi-TC chips."""
    if batch_tile is not None:
        if batch % batch_tile != 0:
            raise ValueError(f"batch ({batch}) must be divisible by batch_tile ({batch_tile})")
        if batch_tile != batch and batch_tile % 8 != 0:
            raise ValueError("batch_tile must be a multiple of 8 (sublane) or the full batch")
        return batch_tile
    if batch <= 8 or batch % 8 != 0:
        return batch  # single full-batch block (full-dim blocks are always legal)
    tb = batch
    if num_cores > 1 and batch % (8 * num_cores) == 0:
        tb = batch // num_cores  # exactly one big tile per TensorCore
    # Cap tile rows; keep sublane (x8) alignment while shrinking.
    while tb > _MAX_TILE_ROWS and tb % 16 == 0:
        tb //= 2
    return tb


def prepare_params(params, compute_dtype=jnp.bfloat16):
    """One-time prep: weights to MXU operand dtype, biases stay f32."""
    cd = compute_dtype
    return {
        "w1": jnp.asarray(params["w1"], cd), "b1": jnp.asarray(params["b1"], jnp.float32),
        "w2": jnp.asarray(params["w2"], cd), "b2": jnp.asarray(params["b2"], jnp.float32),
        "w3": jnp.asarray(params["w3"], cd), "b3": jnp.asarray(params["b3"], jnp.float32),
    }


def mlp_reference(x, params, *, compute_dtype=jnp.bfloat16, normalize=False):
    """Plain-JAX reference (also the small-batch XLA-fused fallback)."""
    cd = compute_dtype

    def dense(h, w, b):
        return jnp.dot(h.astype(cd), w.astype(cd),
                       preferred_element_type=jnp.float32) + b.astype(jnp.float32)

    h = _elu(dense(x, params["w1"], params["b1"]))
    h = _elu(dense(h, params["w2"], params["b2"]))
    y = dense(h, params["w3"], params["b3"])
    if normalize:
        y = y / jnp.linalg.norm(y, axis=-1, keepdims=True)
    return y


def _mlp_pallas(x, prepared, *, normalize, batch_tile):
    B, D_in = x.shape
    H1 = prepared["w1"].shape[1]
    H2 = prepared["w2"].shape[1]
    D_out = prepared["w3"].shape[1]

    tb = _pick_batch_tile(B, batch_tile, _tensorcores_per_chip())
    grid = (B // tb,)

    def resident(shape):
        # Whole tensor at every grid step; constant block index -> DMA'd once.
        # (Weights are tiny here; Buffered(1) would only matter if hidden sizes
        # are ever scaled toward v7x's 64 MiB VMEM.)
        return pl.BlockSpec(shape, lambda i: (0,) * len(shape))

    return pl.pallas_call(
        _make_mlp_kernel(normalize),
        out_shape=jax.ShapeDtypeStruct((B, D_out), jnp.float32),
        grid_spec=pltpu.PrefetchScalarGridSpec(
            num_scalar_prefetch=0,
            grid=grid,
            in_specs=[
                pl.BlockSpec((tb, D_in), lambda i: (i, 0)),    # x tile (f32, cast in-kernel)
                resident((D_in, H1)), resident((1, H1)),       # layer 1
                resident((H1, H2)), resident((1, H2)),         # layer 2
                resident((H2, D_out)), resident((1, D_out)),   # layer 3
            ],
            # Full-dim last block (D_out < 128): masked stores, but store slot
            # has plenty of slack and this avoids 6.4x write inflation + slice.
            out_specs=pl.BlockSpec((tb, D_out), lambda i: (i, 0)),
        ),
        compiler_params=pltpu.CompilerParams(
            # Batch tiles shard across TensorCores on v7x; on single-TC chips
            # the grid has a single step anyway. If profiling shows the 1-D
            # grid is not core-split on a given toolchain, switch to
            # pltpu.CORE_PARALLEL here.
            dimension_semantics=("parallel",),
            vmem_limit_bytes=32 * 1024 * 1024,
        ),
    )(x, prepared["w1"], prepared["b1"], prepared["w2"], prepared["b2"],
      prepared["w3"], prepared["b3"])


def mlp_forward(x, params, *, prepared_params=None, batch_tile=None,
                compute_dtype=jnp.bfloat16, use_pallas=None,
                min_pallas_batch=4096, normalize=False):
    """Forward pass of the 3-layer ELU MLP (InnerNetwork.forward).

    x: [B, D_in] float32
    params: w1 [D_in,H1], b1 [1,H1], w2 [H1,H2], b2 [1,H2], w3 [H2,D_out], b3 [1,D_out]
    prepared_params: output of prepare_params(); pass it to avoid per-call casts.
    """
    B = x.shape[0]
    if use_pallas is None:
        # At small/medium sizes the pallas_call boundary loses to one XLA fusion.
        use_pallas = B >= min_pallas_batch
    if not use_pallas:
        return mlp_reference(x, params, compute_dtype=compute_dtype,
                             normalize=normalize)
    prepared = (prepared_params if prepared_params is not None
                else prepare_params(params, compute_dtype))
    return _mlp_pallas(x, prepared, normalize=normalize, batch_tile=batch_tile)


def mlp_embed(x, params, **kwargs):
    """InnerNetwork.embed / Model.embed: forward + L2-normalize (fused in-kernel)."""
    return mlp_forward(x, params, normalize=True, **kwargs)


def init_mlp_params(key, input_shape, inner_shape=(32, 32), output_shape=20):
    """Deterministic parameter init (uniform, like nn.Linear default)."""
    shape = [input_shape, *inner_shape, output_shape]
    params = {}
    keys = jax.random.split(key, 2 * (len(shape) - 1))
    for i in range(len(shape) - 1):
        fan_in, fan_out = shape[i], shape[i + 1]
        bound = 1.0 / jnp.sqrt(fan_in)
        w = jax.random.uniform(keys[2 * i], (fan_in, fan_out),
                               minval=-bound, maxval=bound, dtype=jnp.float32)
        b = jax.random.uniform(keys[2 * i + 1], (1, fan_out),
                               minval=-bound, maxval=bound, dtype=jnp.float32)
        params[f"w{i + 1}"] = w
        params[f"b{i + 1}"] = b
    return params


if __name__ == "__main__":
    key = jax.random.PRNGKey(0)
    k_x, k_p = jax.random.split(key)

    D_IN, INNER, D_OUT = 32, (32, 32), 20
    B = 1024  # one full tile on v5e/v6e; two 512-row tiles on v7x

    params = init_mlp_params(k_p, D_IN, INNER, D_OUT)
    prepared = prepare_params(params)  # one-time bf16 weight cast
    x = jax.random.normal(k_x, (B, D_IN), dtype=jnp.float32)

    # Pallas kernel path (forced so the demo exercises the kernel).
    out = jax.block_until_ready(
        mlp_forward(x, params, prepared_params=prepared, use_pallas=True))
    assert out.shape == (B, D_OUT)

    # Tight check vs. a plain-JAX reference with matching bf16 operands.
    ref_bf16 = mlp_reference(x, params, compute_dtype=jnp.bfloat16)
    assert jnp.allclose(out, ref_bf16, atol=5e-3, rtol=5e-3), "mismatch vs bf16 reference"

    # Loose end-to-end accuracy check vs. the full-f32 reference.
    ref_f32 = mlp_reference(x, params, compute_dtype=jnp.float32)
    assert jnp.allclose(out, ref_f32, atol=5e-2, rtol=5e-2), "mismatch vs f32 reference"

    # Tiny batches take the fused-XLA fallback (same bf16 compute_dtype).
    small = jax.block_until_ready(mlp_forward(x[:8], params))
    assert jnp.allclose(small, ref_bf16[:8], atol=5e-3, rtol=5e-3)

    # Model.embed / InnerNetwork.embed: L2-normalized embeddings (fused kernel).
    emb = jax.block_until_ready(
        mlp_embed(x, params, prepared_params=prepared, use_pallas=True))
    assert jnp.allclose(jnp.linalg.norm(emb, axis=-1), 1.0, atol=1e-3)
    emb_ref = ref_f32 / jnp.linalg.norm(ref_f32, axis=-1, keepdims=True)
    assert jnp.allclose(emb, emb_ref, atol=5e-2, rtol=5e-2)

    print("KERNEL_OK")
</pallas_src>

<mosaic_0001>
module attributes {stable_mosaic.version = 11 : i64} {
  func.func @kernel(%arg0: i32, %arg1: memref<1024x32xf32, #tpu.memory_space<vmem>>, %arg2: memref<32x32xbf16, #tpu.memory_space<vmem>>, %arg3: memref<1x32xf32, #tpu.memory_space<vmem>>, %arg4: memref<32x32xbf16, #tpu.memory_space<vmem>>, %arg5: memref<1x32xf32, #tpu.memory_space<vmem>>, %arg6: memref<32x20xbf16, #tpu.memory_space<vmem>>, %arg7: memref<1x20xf32, #tpu.memory_space<vmem>>, %arg8: memref<1024x20xf32, #tpu.memory_space<vmem>>) attributes {dimension_semantics = [#tpu.dimension_semantics<parallel>], iteration_bounds = array<i64: 1>, scalar_prefetch = 0 : i64, scratch_operands = 0 : i64, tpu.core_type = #tpu.core_type<tc>, window_params = [{transform_indices = @transform_0, window_bounds = array<i64: 1024, 32>}, {pipeline_mode = #tpu.pipeline_mode<synchronous>, transform_indices = @transform_1, window_bounds = array<i64: 32, 32>}, {pipeline_mode = #tpu.pipeline_mode<synchronous>, transform_indices = @transform_2, window_bounds = array<i64: 1, 32>}, {pipeline_mode = #tpu.pipeline_mode<synchronous>, transform_indices = @transform_3, window_bounds = array<i64: 32, 32>}, {pipeline_mode = #tpu.pipeline_mode<synchronous>, transform_indices = @transform_4, window_bounds = array<i64: 1, 32>}, {pipeline_mode = #tpu.pipeline_mode<synchronous>, transform_indices = @transform_5, window_bounds = array<i64: 32, 20>}, {pipeline_mode = #tpu.pipeline_mode<synchronous>, transform_indices = @transform_6, window_bounds = array<i64: 1, 20>}, {transform_indices = @transform_7, window_bounds = array<i64: 1024, 20>}]} {
    %c0 = arith.constant 0 : index
    %c0_0 = arith.constant 0 : index
    %0 = vector.load %arg1[%c0, %c0_0] : memref<1024x32xf32, #tpu.memory_space<vmem>>, vector<1024x32xf32>
    %1 = arith.truncf %0 : vector<1024x32xf32> to vector<1024x32xbf16>
    %c0_1 = arith.constant 0 : index
    %c0_2 = arith.constant 0 : index
    %2 = vector.load %arg2[%c0_1, %c0_2] : memref<32x32xbf16, #tpu.memory_space<vmem>>, vector<32x32xbf16>
    %cst = arith.constant dense<0.000000e+00> : vector<1024x32xf32>
    %3 = tpu.matmul %1, %2, %cst {dimension_numbers = #tpu.dot_dimension_numbers<[1], [0], [0], [1], [0, 0, 1, 1], [], []>} : vector<1024x32xbf16>, vector<32x32xbf16>, vector<1024x32xf32> -> vector<1024x32xf32>
    %c0_3 = arith.constant 0 : index
    %c0_4 = arith.constant 0 : index
    %4 = vector.load %arg3[%c0_3, %c0_4] : memref<1x32xf32, #tpu.memory_space<vmem>>, vector<1x32xf32>
    %5 = vector.broadcast %4 : vector<1x32xf32> to vector<1024x32xf32>
    %6 = arith.addf %3, %5 : vector<1024x32xf32>
    %cst_5 = arith.constant 0.000000e+00 : f32
    %7 = vector.broadcast %cst_5 : f32 to vector<1024x32xf32>
    %8 = arith.cmpf ogt, %6, %7 : vector<1024x32xf32>
    %cst_6 = arith.constant 0.000000e+00 : f32
    %9 = vector.broadcast %cst_6 : f32 to vector<1024x32xf32>
    %10 = arith.minimumf %6, %9 : vector<1024x32xf32>
    %11 = math.exp %10 : vector<1024x32xf32>
    %cst_7 = arith.constant 1.000000e+00 : f32
    %12 = vector.broadcast %cst_7 : f32 to vector<1024x32xf32>
    %13 = arith.subf %11, %12 : vector<1024x32xf32>
    %14 = arith.select %8, %6, %13 : vector<1024x32xi1>, vector<1024x32xf32>
    %15 = arith.truncf %14 : vector<1024x32xf32> to vector<1024x32xbf16>
    %c0_8 = arith.constant 0 : index
    %c0_9 = arith.constant 0 : index
    %16 = vector.load %arg4[%c0_8, %c0_9] : memref<32x32xbf16, #tpu.memory_space<vmem>>, vector<32x32xbf16>
    %cst_10 = arith.constant dense<0.000000e+00> : vector<1024x32xf32>
    %17 = tpu.matmul %15, %16, %cst_10 {dimension_numbers = #tpu.dot_dimension_numbers<[1], [0], [0], [1], [0, 0, 1, 1], [], []>} : vector<1024x32xbf16>, vector<32x32xbf16>, vector<1024x32xf32> -> vector<1024x32xf32>
    %c0_11 = arith.constant 0 : index
    %c0_12 = arith.constant 0 : index
    %18 = vector.load %arg5[%c0_11, %c0_12] : memref<1x32xf32, #tpu.memory_space<vmem>>, vector<1x32xf32>
    %19 = vector.broadcast %18 : vector<1x32xf32> to vector<1024x32xf32>
    %20 = arith.addf %17, %19 : vector<1024x32xf32>
    %cst_13 = arith.constant 0.000000e+00 : f32
    %21 = vector.broadcast %cst_13 : f32 to vector<1024x32xf32>
    %22 = arith.cmpf ogt, %20, %21 : vector<1024x32xf32>
    %cst_14 = arith.constant 0.000000e+00 : f32
    %23 = vector.broadcast %cst_14 : f32 to vector<1024x32xf32>
    %24 = arith.minimumf %20, %23 : vector<1024x32xf32>
    %25 = math.exp %24 : vector<1024x32xf32>
    %cst_15 = arith.constant 1.000000e+00 : f32
    %26 = vector.broadcast %cst_15 : f32 to vector<1024x32xf32>
    %27 = arith.subf %25, %26 : vector<1024x32xf32>
    %28 = arith.select %22, %20, %27 : vector<1024x32xi1>, vector<1024x32xf32>
    %29 = arith.truncf %28 : vector<1024x32xf32> to vector<1024x32xbf16>
    %c0_16 = arith.constant 0 : index
    %c0_17 = arith.constant 0 : index
    %30 = vector.load %arg6[%c0_16, %c0_17] : memref<32x20xbf16, #tpu.memory_space<vmem>>, vector<32x20xbf16>
    %cst_18 = arith.constant dense<0.000000e+00> : vector<1024x20xf32>
    %31 = tpu.matmul %29, %30, %cst_18 {dimension_numbers = #tpu.dot_dimension_numbers<[1], [0], [0], [1], [0, 0, 1, 1], [], []>} : vector<1024x32xbf16>, vector<32x20xbf16>, vector<1024x20xf32> -> vector<1024x20xf32>
    %c0_19 = arith.constant 0 : index
    %c0_20 = arith.constant 0 : index
    %32 = vector.load %arg7[%c0_19, %c0_20] : memref<1x20xf32, #tpu.memory_space<vmem>>, vector<1x20xf32>
    %33 = vector.broadcast %32 : vector<1x20xf32> to vector<1024x20xf32>
    %34 = arith.addf %31, %33 : vector<1024x20xf32>
    %c0_21 = arith.constant 0 : index
    %c0_22 = arith.constant 0 : index
    %35 = vector.load %arg8[%c0_21, %c0_22] : memref<1024x20xf32, #tpu.memory_space<vmem>>, vector<1024x20xf32>
    tpu.vector_store %arg8[%c0_21, %c0_22], %34 {strides = array<i32>} : memref<1024x20xf32, #tpu.memory_space<vmem>>, vector<1024x20xf32>,
    return
  }
  func.func @transform_0(%arg0: i32) -> (i32, i32) {
    %c0_i32 = arith.constant 0 : i32
    %c0_i32_0 = arith.constant 0 : i32
    return %arg0, %c0_i32 : i32, i32
  }
  func.func @transform_1(%arg0: i32) -> (i32, i32) {
    %c0_i32 = arith.constant 0 : i32
    %c0_i32_0 = arith.constant 0 : i32
    %c0_i32_1 = arith.constant 0 : i32
    return %c0_i32, %c0_i32_0 : i32, i32
  }
  func.func @transform_2(%arg0: i32) -> (i32, i32) {
    %c0_i32 = arith.constant 0 : i32
    %c0_i32_0 = arith.constant 0 : i32
    %c0_i32_1 = arith.constant 0 : i32
    return %c0_i32, %c0_i32_0 : i32, i32
  }
  func.func @transform_3(%arg0: i32) -> (i32, i32) {
    %c0_i32 = arith.constant 0 : i32
    %c0_i32_0 = arith.constant 0 : i32
    %c0_i32_1 = arith.constant 0 : i32
    return %c0_i32, %c0_i32_0 : i32, i32
  }
  func.func @transform_4(%arg0: i32) -> (i32, i32) {
    %c0_i32 = arith.constant 0 : i32
    %c0_i32_0 = arith.constant 0 : i32
    %c0_i32_1 = arith.constant 0 : i32
    return %c0_i32, %c0_i32_0 : i32, i32
  }
  func.func @transform_5(%arg0: i32) -> (i32, i32) {
    %c0_i32 = arith.constant 0 : i32
    %c0_i32_0 = arith.constant 0 : i32
    %c0_i32_1 = arith.constant 0 : i32
    return %c0_i32, %c0_i32_0 : i32, i32
  }
  func.func @transform_6(%arg0: i32) -> (i32, i32) {
    %c0_i32 = arith.constant 0 : i32
    %c0_i32_0 = arith.constant 0 : i32
    %c0_i32_1 = arith.constant 0 : i32
    return %c0_i32, %c0_i32_0 : i32, i32
  }
  func.func @transform_7(%arg0: i32) -> (i32, i32) {
    %c0_i32 = arith.constant 0 : i32
    %c0_i32_0 = arith.constant 0 : i32
    return %arg0, %c0_i32 : i32, i32
  }
}

</mosaic_0001>

<bundles_post_ra>
// kernel: tpu_custom_call.1
= control target key start
LH: loop header
LB: loop body
LE: loop exit
PB: predicated region body
PF: predicated region fallthrough
CT: control target
= control target key end

     0   :  { %vm242_vm0 = vcmask 261120   ;;  %s9530_s1 = inlined_call_operand.vmem [shape: bf16[32,32], index: 1, kind: input, shape index: {}]   ;;  %s9531_s0 = inlined_call_operand.vmem [shape: f32[1024,32], index: 0, kind: input, shape index: {}]   ;;  %s9532_s3 = inlined_call_operand.vmem [shape: bf16[32,32], index: 3, kind: input, shape index: {}]   ;;  %s9533_s2 = inlined_call_operand.vmem [shape: f32[1,32], index: 2, kind: input, shape index: {}]   ;;  %s9534_s5 = inlined_call_operand.vmem [shape: bf16[32,20], index: 5, kind: input, shape index: {}]   ;;  %s9535_s4 = inlined_call_operand.vmem [shape: f32[1,32], index: 4, kind: input, shape index: {}]   ;;  %s9536_s6 = inlined_call_operand.vmem [shape: f32[1,20], index: 6, kind: input, shape index: {}]   ;;  %s9537_s7 = inlined_call_operand.vmem [shape: f32[1024,20], index: 7, kind: output, shape index: {}]  }
   0x1   :  { %v5352_v0 = vld [vmem:[%s9530_s1] sm:$0xff]   ;;  %v5353_v1 = vld [vmem:[%s9530_s1 + $0x8] sm:$0xff]   ;;  %v29_v5 = vld [vmem:[%s9531_s0 + $0x10] sm:$0xff] }
   0x2   :  { %4952 = vmatprep.subr.bf16.mxu0 %v5352_v0  ;;  %v27_v2 = vld [vmem:[%s9531_s0] sm:$0xff]  ;;  %v28_v3 = vld [vmem:[%s9531_s0 + $0x8] sm:$0xff]  ;;  %5348 = vmatprep.subr.bf16.mxu1 %v5352_v0  ;;  %v30_v6 = vld [vmem:[%s9531_s0 + $0x18] sm:$0xff] }
   0x3   :  { %4953 = vmatpush3.bf16.msra.mxu0 %v5352_v0  ;;  %v155_v4 = vpack.c.bf16 %v28_v3, %v27_v2  ;;  %5350 = vmatpush3.bf16.msra.mxu1 %v5352_v0  ;;  %v31_v7 = vld [vmem:[%s9531_s0 + $0x20] sm:$0xff]  ;;  %v32_v8 = vld [vmem:[%s9531_s0 + $0x28] sm:$0xff]  ;;  %v156_v9 = vpack.c.bf16 %v30_v6, %v29_v5  ;;  %v33_v11 = vld [vmem:[%s9531_s0 + $0x30] sm:$0xff] }
   0x4   :  { %4954 = vmatprep.subr.bf16.mxu0 %v5353_v1  ;;  %5349 = vmatprep.subr.bf16.mxu1 %v5353_v1  ;;  %v157_v10 = vpack.c.bf16 %v32_v8, %v31_v7  ;;  %v34_v12 = vld [vmem:[%s9531_s0 + $0x38] sm:$0xff]  ;;  %v35_v13 = vld [vmem:[%s9531_s0 + $0x40] sm:$0xff]  ;;  %v36_v14 = vld [vmem:[%s9531_s0 + $0x48] sm:$0xff] }
   0x5   :  { %4956 = vmatprep.mubr.msk.bf16.mxu0 %vm242_vm0, %v155_v4  ;;  %v158_v15 = vpack.c.bf16 %v34_v12, %v33_v11  ;;  %v159_v16 = vpack.c.bf16 %v36_v14, %v35_v13  ;;  %v91_v17 = vld [vmem:[%s9531_s0 + $0x200] sm:$0xff]  ;;  %v92_v18 = vld [vmem:[%s9531_s0 + $0x208] sm:$0xff]  ;;  %v93_v19 = vld [vmem:[%s9531_s0 + $0x210] sm:$0xff] }
   0x6   :  { %v37_v20 = vld [vmem:[%s9531_s0 + $0x50] sm:$0xff]  ;;  %v38_v21 = vld [vmem:[%s9531_s0 + $0x58] sm:$0xff]  ;;  %v187_v22 = vpack.c.bf16 %v92_v18, %v91_v17  ;;  %v39_v24 = vld [vmem:[%s9531_s0 + $0x60] sm:$0xff] }
   0x7   :  { %4955 = vmatpush3.bf16.msra.mxu0 %v5353_v1  ;;  %5351 = vmatpush3.bf16.msra.mxu1 %v5353_v1  ;;  %v94_v23 = vld [vmem:[%s9531_s0 + $0x218] sm:$0xff]  ;;  %v40_v25 = vld [vmem:[%s9531_s0 + $0x68] sm:$0xff]  ;;  %v95_v27 = vld [vmem:[%s9531_s0 + $0x220] sm:$0xff]  ;;  %v160_v29 = vpack.c.bf16 %v38_v21, %v37_v20 }
   0x8   :  { %v188_v26 = vpack.c.bf16 %v94_v23, %v93_v19  ;;  %5020 = vmatprep.mubr.msk.bf16.mxu1 %vm242_vm0, %v187_v22  ;;  %v96_v28 = vld [vmem:[%s9531_s0 + $0x228] sm:$0xff]  ;;  %v161_v31 = vpack.c.bf16 %v40_v25, %v39_v24  ;;  %v97_v32 = vld [vmem:[%s9531_s0 + $0x230] sm:$0xff]  ;;  %v98_v33 = vld [vmem:[%s9531_s0 + $0x238] sm:$0xff] }
   0x9   :  { %v189_v30 = vpack.c.bf16 %v96_v28, %v95_v27  ;;  %v99_v34 = vld [vmem:[%s9531_s0 + $0x240] sm:$0xff]  ;;  %v100_v35 = vld [vmem:[%s9531_s0 + $0x248] sm:$0xff]  ;;  %v190_v37 = vpack.c.bf16 %v98_v33, %v97_v32  ;;  %v41_v38 = vld [vmem:[%s9531_s0 + $0x70] sm:$0xff] }
   0xa   :  { %4957 = vmatmul.mubr.msk.bf16.vlgmr.msra.gmra.mrb[0].mxu0 %vm242_vm0, %v156_v9  ;;  %5021 = vmatmul.mubr.msk.bf16.vlgmr.msra.gmra.mrb[0].mxu1 %vm242_vm0, %v188_v26  ;;  %v5354_v36 = vld [vmem:[%s9532_s3] sm:$0xff]   ;;  %v42_v39 = vld [vmem:[%s9531_s0 + $0x78] sm:$0xff]  ;;  %v191_v40 = vpack.c.bf16 %v100_v35, %v99_v34  ;;  %v44_v42 = vld [vmem:[%s9531_s0 + $0x88] sm:$0xff] }
   0xb   :  { %4960 = vmatprep.mubr.msk.bf16.mxu0 %vm242_vm0, %v157_v10  ;;  %5024 = vmatprep.mubr.msk.bf16.mxu1 %vm242_vm0, %v189_v30  ;;  %v43_v41 = vld [vmem:[%s9531_s0 + $0x80] sm:$0xff]  ;;  %v162_v43 = vpack.c.bf16 %v42_v39, %v41_v38  ;;  %v101_v45 = vld [vmem:[%s9531_s0 + $0x250] sm:$0xff]  ;;  %v102_v46 = vld [vmem:[%s9531_s0 + $0x258] sm:$0xff] }
   0xc   :  { %5084 = vmatprep.subr.bf16.mxu1 %v5354_v36  ;;  %v163_v44 = vpack.c.bf16 %v44_v42, %v43_v41  ;;  %v103_v47 = vld [vmem:[%s9531_s0 + $0x260] sm:$0xff]  ;;  %v104_v48 = vld [vmem:[%s9531_s0 + $0x268] sm:$0xff]  ;;  %v192_v49 = vpack.c.bf16 %v102_v46, %v101_v45  ;;  %v45_v50 = vld [vmem:[%s9531_s0 + $0x90] sm:$0xff] }
   0xd   :  { %5085 = vmatpush3.bf16.msra.mxu1 %v5354_v36  ;;  %v46_v51 = vld [vmem:[%s9531_s0 + $0x98] sm:$0xff]  ;;  %v193_v52 = vpack.c.bf16 %v104_v48, %v103_v47  ;;  %v47_v53 = vld [vmem:[%s9531_s0 + $0xa0] sm:$0xff]  ;;  %v48_v54 = vld [vmem:[%s9531_s0 + $0xa8] sm:$0xff] }
   0xe   :  { %v164_v55 = vpack.c.bf16 %v46_v51, %v45_v50  ;;  %v105_v56 = vld [vmem:[%s9531_s0 + $0x270] sm:$0xff]  ;;  %v106_v57 = vld [vmem:[%s9531_s0 + $0x278] sm:$0xff]  ;;  %v165_v58 = vpack.c.bf16 %v48_v54, %v47_v53  ;;  %v5355_v59 = vld [vmem:[%s9532_s3 + $0x8] sm:$0xff]  }
   0xf   :  { %v107_v60 = vld [vmem:[%s9531_s0 + $0x280] sm:$0xff]  ;;  %v108_v61 = vld [vmem:[%s9531_s0 + $0x288] sm:$0xff]  ;;  %5086 = vmatprep.subr.bf16.mxu1 %v5355_v59  ;;  %v194_v62 = vpack.c.bf16 %v106_v57, %v105_v56  ;;  %v49_v63 = vld [vmem:[%s9531_s0 + $0xb0] sm:$0xff] }
  0x10   :  { %v50_v0 = vld [vmem:[%s9531_s0 + $0xb8] sm:$0xff]  ;;  %v195_v1 = vpack.c.bf16 %v108_v61, %v107_v60  ;;  %v51_v2 = vld [vmem:[%s9531_s0 + $0xc0] sm:$0xff]  ;;  %v52_v3 = vld [vmem:[%s9531_s0 + $0xc8] sm:$0xff] }
  0x11   :  { %5087 = vmatpush3.bf16.msra.mxu1 %v5355_v59  ;;  %v166_v4 = vpack.c.bf16 %v50_v0, %v49_v63  ;;  %v167_v5 = vpack.c.bf16 %v52_v3, %v51_v2  ;;  %v109_v6 = vld [vmem:[%s9531_s0 + $0x290] sm:$0xff]  ;;  %v110_v7 = vld [vmem:[%s9531_s0 + $0x298] sm:$0xff]  ;;  %v111_v8 = vld [vmem:[%s9531_s0 + $0x2a0] sm:$0xff] }
  0x12   :  { %4961 = vmatmul.mubr.msk.bf16.gmra.mrb[4].mxu0 %vm242_vm0, %v158_v15  ;;  %5025 = vmatmul.mubr.msk.bf16.gmra.mrb[4].mxu1 %vm242_vm0, %v190_v37  ;;  %v112_v9 = vld [vmem:[%s9531_s0 + $0x2a8] sm:$0xff]  ;;  %v196_v10 = vpack.c.bf16 %v110_v7, %v109_v6  ;;  %v53_v11 = vld [vmem:[%s9531_s0 + $0xd0] sm:$0xff]  ;;  %v54_v12 = vld [vmem:[%s9531_s0 + $0xd8] sm:$0xff] }
  0x13   :  { %4964 = vmatprep.mubr.msk.bf16.mxu0 %vm242_vm0, %v159_v16  ;;  %5028 = vmatprep.mubr.msk.bf16.mxu1 %vm242_vm0, %v191_v40  ;;  %v197_v13 = vpack.c.bf16 %v112_v9, %v111_v8  ;;  %v55_v14 = vld [vmem:[%s9531_s0 + $0xe0] sm:$0xff]  ;;  %v56_v15 = vld [vmem:[%s9531_s0 + $0xe8] sm:$0xff]  ;;  %v168_v16 = vpack.c.bf16 %v54_v12, %v53_v11  ;;  %v113_v18 = vld [vmem:[%s9531_s0 + $0x2b0] sm:$0xff] }
  0x14   :  { %v169_v17 = vpack.c.bf16 %v56_v15, %v55_v14  ;;  %v114_v19 = vld [vmem:[%s9531_s0 + $0x2b8] sm:$0xff]  ;;  %v115_v20 = vld [vmem:[%s9531_s0 + $0x2c0] sm:$0xff]  ;;  %v116_v21 = vld [vmem:[%s9531_s0 + $0x2c8] sm:$0xff] }
  0x15   :  { %v198_v22 = vpack.c.bf16 %v114_v19, %v113_v18  ;;  %v57_v23 = vld [vmem:[%s9531_s0 + $0xf0] sm:$0xff]  ;;  %v58_v24 = vld [vmem:[%s9531_s0 + $0xf8] sm:$0xff]  ;;  %v199_v25 = vpack.c.bf16 %v116_v21, %v115_v20  ;;  %v59_v26 = vld [vmem:[%s9531_s0 + $0x100] sm:$0xff] }
  0x16   :  { %v60_v27 = vld [vmem:[%s9531_s0 + $0x108] sm:$0xff]  ;;  %v170_v28 = vpack.c.bf16 %v58_v24, %v57_v23  ;;  %v117_v30 = vld [vmem:[%s9531_s0 + $0x2d0] sm:$0xff]  ;;  %v119_v32 = vld [vmem:[%s9531_s0 + $0x2e0] sm:$0xff] }
  0x17   :  { %v120_v33 = vld [vmem:[%s9531_s0 + $0x2e8] sm:$0xff]  ;;  %v61_v35 = vld [vmem:[%s9531_s0 + $0x110] sm:$0xff]  ;;  %v62_v36 = vld [vmem:[%s9531_s0 + $0x118] sm:$0xff] }
  0x18   :  { %v201_v37 = vpack.c.bf16 %v120_v33, %v119_v32  ;;  %v63_v38 = vld [vmem:[%s9531_s0 + $0x120] sm:$0xff]  ;;  %v64_v39 = vld [vmem:[%s9531_s0 + $0x128] sm:$0xff]  ;;  %v172_v40 = vpack.c.bf16 %v62_v36, %v61_v35  ;;  %v121_v42 = vld [vmem:[%s9531_s0 + $0x2f0] sm:$0xff] }
  0x19   :  { %v173_v41 = vpack.c.bf16 %v64_v39, %v63_v38  ;;  %v124_v45 = vld [vmem:[%s9531_s0 + $0x308] sm:$0xff]  ;;  %v65_v47 = vld [vmem:[%s9531_s0 + $0x130] sm:$0xff]  ;;  %v66_v48 = vld [vmem:[%s9531_s0 + $0x138] sm:$0xff] }
  0x1a   :  { %4965 = vmatmul.mubr.msk.bf16.gmra.mrb[8].mxu0 %vm242_vm0, %v160_v29  ;;  %5029 = vmatmul.mubr.msk.bf16.gmra.mrb[8].mxu1 %vm242_vm0, %v192_v49  ;;  %v171_v29 = vpack.c.bf16 %v60_v27, %v59_v26  ;;  %v67_v50 = vld [vmem:[%s9531_s0 + $0x140] sm:$0xff]  ;;  %v68_v51 = vld [vmem:[%s9531_s0 + $0x148] sm:$0xff]  ;;  %v125_v54 = vld [vmem:[%s9531_s0 + $0x310] sm:$0xff] }
  0x1b   :  { %4968 = vmatprep.mubr.msk.bf16.mxu0 %vm242_vm0, %v161_v31  ;;  %5032 = vmatprep.mubr.msk.bf16.mxu1 %vm242_vm0, %v193_v52  ;;  %v118_v31 = vld [vmem:[%s9531_s0 + $0x2d8] sm:$0xff]  ;;  %v174_v52 = vpack.c.bf16 %v66_v48, %v65_v47  ;;  %v175_v53 = vpack.c.bf16 %v68_v51, %v67_v50  ;;  %v127_v56 = vld [vmem:[%s9531_s0 + $0x320] sm:$0xff]  ;;  %v128_v57 = vld [vmem:[%s9531_s0 + $0x328] sm:$0xff] }
  0x1c   :  { %v200_v34 = vpack.c.bf16 %v118_v31, %v117_v30  ;;  %v69_v59 = vld [vmem:[%s9531_s0 + $0x150] sm:$0xff]  ;;  %v70_v60 = vld [vmem:[%s9531_s0 + $0x158] sm:$0xff]  ;;  %v205_v61 = vpack.c.bf16 %v128_v57, %v127_v56  ;;  %v72_v63 = vld [vmem:[%s9531_s0 + $0x168] sm:$0xff] }
  0x1d   :  { %v176_v0 = vpack.c.bf16 %v70_v60, %v69_v59  ;;  %v129_v2 = vld [vmem:[%s9531_s0 + $0x330] sm:$0xff]  ;;  %v130_v3 = vld [vmem:[%s9531_s0 + $0x338] sm:$0xff]  ;;  %v76_v11 = vld [vmem:[%s9531_s0 + $0x188] sm:$0xff] }
  0x1e   :  { %v206_v6 = vpack.c.bf16 %v130_v3, %v129_v2  ;;  %v73_v7 = vld [vmem:[%s9531_s0 + $0x170] sm:$0xff]  ;;  %v74_v8 = vld [vmem:[%s9531_s0 + $0x178] sm:$0xff]  ;;  %v80_v23 = vld [vmem:[%s9531_s0 + $0x1a8] sm:$0xff] }
  0x1f   :  { %v178_v12 = vpack.c.bf16 %v74_v8, %v73_v7  ;;  %v133_v14 = vld [vmem:[%s9531_s0 + $0x350] sm:$0xff]  ;;  %v134_v15 = vld [vmem:[%s9531_s0 + $0x358] sm:$0xff]  ;;  %v84_v35 = vld [vmem:[%s9531_s0 + $0x1c8] sm:$0xff] }
  0x20   :  { %v208_v18 = vpack.c.bf16 %v134_v15, %v133_v14  ;;  %v77_v19 = vld [vmem:[%s9531_s0 + $0x190] sm:$0xff]  ;;  %v78_v20 = vld [vmem:[%s9531_s0 + $0x198] sm:$0xff]  ;;  %v88_v47 = vld [vmem:[%s9531_s0 + $0x1e8] sm:$0xff] }
  0x21   :  { %v180_v24 = vpack.c.bf16 %v78_v20, %v77_v19  ;;  %v137_v26 = vld [vmem:[%s9531_s0 + $0x370] sm:$0xff]  ;;  %v138_v27 = vld [vmem:[%s9531_s0 + $0x378] sm:$0xff] }
  0x22   :  { %4969 = vmatmul.mubr.msk.bf16.gmra.mrb[12].mxu0 %vm242_vm0, %v162_v43  ;;  %5033 = vmatmul.mubr.msk.bf16.gmra.mrb[12].mxu1 %vm242_vm0, %v194_v62  ;;  %v122_v43 = vld [vmem:[%s9531_s0 + $0x2f8] sm:$0xff]  ;;  %v71_v62 = vld [vmem:[%s9531_s0 + $0x160] sm:$0xff]  ;;  %v210_v30 = vpack.c.bf16 %v138_v27, %v137_v26  ;;  %v81_v31 = vld [vmem:[%s9531_s0 + $0x1b0] sm:$0xff] }
  0x23   :  { %4972 = vmatprep.mubr.msk.bf16.mxu0 %vm242_vm0, %v163_v44  ;;  %5036 = vmatprep.mubr.msk.bf16.mxu1 %vm242_vm0, %v195_v1  ;;  %v123_v44 = vld [vmem:[%s9531_s0 + $0x300] sm:$0xff]  ;;  %v202_v46 = vpack.c.bf16 %v122_v43, %v121_v42  ;;  %v177_v1 = vpack.c.bf16 %v72_v63, %v71_v62  ;;  %v82_v32 = vld [vmem:[%s9531_s0 + $0x1b8] sm:$0xff]  ;;  %v141_v38 = vld [vmem:[%s9531_s0 + $0x390] sm:$0xff] }
  0x24   :  { %v203_v49 = vpack.c.bf16 %v124_v45, %v123_v44  ;;  %v182_v36 = vpack.c.bf16 %v82_v32, %v81_v31  ;;  %v142_v39 = vld [vmem:[%s9531_s0 + $0x398] sm:$0xff]  ;;  %v85_v43 = vld [vmem:[%s9531_s0 + $0x1d0] sm:$0xff]  ;;  %v152_v62 = vld [vmem:[%s9531_s0 + $0x3e8] sm:$0xff] }
  0x25   :  { %v212_v42 = vpack.c.bf16 %v142_v39, %v141_v38  ;;  %v86_v44 = vld [vmem:[%s9531_s0 + $0x1d8] sm:$0xff]  ;;  %v145_v50 = vld [vmem:[%s9531_s0 + $0x3b0] sm:$0xff] }
  0x26   :  { %v184_v48 = vpack.c.bf16 %v86_v44, %v85_v43  ;;  %v146_v51 = vld [vmem:[%s9531_s0 + $0x3b8] sm:$0xff]  ;;  %v149_v59 = vld [vmem:[%s9531_s0 + $0x3d0] sm:$0xff] }
  0x27   :  { %v90_v56 = vld [vmem:[%s9531_s0 + $0x1f8] sm:$0xff] }
  0x28   :  { %v150_v60 = vld [vmem:[%s9531_s0 + $0x3d8] sm:$0xff] }
  0x29   :  { %v216_v63 = vpack.c.bf16 %v150_v60, %v149_v59  ;;  %v154_v2 = vld [vmem:[%s9531_s0 + $0x3f8] sm:$0xff] }
  0x2a   :  { %4973 = vmatmul.mubr.msk.bf16.gmra.mrb[16].mxu0 %vm242_vm0, %v164_v55  ;;  %5037 = vmatmul.mubr.msk.bf16.gmra.mrb[16].mxu1 %vm242_vm0, %v196_v10  ;;  %v126_v55 = vld [vmem:[%s9531_s0 + $0x318] sm:$0xff]  ;;  %v75_v10 = vld [vmem:[%s9531_s0 + $0x180] sm:$0xff] }
  0x2b   :  { %4976 = vmatprep.mubr.msk.bf16.mxu0 %vm242_vm0, %v165_v58  ;;  %5040 = vmatprep.mubr.msk.bf16.mxu1 %vm242_vm0, %v197_v13  ;;  %v204_v58 = vpack.c.bf16 %v126_v55, %v125_v54  ;;  %v179_v13 = vpack.c.bf16 %v76_v11, %v75_v10  ;;  %v214_v54 = vpack.c.bf16 %v146_v51, %v145_v50  ;;  %v89_v55 = vld [vmem:[%s9531_s0 + $0x1f0] sm:$0xff] }
  0x32   :  { %4977 = vmatmul.mubr.msk.bf16.gmra.mrb[20].mxu0 %vm242_vm0, %v166_v4  ;;  %5041 = vmatmul.mubr.msk.bf16.gmra.mrb[20].mxu1 %vm242_vm0, %v198_v22  ;;  %v131_v4 = vld [vmem:[%s9531_s0 + $0x340] sm:$0xff] }
  0x33   :  { %4980 = vmatprep.mubr.msk.bf16.mxu0 %vm242_vm0, %v167_v5  ;;  %5044 = vmatprep.mubr.msk.bf16.mxu1 %vm242_vm0, %v199_v25  ;;  %v132_v5 = vld [vmem:[%s9531_s0 + $0x348] sm:$0xff]  ;;  %v79_v22 = vld [vmem:[%s9531_s0 + $0x1a0] sm:$0xff] }
  0x34   :  { %v207_v9 = vpack.c.bf16 %v132_v5, %v131_v4  ;;  %v181_v25 = vpack.c.bf16 %v80_v23, %v79_v22  ;;  %v6378_v4 = vld [vmem:[%s9533_s2] ss:$0 sm:$0xff] }
  0x3a   :  { %4981 = vmatmul.mubr.msk.bf16.gmra.mrb[24].mxu0 %vm242_vm0, %v168_v16  ;;  %5045 = vmatmul.mubr.msk.bf16.gmra.mrb[24].mxu1 %vm242_vm0, %v200_v34  ;;  %v135_v16 = vld [vmem:[%s9531_s0 + $0x360] sm:$0xff] }
  0x3b   :  { %4984 = vmatprep.mubr.msk.bf16.mxu0 %vm242_vm0, %v169_v17  ;;  %5048 = vmatprep.mubr.msk.bf16.mxu1 %vm242_vm0, %v201_v37  ;;  %v136_v17 = vld [vmem:[%s9531_s0 + $0x368] sm:$0xff]  ;;  %v83_v34 = vld [vmem:[%s9531_s0 + $0x1c0] sm:$0xff] }
  0x3c   :  { %v209_v21 = vpack.c.bf16 %v136_v17, %v135_v16  ;;  %v183_v37 = vpack.c.bf16 %v84_v35, %v83_v34 }
  0x42   :  { %4985 = vmatmul.mubr.msk.bf16.gmra.mrb[28].mxu0 %vm242_vm0, %v170_v28  ;;  %5049 = vmatmul.mubr.msk.bf16.gmra.mrb[28].mxu1 %vm242_vm0, %v202_v46  ;;  %v139_v28 = vld [vmem:[%s9531_s0 + $0x380] sm:$0xff] }
  0x43   :  { %4988 = vmatprep.mubr.msk.bf16.mxu0 %vm242_vm0, %v171_v29  ;;  %5052 = vmatprep.mubr.msk.bf16.mxu1 %vm242_vm0, %v203_v49  ;;  %v140_v29 = vld [vmem:[%s9531_s0 + $0x388] sm:$0xff]  ;;  %v87_v46 = vld [vmem:[%s9531_s0 + $0x1e0] sm:$0xff] }
  0x44   :  { %v211_v33 = vpack.c.bf16 %v140_v29, %v139_v28  ;;  %v185_v49 = vpack.c.bf16 %v88_v47, %v87_v46 }
  0x4a   :  { %4989 = vmatmul.mubr.msk.bf16.gmra.mrb[32].mxu0 %vm242_vm0, %v172_v40  ;;  %5053 = vmatmul.mubr.msk.bf16.gmra.mrb[32].mxu1 %vm242_vm0, %v204_v58  ;;  %v143_v40 = vld [vmem:[%s9531_s0 + $0x3a0] sm:$0xff]  ;;  %v186_v58 = vpack.c.bf16 %v90_v56, %v89_v55 }
  0x4b   :  { %4992 = vmatprep.mubr.msk.bf16.mxu0 %vm242_vm0, %v173_v41  ;;  %5056 = vmatprep.mubr.msk.bf16.mxu1 %vm242_vm0, %v205_v61  ;;  %v144_v41 = vld [vmem:[%s9531_s0 + $0x3a8] sm:$0xff]  ;;  %v151_v61 = vld [vmem:[%s9531_s0 + $0x3e0] sm:$0xff] }
  0x4c   :  { %v213_v45 = vpack.c.bf16 %v144_v41, %v143_v40 }
  0x52   :  { %4993 = vmatmul.mubr.msk.bf16.gmra.mrb[36].mxu0 %vm242_vm0, %v174_v52  ;;  %5057 = vmatmul.mubr.msk.bf16.gmra.mrb[36].mxu1 %vm242_vm0, %v206_v6  ;;  %v147_v52 = vld [vmem:[%s9531_s0 + $0x3c0] sm:$0xff] }
  0x53   :  { %4996 = vmatprep.mubr.msk.bf16.mxu0 %vm242_vm0, %v175_v53  ;;  %5060 = vmatprep.mubr.msk.bf16.mxu1 %vm242_vm0, %v207_v9  ;;  %v148_v53 = vld [vmem:[%s9531_s0 + $0x3c8] sm:$0xff] }
  0x54   :  { %v215_v57 = vpack.c.bf16 %v148_v53, %v147_v52 }
  0x5a   :  { %4997 = vmatmul.mubr.msk.bf16.gmra.mrb[40].mxu0 %vm242_vm0, %v176_v0  ;;  %5061 = vmatmul.mubr.msk.bf16.gmra.mrb[40].mxu1 %vm242_vm0, %v208_v18  ;;  %v217_v0 = vpack.c.bf16 %v152_v62, %v151_v61 }
  0x5b   :  { %5000 = vmatprep.mubr.msk.bf16.mxu0 %vm242_vm0, %v177_v1  ;;  %5064 = vmatprep.mubr.msk.bf16.mxu1 %vm242_vm0, %v209_v21  ;;  %v153_v1 = vld [vmem:[%s9531_s0 + $0x3f0] sm:$0xff] }
  0x5c   :  { %v218_v3 = vpack.c.bf16 %v154_v2, %v153_v1 }
  0x62   :  { %5001 = vmatmul.mubr.msk.bf16.gmra.mrb[44].mxu0 %vm242_vm0, %v178_v12  ;;  %5065 = vmatmul.mubr.msk.bf16.gmra.mrb[44].mxu1 %vm242_vm0, %v210_v30 }
  0x63   :  { %5004 = vmatprep.mubr.msk.bf16.mxu0 %vm242_vm0, %v179_v13  ;;  %5068 = vmatprep.mubr.msk.bf16.mxu1 %vm242_vm0, %v211_v33 }
  0x6a   :  { %5005 = vmatmul.mubr.msk.bf16.gmra.mrb[48].mxu0 %vm242_vm0, %v180_v24  ;;  %5069 = vmatmul.mubr.msk.bf16.gmra.mrb[48].mxu1 %vm242_vm0, %v212_v42 }
  0x6b   :  { %5008 = vmatprep.mubr.msk.bf16.mxu0 %vm242_vm0, %v181_v25  ;;  %5072 = vmatprep.mubr.msk.bf16.mxu1 %vm242_vm0, %v213_v45 }
  0x72   :  { %5009 = vmatmul.mubr.msk.bf16.gmra.mrb[52].mxu0 %vm242_vm0, %v182_v36  ;;  %5073 = vmatmul.mubr.msk.bf16.gmra.mrb[52].mxu1 %vm242_vm0, %v214_v54 }
  0x73   :  { %5012 = vmatprep.mubr.msk.bf16.mxu0 %vm242_vm0, %v183_v37  ;;  %5076 = vmatprep.mubr.msk.bf16.mxu1 %vm242_vm0, %v215_v57 }
  0x7a   :  { %5013 = vmatmul.mubr.msk.bf16.gmra.mrb[56].mxu0 %vm242_vm0, %v184_v48  ;;  %5077 = vmatmul.mubr.msk.bf16.gmra.mrb[56].mxu1 %vm242_vm0, %v216_v63 }
  0x7b   :  { %5016 = vmatprep.mubr.msk.bf16.mxu0 %vm242_vm0, %v185_v49  ;;  %5080 = vmatprep.mubr.msk.bf16.mxu1 %vm242_vm0, %v217_v0 }
  0x82   :  { %5017 = vmatmul.mubr.msk.bf16.gmra.mrb[60].mxu0 %vm242_vm0, %v186_v58  ;;  %5081 = vmatmul.mubr.msk.bf16.gmra.mrb[60].mxu1 %vm242_vm0, %v218_v3 }
  0xdd   :  { %v4958_v5 = vpop.f32.mrb[0].mxu0  ;;  %v5022_v31 = vpop.f32.mrb[0].mxu1 }
  0xde   :  { %v6381_v6 = vadd.f32 %v4958_v5, %v6378_v4  ;;  %v469_v7 = vpop.f32.mrb[1].mxu0  ;;  %v725_v34 = vpop.f32.mrb[1].mxu1  ;;  %v6433_v57 = vadd.f32 %v5022_v31, %v6378_v4 }
  0xdf   :  { %v6384_v8 = vadd.f32 %v6378_v4, %v469_v7  ;;  %v4959_v9 = vpop.f32.mrb[2].mxu0  ;;  %v6412_v37 = vpop.f32.mrb[2].mxu1  ;;  %v6441_v62 = vadd.f32 %v6378_v4, %v725_v34 }
  0xe0   :  { %v1110_v10 = vmin.f32 %v6381_v6, 0.0  ;;  %v6388_v11 = vadd.f32 %v4959_v9, %v6378_v4  ;;  %v472_v12 = vpop.f32.mrb[3].mxu0  ;;  %v6414_v39 = vpop.f32.mrb[3].mxu1  ;;  %vm982_vm1 = vcmp.gt.f32.partialorder %v6381_v6, 0.0  ;;  %vm1046_vm13 = vcmp.gt.f32.partialorder %v6433_v57, 0.0 }
  0xe1   :  { %v1108_v13 = vmin.f32 %v6384_v8, 0.0  ;;  %v6392_v14 = vadd.f32 %v6378_v4, %v472_v12  ;;  %vm980_vm2 = vcmp.gt.f32.partialorder %v6384_v8, 0.0  ;;  %v1172_v31 = vmin.f32 %v6441_v62, 0.0 }
  0xe2   :  { %v1240_v15 = vmul.f32 1.442695, %v1110_v10  ;;  %v1111_v16 = vmin.f32 %v6388_v11, 0.0  ;;  %vm983_vm3 = vcmp.gt.f32.partialorder %v6388_v11, 0.0 }
  0xe3   :  { %v1236_v17 = vmul.f32 1.442695, %v1108_v13  ;;  %v1109_v18 = vmin.f32 %v6392_v14, 0.0  ;;  %vm981_vm4 = vcmp.gt.f32.partialorder %v6392_v14, 0.0 }
  0xe4   :  { %5358 = vpow2.f32 %v1240_v15  ;;  %v1242_v19 = vmul.f32 1.442695, %v1111_v16  ;;  %v1174_v15 = vmin.f32 %v6433_v57, 0.0 }
  0xe5   :  { %5360 = vpow2.f32 %v1236_v17  ;;  %v1238_v20 = vmul.f32 1.442695, %v1109_v18  ;;  %v4962_v21 = vpop.f32.mrb[4].mxu0  ;;  %v6435_v58 = vpop.f32.mrb[4].mxu1 }
  0xe6   :  { %5362 = vpow2.f32 %v1242_v19  ;;  %v6397_v22 = vadd.f32 %v4962_v21, %v6378_v4  ;;  %v485_v23 = vpop.f32.mrb[5].mxu0  ;;  %v6443_v63 = vpop.f32.mrb[5].mxu1 }
  0xe7   :  { %5364 = vpow2.f32 %v1238_v20  ;;  %v6400_v24 = vadd.f32 %v6378_v4, %v485_v23  ;;  %v4963_v25 = vpop.f32.mrb[6].mxu0  ;;  %v6452_v5 = vpop.f32.mrb[6].mxu1 }
  0xe8   :  { %v1114_v26 = vmin.f32 %v6397_v22, 0.0  ;;  %v6404_v27 = vadd.f32 %v4963_v25, %v6378_v4  ;;  %v488_v28 = vpop.f32.mrb[7].mxu0  ;;  %vm986_vm5 = vcmp.gt.f32.partialorder %v6397_v22, 0.0  ;;  %v6460_v10 = vpop.f32.mrb[7].mxu1 }
  0xe9   :  { %v1112_v29 = vmin.f32 %v6400_v24, 0.0  ;;  %v6408_v30 = vadd.f32 %v6378_v4, %v488_v28  ;;  %vm984_vm6 = vcmp.gt.f32.partialorder %v6400_v24, 0.0 }
  0xea   :  { %v1248_v32 = vmul.f32 1.442695, %v1114_v26  ;;  %v1115_v33 = vmin.f32 %v6404_v27, 0.0  ;;  %vm987_vm7 = vcmp.gt.f32.partialorder %v6404_v27, 0.0 }
  0xeb   :  { %v1244_v35 = vmul.f32 1.442695, %v1112_v29  ;;  %v1113_v36 = vmin.f32 %v6408_v30, 0.0  ;;  %vm985_vm8 = vcmp.gt.f32.partialorder %v6408_v30, 0.0 }
  0xec   :  { %5366 = vpow2.f32 %v1248_v32  ;;  %v1250_v38 = vmul.f32 1.442695, %v1115_v33 }
  0xed   :  { %5368 = vpow2.f32 %v1244_v35  ;;  %v1246_v40 = vmul.f32 1.442695, %v1113_v36  ;;  %v4966_v41 = vpop.f32.mrb[8].mxu0  ;;  %v1368_v35 = vmul.f32 1.442695, %v1174_v15  ;;  %v6480_v36 = vadd.f32 %v6412_v37, %v6378_v4 }
  0xee   :  { %v5359_v42 = vpop.eup %5358  ;;  %5370 = vpow2.f32 %v1250_v38  ;;  %v6419_v43 = vadd.f32 %v4966_v41, %v6378_v4  ;;  %v501_v44 = vpop.f32.mrb[9].mxu0 }
  0xef   :  { %v5361_v45 = vpop.eup %5360  ;;  %v4366_v46 = vadd.f32 -1.0, %v5359_v42  ;;  %5372 = vpow2.f32 %v1246_v40  ;;  %v6423_v47 = vadd.f32 %v6378_v4, %v501_v44  ;;  %v4967_v48 = vpop.f32.mrb[10].mxu0 }
  0xf0   :  { %v5363_v49 = vpop.eup %5362  ;;  %v4364_v50 = vadd.f32 -1.0, %v5361_v45  ;;  %v1118_v51 = vmin.f32 %v6419_v43, 0.0  ;;  %v6428_v52 = vadd.f32 %v4967_v48, %v6378_v4  ;;  %v504_v53 = vpop.f32.mrb[11].mxu0  ;;  %vm990_vm9 = vcmp.gt.f32.partialorder %v6419_v43, 0.0 }
  0xf1   :  { %v5365_v54 = vpop.eup %5364  ;;  %v4367_v55 = vadd.f32 -1.0, %v5363_v49  ;;  %v1116_v56 = vmin.f32 %v6423_v47, 0.0  ;;  %v1622_v59 = vsel %vm982_vm1, %v6381_v6, %v4366_v46  ;;  %v6450_v3 = vadd.f32 %v6378_v4, %v504_v53  ;;  %v6482_v38 = vpop.f32.mrb[8].mxu1 }
  0xf2   :  { %v4365_v60 = vadd.f32 -1.0, %v5365_v54  ;;  %v1256_v61 = vmul.f32 1.442695, %v1118_v51  ;;  %v1119_v2 = vmin.f32 %v6428_v52, 0.0  ;;  %v1620_v6 = vsel %vm980_vm2, %v6384_v8, %v4364_v50  ;;  %v6487_v44 = vpop.f32.mrb[9].mxu1 }
  0xf3   :  { %v1623_v0 = vsel %vm983_vm3, %v6388_v11, %v4367_v55  ;;  %v1252_v1 = vmul.f32 1.442695, %v1116_v56  ;;  %v1117_v8 = vmin.f32 %v6450_v3, 0.0  ;;  %v6498_v49 = vpop.f32.mrb[10].mxu1  ;;  %vm988_vm10 = vcmp.gt.f32.partialorder %v6423_v47, 0.0 }
  0xf4   :  { %v1749_v7 = vpack.c.bf16 %v1623_v0, %v1622_v59  ;;  %v1621_v9 = vsel %vm981_vm4, %v6392_v14, %v4365_v60  ;;  %5374 = vpow2.f32 %v1256_v61  ;;  %v1258_v12 = vmul.f32 1.442695, %v1119_v2 }
  0xf5   :  { %v1748_v11 = vpack.c.bf16 %v1621_v9, %v1620_v6  ;;  %v4970_v13 = vpop.f32.mrb[12].mxu0  ;;  %5376 = vpow2.f32 %v1252_v1  ;;  %v1254_v26 = vmul.f32 1.442695, %v1117_v8  ;;  %v1175_v61 = vmin.f32 %v6480_v36, 0.0 }
  0xf6   :  { %v5367_v16 = vpop.eup %5366  ;;  %v6467_v17 = vadd.f32 %v4970_v13, %v6378_v4  ;;  %v517_v14 = vpop.f32.mrb[13].mxu0  ;;  %5378 = vpow2.f32 %v1258_v12  ;;  %v1364_v2 = vmul.f32 1.442695, %v1172_v31  ;;  %vm991_vm11 = vcmp.gt.f32.partialorder %v6428_v52, 0.0 }
  0xf7   :  { %v5369_v18 = vpop.eup %5368  ;;  %v4370_v19 = vadd.f32 -1.0, %v5367_v16  ;;  %v6471_v20 = vadd.f32 %v6378_v4, %v517_v14  ;;  %v4971_v21 = vpop.f32.mrb[14].mxu0  ;;  %5088 = vmatprep.mubr.msk.bf16.mxu1 %vm242_vm0, %v1748_v11  ;;  %5380 = vpow2.f32 %v1254_v26  ;;  %vm989_vm12 = vcmp.gt.f32.partialorder %v6450_v3, 0.0 }
  0xf8   :  { %v5371_v23 = vpop.eup %5370  ;;  %v4368_v25 = vadd.f32 -1.0, %v5369_v18  ;;  %v1122_v28 = vmin.f32 %v6467_v17, 0.0  ;;  %v520_v29 = vpop.f32.mrb[15].mxu0  ;;  %5089 = vmatmul.mubr.msk.bf16.vlgmr.msra.gmra.mrb[64].mxu1 %vm242_vm0, %v1749_v7  ;;  %v6493_v48 = vadd.f32 %v4971_v21, %v6378_v4  ;;  %v1370_v18 = vmul.f32 1.442695, %v1175_v61 }
  0xf9   :  { %v5373_v32 = vpop.eup %5372  ;;  %v4371_v33 = vadd.f32 -1.0, %v5371_v23  ;;  %v1120_v34 = vmin.f32 %v6471_v20, 0.0  ;;  %v1626_v40 = vsel %vm986_vm5, %v6397_v22, %v4370_v19  ;;  %v6496_v37 = vadd.f32 %v6378_v4, %v520_v29 }
  0xfa   :  { %v4369_v41 = vadd.f32 -1.0, %v5373_v32  ;;  %v1264_v42 = vmul.f32 1.442695, %v1122_v28  ;;  %v1624_v22 = vsel %vm984_vm6, %v6400_v24, %v4368_v25  ;;  %v1123_v54 = vmin.f32 %v6493_v48, 0.0 }
  0xfb   :  { %v1627_v45 = vsel %vm987_vm7, %v6404_v27, %v4371_v33  ;;  %v1260_v46 = vmul.f32 1.442695, %v1120_v34  ;;  %v6506_v27 = vpop.f32.mrb[11].mxu1  ;;  %v1121_v59 = vmin.f32 %v6496_v37, 0.0  ;;  %vm994_vm14 = vcmp.gt.f32.partialorder %v6467_v17, 0.0 }
  0xfc   :  { %v1751_v50 = vpack.c.bf16 %v1627_v45, %v1626_v40  ;;  %v1625_v51 = vsel %vm985_vm8, %v6408_v30, %v4369_v41  ;;  %5382 = vpow2.f32 %v1264_v42  ;;  %v1266_v0 = vmul.f32 1.442695, %v1123_v54  ;;  %v6524_v16 = vpop.f32.mrb[12].mxu1 }
  0xfd   :  { %v1750_v53 = vpack.c.bf16 %v1625_v51, %v1624_v22  ;;  %v4974_v55 = vpop.f32.mrb[16].mxu0  ;;  %5384 = vpow2.f32 %v1260_v46  ;;  %v1262_v9 = vmul.f32 1.442695, %v1121_v59  ;;  %v6526_v19 = vpop.f32.mrb[13].mxu1  ;;  %v6547_v41 = vadd.f32 %v6378_v4, %v6414_v39 }
  0xfe   :  { %v5375_v56 = vpop.eup %5374  ;;  %v6511_v60 = vadd.f32 %v4974_v55, %v6378_v4  ;;  %v533_v24 = vpop.f32.mrb[17].mxu0  ;;  %5386 = vpow2.f32 %v1368_v35  ;;  %vm992_vm15 = vcmp.gt.f32.partialorder %v6471_v20, 0.0  ;;  %vm995_vm1 = vcmp.gt.f32.partialorder %v6493_v48, 0.0 }
  0xff   :  { %v6515_v30 = vadd.f32 %v6378_v4, %v533_v24  ;;  %v4975_v1 = vpop.f32.mrb[18].mxu0  ;;  %5092 = vmatprep.mubr.msk.bf16.mxu1 %vm242_vm0, %v1750_v53  ;;  %v5377_v6 = vpop.eup %5376  ;;  %v4374_v7 = vadd.f32 -1.0, %v5375_v56  ;;  %5388 = vpow2.f32 %v1266_v0  ;;  %vm993_vm2 = vcmp.gt.f32.partialorder %v6496_v37, 0.0 }
 0x100   :  { %v1126_v11 = vmin.f32 %v6511_v60, 0.0  ;;  %v536_v12 = vpop.f32.mrb[19].mxu0  ;;  %5093 = vmatmul.mubr.msk.bf16.gmra.mrb[68].mxu1 %vm242_vm0, %v1751_v50  ;;  %v5379_v13 = vpop.eup %5378  ;;  %5390 = vpow2.f32 %v1262_v9  ;;  %v4372_v21 = vadd.f32 -1.0, %v5377_v6  ;;  %v6529_v25 = vadd.f32 %v4975_v1, %v6378_v4 }
 0x101   :  { %v1124_v15 = vmin.f32 %v6515_v30, 0.0  ;;  %v4375_v8 = vadd.f32 -1.0, %v5379_v13  ;;  %v6532_v26 = vadd.f32 %v6378_v4, %v536_v12  ;;  %v6534_v28 = vpop.f32.mrb[14].mxu1  ;;  %v5381_v29 = vpop.eup %5380  ;;  %v1630_v31 = vsel %vm990_vm9, %v6419_v43, %v4374_v7 }
 0x102   :  { %v1272_v14 = vmul.f32 1.442695, %v1126_v11  ;;  %v6543_v33 = vpop.f32.mrb[15].mxu1  ;;  %v4373_v35 = vadd.f32 -1.0, %v5381_v29  ;;  %v1127_v43 = vmin.f32 %v6529_v25, 0.0  ;;  %v1628_v22 = vsel %vm988_vm10, %v6423_v47, %v4372_v21 }
 0x103   :  { %v1268_v23 = vmul.f32 1.442695, %v1124_v15  ;;  %v1631_v32 = vsel %vm991_vm11, %v6428_v52, %v4375_v8  ;;  %v1125_v45 = vmin.f32 %v6532_v26, 0.0  ;;  %vm1047_vm3 = vcmp.gt.f32.partialorder %v6480_v36, 0.0 }
 0x104   :  { %5392 = vpow2.f32 %v1272_v14  ;;  %v1753_v34 = vpack.c.bf16 %v1631_v32, %v1630_v31  ;;  %v1629_v50 = vsel %vm989_vm12, %v6450_v3, %v4373_v35  ;;  %v1274_v55 = vmul.f32 1.442695, %v1127_v43  ;;  %v6566_v3 = vpop.f32.mrb[16].mxu1 }
 0x105   :  { %v4978_v40 = vpop.f32.mrb[20].mxu0  ;;  %5394 = vpow2.f32 %v1364_v2  ;;  %v1752_v54 = vpack.c.bf16 %v1629_v50, %v1628_v22  ;;  %v1270_v56 = vmul.f32 1.442695, %v1125_v45  ;;  %v6575_v2 = vpop.f32.mrb[17].mxu1  ;;  %vm998_vm4 = vcmp.gt.f32.partialorder %v6511_v60, 0.0 }
 0x106   :  { %v5383_v42 = vpop.eup %5382  ;;  %v6552_v52 = vadd.f32 %v4978_v40, %v6378_v4  ;;  %v549_v46 = vpop.f32.mrb[21].mxu0  ;;  %5396 = vpow2.f32 %v1370_v18  ;;  %vm996_vm5 = vcmp.gt.f32.partialorder %v6515_v30, 0.0  ;;  %vm999_vm6 = vcmp.gt.f32.partialorder %v6529_v25, 0.0 }
 0x107   :  { %5398 = vpow2.f32 %v1268_v23  ;;  %v6559_v39 = vadd.f32 %v6378_v4, %v549_v46  ;;  %v4979_v51 = vpop.f32.mrb[22].mxu0  ;;  %v5385_v53 = vpop.eup %5384  ;;  %v4378_v61 = vadd.f32 -1.0, %v5383_v42  ;;  %5096 = vmatprep.mubr.msk.bf16.mxu1 %vm242_vm0, %v1752_v54  ;;  %vm997_vm7 = vcmp.gt.f32.partialorder %v6532_v26, 0.0 }
 0x108   :  { %v552_v59 = vpop.f32.mrb[23].mxu0  ;;  %v5387_v24 = vpop.eup %5386  ;;  %v1130_v47 = vmin.f32 %v6552_v52, 0.0  ;;  %5400 = vpow2.f32 %v1274_v55  ;;  %v6571_v1 = vadd.f32 %v4979_v51, %v6378_v4  ;;  %v4376_v7 = vadd.f32 -1.0, %v5385_v53  ;;  %5097 = vmatmul.mubr.msk.bf16.gmra.mrb[72].mxu1 %vm242_vm0, %v1753_v34 }
 0x109   :  { %v1128_v0 = vmin.f32 %v6559_v39, 0.0  ;;  %v5389_v6 = vpop.eup %5388  ;;  %5402 = vpow2.f32 %v1270_v56  ;;  %v6579_v11 = vadd.f32 %v6378_v4, %v552_v59  ;;  %v6582_v12 = vpop.f32.mrb[18].mxu1  ;;  %v4430_v18 = vadd.f32 -1.0, %v5387_v24 }
 0x10a   :  { %v1280_v9 = vmul.f32 1.442695, %v1130_v47  ;;  %v5391_v13 = vpop.eup %5390  ;;  %v4379_v15 = vadd.f32 -1.0, %v5389_v6  ;;  %v1131_v14 = vmin.f32 %v6571_v1, 0.0  ;;  %v6585_v21 = vpop.f32.mrb[19].mxu1  ;;  %v1634_v23 = vsel %vm994_vm14, %v6467_v17, %v4378_v61 }
 0x10b   :  { %v1276_v8 = vmul.f32 1.442695, %v1128_v0  ;;  %v4377_v29 = vadd.f32 -1.0, %v5391_v13  ;;  %v1129_v31 = vmin.f32 %v6579_v11, 0.0  ;;  %v1632_v17 = vsel %vm992_vm15, %v6471_v20, %v4376_v7 }
 0x10c   :  { %5404 = vpow2.f32 %v1280_v9  ;;  %v1635_v35 = vsel %vm995_vm1, %v6493_v48, %v4379_v15  ;;  %v1282_v40 = vmul.f32 1.442695, %v1131_v14  ;;  %v6623_v0 = vsel %vm1046_vm13, %v6433_v57, %v4430_v18 }
 0x10d   :  { %v4982_v32 = vpop.f32.mrb[24].mxu0  ;;  %5406 = vpow2.f32 %v1276_v8  ;;  %v1755_v46 = vpack.c.bf16 %v1635_v35, %v1634_v23  ;;  %v1633_v22 = vsel %vm993_vm2, %v6496_v37, %v4377_v29  ;;  %v1278_v50 = vmul.f32 1.442695, %v1129_v31  ;;  %v6610_v37 = vpop.f32.mrb[20].mxu1 }
 0x10e   :  { %v5393_v34 = vpop.eup %5392  ;;  %v6595_v42 = vadd.f32 %v4982_v32, %v6378_v4  ;;  %v565_v43 = vpop.f32.mrb[25].mxu0  ;;  %v1754_v53 = vpack.c.bf16 %v1633_v22, %v1632_v17  ;;  %5408 = vpow2.f32 %v1282_v40  ;;  %vm1002_vm8 = vcmp.gt.f32.partialorder %v6552_v52, 0.0  ;;  %v5356_v32 = vld [vmem:[%s9534_s5] sm:$0xff]  }
 0x10f   :  { %v5395_v45 = vpop.eup %5394  ;;  %v4983_v48 = vpop.f32.mrb[26].mxu0  ;;  %v4382_v54 = vadd.f32 -1.0, %v5393_v34  ;;  %5410 = vpow2.f32 %v1278_v50  ;;  %v6608_v24 = vadd.f32 %v6378_v4, %v565_v43  ;;  %vm1000_vm9 = vcmp.gt.f32.partialorder %v6559_v39, 0.0  ;;  %5216 = vmatprep.subr.bf16.mxu0 %v5356_v32 }
 0x110   :  { %v5397_v51 = vpop.eup %5396  ;;  %v568_v55 = vpop.f32.mrb[27].mxu0  ;;  %v1134_v20 = vmin.f32 %v6595_v42, 0.0  ;;  %v6614_v61 = vadd.f32 %v4983_v48, %v6378_v4  ;;  %5100 = vmatprep.mubr.msk.bf16.mxu1 %vm242_vm0, %v1754_v53  ;;  %v6629_v13 = vadd.f32 -1.0, %v5395_v45  ;;  %vm1044_vm10 = vcmp.gt.f32.partialorder %v6441_v62, 0.0  ;;  %5217 = vmatpush3.bf16.msra.mxu0 %v5356_v32 }
 0x111   :  { %v5399_v59 = vpop.eup %5398  ;;  %v6618_v47 = vadd.f32 %v6378_v4, %v568_v55  ;;  %v6625_v6 = vpop.f32.mrb[21].mxu1  ;;  %v1132_v9 = vmin.f32 %v6608_v24, 0.0  ;;  %5101 = vmatmul.mubr.msk.bf16.gmra.mrb[76].mxu1 %vm242_vm0, %v1755_v46  ;;  %v4431_v15 = vadd.f32 -1.0, %v5397_v51  ;;  %v1638_v23 = vsel %vm998_vm4, %v6511_v60, %v4382_v54 }
 0x112   :  { %v1288_v7 = vmul.f32 1.442695, %v1134_v20  ;;  %v6631_v8 = vpop.f32.mrb[22].mxu1  ;;  %v5401_v14 = vpop.eup %5400  ;;  %v4380_v29 = vadd.f32 -1.0, %v5399_v59  ;;  %v1135_v57 = vmin.f32 %v6614_v61, 0.0  ;;  %vm1003_vm11 = vcmp.gt.f32.partialorder %v6571_v1, 0.0 }
 0x113   :  { %v1133_v18 = vmin.f32 %v6618_v47, 0.0  ;;  %v6640_v31 = vpop.f32.mrb[23].mxu1  ;;  %v5403_v34 = vpop.eup %5402  ;;  %v4383_v35 = vadd.f32 -1.0, %v5401_v14  ;;  %v1284_v40 = vmul.f32 1.442695, %v1132_v9  ;;  %v6648_v43 = vsel %vm1047_vm3, %v6480_v36, %v4431_v15 }
 0x114   :  { %5412 = vpow2.f32 %v1288_v7  ;;  %v4381_v45 = vadd.f32 -1.0, %v5403_v34  ;;  %v1290_v17 = vmul.f32 1.442695, %v1135_v57  ;;  %v1636_v59 = vsel %vm996_vm5, %v6515_v30, %v4380_v29  ;;  %v6668_v57 = vpop.f32.mrb[24].mxu1 }
 0x115   :  { %v4986_v60 = vpop.f32.mrb[28].mxu0  ;;  %v1286_v46 = vmul.f32 1.442695, %v1133_v18  ;;  %v1639_v51 = vsel %vm999_vm6, %v6529_v25, %v4383_v35  ;;  %5414 = vpow2.f32 %v1284_v40  ;;  %vm1001_vm12 = vcmp.gt.f32.partialorder %v6579_v11, 0.0  ;;  %v6674_v29 = vpop.f32.mrb[25].mxu1 }
 0x116   :  { %v6651_v22 = vadd.f32 %v4986_v60, %v6378_v4  ;;  %v581_v50 = vpop.f32.mrb[29].mxu0  ;;  %v5405_v48 = vpop.eup %5404  ;;  %v1757_v20 = vpack.c.bf16 %v1639_v51, %v1638_v23  ;;  %v1637_v7 = vsel %vm997_vm7, %v6532_v26, %v4381_v45  ;;  %5416 = vpow2.f32 %v1290_v17 }
 0x117   :  { %v6658_v53 = vadd.f32 %v6378_v4, %v581_v50  ;;  %v4987_v36 = vpop.f32.mrb[30].mxu0  ;;  %v5407_v55 = vpop.eup %5406  ;;  %v1756_v9 = vpack.c.bf16 %v1637_v7, %v1636_v59  ;;  %v4386_v15 = vadd.f32 -1.0, %v5405_v48  ;;  %5418 = vpow2.f32 %v1286_v46 }
 0x118   :  { %v584_v25 = vpop.f32.mrb[31].mxu0  ;;  %v4384_v14 = vadd.f32 -1.0, %v5407_v55  ;;  %v5409_v18 = vpop.eup %5408  ;;  %v1138_v30 = vmin.f32 %v6651_v22, 0.0  ;;  %vm1006_vm13 = vcmp.gt.f32.partialorder %v6595_v42, 0.0  ;;  %v6678_v34 = vadd.f32 %v4987_v36, %v6378_v4 }
 0x119   :  { %v1136_v23 = vmin.f32 %v6658_v53, 0.0  ;;  %v5411_v26 = vpop.eup %5410  ;;  %v4387_v32 = vadd.f32 -1.0, %v5409_v18  ;;  %5104 = vmatprep.mubr.msk.bf16.mxu1 %vm242_vm0, %v1756_v9  ;;  %v6682_v35 = vadd.f32 %v6378_v4, %v584_v25  ;;  %v6684_v40 = vpop.f32.mrb[26].mxu1  ;;  %v1642_v50 = vsel %vm1002_vm8, %v6552_v52, %v4386_v15 }
 0x11a   :  { %v4385_v60 = vadd.f32 -1.0, %v5411_v26  ;;  %v1296_v45 = vmul.f32 1.442695, %v1138_v30  ;;  %5105 = vmatmul.mubr.msk.bf16.gmra.mrb[80].mxu1 %vm242_vm0, %v1757_v20  ;;  %v6687_v46 = vpop.f32.mrb[27].mxu1  ;;  %v1640_v48 = vsel %vm1000_vm9, %v6559_v39, %v4384_v14  ;;  %v1139_v36 = vmin.f32 %v6678_v34, 0.0 }
 0x11b   :  { %v1292_v17 = vmul.f32 1.442695, %v1136_v23  ;;  %v1643_v51 = vsel %vm1003_vm11, %v6571_v1, %v4387_v32  ;;  %v1137_v7 = vmin.f32 %v6682_v35, 0.0  ;;  %vm1004_vm14 = vcmp.gt.f32.partialorder %v6608_v24, 0.0 }
 0x11c   :  { %v1759_v59 = vpack.c.bf16 %v1643_v51, %v1642_v50  ;;  %v1641_v20 = vsel %vm1001_vm12, %v6579_v11, %v4385_v60  ;;  %5420 = vpow2.f32 %v1296_v45  ;;  %v1298_v39 = vmul.f32 1.442695, %v1139_v36 }
 0x11d   :  { %v4990_v55 = vpop.f32.mrb[32].mxu0  ;;  %v1758_v9 = vpack.c.bf16 %v1641_v20, %v1640_v48  ;;  %5422 = vpow2.f32 %v1292_v17  ;;  %v1294_v18 = vmul.f32 1.442695, %v1137_v7  ;;  %v6721_v45 = vsel %vm1044_vm10, %v6441_v62, %v6629_v13  ;;  %v6723_v17 = vpop.f32.mrb[28].mxu1 }
 0x11e   :  { %v597_v52 = vpop.f32.mrb[33].mxu0  ;;  %v5413_v25 = vpop.eup %5412  ;;  %v6704_v15 = vadd.f32 %v4990_v55, %v6378_v4  ;;  %5424 = vpow2.f32 %v1298_v39  ;;  %vm1007_vm15 = vcmp.gt.f32.partialorder %v6614_v61, 0.0  ;;  %vm1005_vm1 = vcmp.gt.f32.partialorder %v6618_v47, 0.0 }
 0x11f   :  { %v4991_v1 = vpop.f32.mrb[34].mxu0  ;;  %v4390_v14 = vadd.f32 -1.0, %v5413_v25  ;;  %v6707_v30 = vadd.f32 %v6378_v4, %v597_v52  ;;  %v5415_v26 = vpop.eup %5414  ;;  %5108 = vmatprep.mubr.msk.bf16.mxu1 %vm242_vm0, %v1758_v9  ;;  %5426 = vpow2.f32 %v1294_v18  ;;  %vm1010_vm2 = vcmp.gt.f32.partialorder %v6651_v22, 0.0 }
 0x120   :  { %v6710_v23 = vadd.f32 %v4991_v1, %v6378_v4  ;;  %v600_v11 = vpop.f32.mrb[35].mxu0  ;;  %v1142_v32 = vmin.f32 %v6704_v15, 0.0  ;;  %v5417_v50 = vpop.eup %5416  ;;  %v4388_v48 = vadd.f32 -1.0, %v5415_v26  ;;  %vm1008_vm3 = vcmp.gt.f32.partialorder %v6658_v53, 0.0 }
 0x121   :  { %v6715_v60 = vadd.f32 %v6378_v4, %v600_v11  ;;  %v6727_v51 = vpop.f32.mrb[29].mxu1  ;;  %v5419_v36 = vpop.eup %5418  ;;  %v4391_v55 = vadd.f32 -1.0, %v5417_v50  ;;  %v1140_v7 = vmin.f32 %v6707_v30, 0.0  ;;  %v1646_v13 = vsel %vm1006_vm13, %v6595_v42, %v4390_v14 }
 0x122   :  { %v1304_v20 = vmul.f32 1.442695, %v1142_v32  ;;  %v6731_v62 = vpop.f32.mrb[30].mxu1  ;;  %v1644_v52 = vsel %vm1004_vm14, %v6608_v24, %v4388_v48  ;;  %v4389_v25 = vadd.f32 -1.0, %v5419_v36  ;;  %v1143_v9 = vmin.f32 %v6710_v23, 0.0  ;;  %5109 = vmatmul.mubr.msk.bf16.gmra.mrb[84].mxu1 %vm242_vm0, %v1759_v59 }
 0x123   :  { %v6739_v39 = vpop.f32.mrb[31].mxu1  ;;  %v1647_v1 = vsel %vm1007_vm15, %v6614_v61, %v4391_v55  ;;  %v1300_v18 = vmul.f32 1.442695, %v1140_v7  ;;  %v1141_v11 = vmin.f32 %v6715_v60, 0.0  ;;  %vm1011_vm4 = vcmp.gt.f32.partialorder %v6678_v34, 0.0 }
 0x124   :  { %5428 = vpow2.f32 %v1304_v20  ;;  %v1761_v32 = vpack.c.bf16 %v1647_v1, %v1646_v13  ;;  %v1645_v42 = vsel %vm1005_vm1, %v6618_v47, %v4389_v25  ;;  %v1306_v24 = vmul.f32 1.442695, %v1143_v9  ;;  %v6760_v9 = vpop.f32.mrb[32].mxu1 }
 0x125   :  { %v4994_v26 = vpop.f32.mrb[36].mxu0  ;;  %v1760_v59 = vpack.c.bf16 %v1645_v42, %v1644_v52  ;;  %5430 = vpow2.f32 %v1300_v18  ;;  %v1302_v48 = vmul.f32 1.442695, %v1141_v11  ;;  %v6767_v42 = vpop.f32.mrb[33].mxu1  ;;  %vm1009_vm5 = vcmp.gt.f32.partialorder %v6682_v35, 0.0 }
 0x126   :  { %v6747_v14 = vadd.f32 %v4994_v26, %v6378_v4  ;;  %v613_v50 = vpop.f32.mrb[37].mxu0  ;;  %v5421_v55 = vpop.eup %5420  ;;  %5432 = vpow2.f32 %v1306_v24  ;;  %v6765_v26 = vadd.f32 %v6435_v58, %v6378_v4  ;;  %9538 = vst [vmem:[#allocation2_spill] sm:$0xff] %v6767_v42  ;;  %vm1014_vm6 = vcmp.gt.f32.partialorder %v6704_v15, 0.0 }
 0x127   :  { %v6750_v61 = vadd.f32 %v6378_v4, %v613_v50  ;;  %v4995_v36 = vpop.f32.mrb[38].mxu0  ;;  %v5423_v13 = vpop.eup %5422  ;;  %v4394_v25 = vadd.f32 -1.0, %v5421_v55  ;;  %5434 = vpow2.f32 %v1302_v48  ;;  %5112 = vmatprep.mubr.msk.bf16.mxu1 %vm242_vm0, %v1760_v59  ;;  %vm1012_vm7 = vcmp.gt.f32.partialorder %v6707_v30, 0.0 }
 0x128   :  { %v1146_v20 = vmin.f32 %v6747_v14, 0.0  ;;  %v6755_v47 = vadd.f32 %v4995_v36, %v6378_v4  ;;  %v616_v7 = vpop.f32.mrb[39].mxu0  ;;  %v4392_v1 = vadd.f32 -1.0, %v5423_v13  ;;  %v5425_v24 = vpop.eup %5424  ;;  %vm1015_vm8 = vcmp.gt.f32.partialorder %v6710_v23, 0.0 }
 0x129   :  { %v1144_v52 = vmin.f32 %v6750_v61, 0.0  ;;  %v6772_v59 = vadd.f32 %v6378_v4, %v616_v7  ;;  %v6774_v48 = vpop.f32.mrb[34].mxu1  ;;  %v5427_v36 = vpop.eup %5426  ;;  %v4395_v55 = vadd.f32 -1.0, %v5425_v24  ;;  %v1650_v13 = vsel %vm1010_vm2, %v6651_v22, %v4394_v25 }
 0x12a   :  { %v1312_v18 = vmul.f32 1.442695, %v1146_v20  ;;  %v1147_v11 = vmin.f32 %v6755_v47, 0.0  ;;  %9539 = vst [vmem:[#allocation3_spill] sm:$0xff] %v6774_v48  ;;  %5113 = vmatmul.mubr.msk.bf16.gmra.mrb[88].mxu1 %vm242_vm0, %v1761_v32  ;;  %v6778_v20 = vpop.f32.mrb[35].mxu1  ;;  %v1648_v24 = vsel %vm1008_vm3, %v6658_v53, %v4392_v1  ;;  %vm1013_vm9 = vcmp.gt.f32.partialorder %v6715_v60, 0.0 }
 0x12b   :  { %v1308_v50 = vmul.f32 1.442695, %v1144_v52  ;;  %9540 = vst [vmem:[#allocation4_spill] sm:$0xff] %v6778_v20  ;;  %v4393_v52 = vadd.f32 -1.0, %v5427_v36  ;;  %v1145_v7 = vmin.f32 %v6772_v59, 0.0  ;;  %vm1018_vm10 = vcmp.gt.f32.partialorder %v6747_v14, 0.0 }
 0x12c   :  { %5436 = vpow2.f32 %v1312_v18  ;;  %v1314_v58 = vmul.f32 1.442695, %v1147_v11  ;;  %v1651_v18 = vsel %vm1011_vm4, %v6678_v34, %v4395_v55  ;;  %vm1016_vm11 = vcmp.gt.f32.partialorder %v6750_v61, 0.0 }
 0x12d   :  { %5438 = vpow2.f32 %v1308_v50  ;;  %v4998_v54 = vpop.f32.mrb[40].mxu0  ;;  %v1763_v22 = vpack.c.bf16 %v1651_v18, %v1650_v13  ;;  %v1649_v25 = vsel %vm1009_vm5, %v6682_v35, %v4393_v52  ;;  %v1310_v50 = vmul.f32 1.442695, %v1145_v7  ;;  %v6806_v13 = vpop.f32.mrb[36].mxu1 }
 0x12e   :  { %5440 = vpow2.f32 %v1314_v58  ;;  %v6791_v32 = vadd.f32 %v4998_v54, %v6378_v4  ;;  %v629_v11 = vpop.f32.mrb[41].mxu0  ;;  %v5429_v56 = vpop.eup %5428  ;;  %v1762_v1 = vpack.c.bf16 %v1649_v25, %v1648_v24  ;;  %9541 = vst [vmem:[#allocation5_spill] sm:$0xff] %v6806_v13  ;;  %v9542_v18 = vmin.f32 %v6547_v41, 0.0 }
 0x12f   :  { %v6797_v36 = vadd.f32 %v6378_v4, %v629_v11  ;;  %v4999_v53 = vpop.f32.mrb[42].mxu0  ;;  %v4398_v20 = vadd.f32 -1.0, %v5429_v56  ;;  %v5431_v55 = vpop.eup %5430  ;;  %5442 = vpow2.f32 %v1310_v50  ;;  %vm1045_vm12 = vcmp.gt.f32.partialorder %v6547_v41, 0.0 }
 0x130   :  { %v1150_v34 = vmin.f32 %v6791_v32, 0.0  ;;  %v632_v54 = vpop.f32.mrb[43].mxu0  ;;  %v6804_v35 = vadd.f32 %v4999_v53, %v6378_v4  ;;  %v5433_v52 = vpop.eup %5432  ;;  %v4396_v7 = vadd.f32 -1.0, %v5431_v55  ;;  %5116 = vmatprep.mubr.msk.bf16.mxu1 %vm242_vm0, %v1762_v1  ;;  %v1366_v11 = vmul.f32 1.442695, %v9542_v18 }
 0x131   :  { %v1148_v58 = vmin.f32 %v6797_v36, 0.0  ;;  %v6810_v56 = vadd.f32 %v6378_v4, %v632_v54  ;;  %v6814_v25 = vpop.f32.mrb[37].mxu1  ;;  %v5435_v50 = vpop.eup %5434  ;;  %v4399_v48 = vadd.f32 -1.0, %v5433_v52  ;;  %v1654_v1 = vsel %vm1014_vm6, %v6704_v15, %v4398_v20 }
 0x132   :  { %v1320_v24 = vmul.f32 1.442695, %v1150_v34  ;;  %9543 = vst [vmem:[#allocation6_spill] sm:$0xff] %v6814_v25  ;;  %v1151_v13 = vmin.f32 %v6804_v35, 0.0  ;;  %v6818_v42 = vpop.f32.mrb[38].mxu1  ;;  %v1652_v34 = vsel %vm1012_vm7, %v6707_v30, %v4396_v7  ;;  %v4397_v54 = vadd.f32 -1.0, %v5435_v50  ;;  %5117 = vmatmul.mubr.msk.bf16.gmra.mrb[92].mxu1 %vm242_vm0, %v1763_v22 }
 0x133   :  { %v1316_v53 = vmul.f32 1.442695, %v1148_v58  ;;  %9544 = vst [vmem:[#allocation7_spill] sm:$0xff] %v6818_v42  ;;  %v6827_v55 = vpop.f32.mrb[39].mxu1  ;;  %v1655_v58 = vsel %vm1015_vm8, %v6710_v23, %v4399_v48  ;;  %v1149_v18 = vmin.f32 %v6810_v56, 0.0  ;;  %vm1019_vm13 = vcmp.gt.f32.partialorder %v6755_v47, 0.0 }
 0x134   :  { %5444 = vpow2.f32 %v1320_v24  ;;  %9545 = vst [vmem:[#allocation8_spill] sm:$0xff] %v6827_v55  ;;  %v1322_v52 = vmul.f32 1.442695, %v1151_v13  ;;  %v1765_v20 = vpack.c.bf16 %v1655_v58, %v1654_v1  ;;  %v1653_v30 = vsel %vm1013_vm9, %v6715_v60, %v4397_v54 }
 0x135   :  { %5446 = vpow2.f32 %v1316_v53  ;;  %v5002_v42 = vpop.f32.mrb[44].mxu0  ;;  %v1764_v50 = vpack.c.bf16 %v1653_v30, %v1652_v34  ;;  %v1318_v23 = vmul.f32 1.442695, %v1149_v18  ;;  %v6851_v34 = vpop.f32.mrb[40].mxu1  ;;  %vm1017_vm14 = vcmp.gt.f32.partialorder %v6772_v59, 0.0 }
 0x136   :  { %v5437_v15 = vpop.eup %5436  ;;  %v6837_v7 = vadd.f32 %v5002_v42, %v6378_v4  ;;  %v645_v22 = vpop.f32.mrb[45].mxu0  ;;  %5448 = vpow2.f32 %v1366_v11  ;;  %9546 = vst [vmem:[#allocation9_spill] sm:$0xff] %v6851_v34  ;;  %vm1022_vm15 = vcmp.gt.f32.partialorder %v6791_v32, 0.0  ;;  %vm1020_vm1 = vcmp.gt.f32.partialorder %v6797_v36, 0.0 }
 0x137   :  { %v5439_v24 = vpop.eup %5438  ;;  %v4402_v55 = vadd.f32 -1.0, %v5437_v15  ;;  %5450 = vpow2.f32 %v1322_v52  ;;  %v5003_v48 = vpop.f32.mrb[46].mxu0  ;;  %v6843_v60 = vadd.f32 %v6378_v4, %v645_v22  ;;  %5120 = vmatprep.mubr.msk.bf16.mxu1 %vm242_vm0, %v1764_v50  ;;  %vm1023_vm2 = vcmp.gt.f32.partialorder %v6804_v35, 0.0 }
 0x138   :  { %v5441_v13 = vpop.eup %5440  ;;  %v1154_v53 = vmin.f32 %v6837_v7, 0.0  ;;  %v648_v42 = vpop.f32.mrb[47].mxu0  ;;  %5452 = vpow2.f32 %v1318_v23  ;;  %v6848_v1 = vadd.f32 %v5003_v48, %v6378_v4  ;;  %v4400_v54 = vadd.f32 -1.0, %v5439_v24 }
 0x139   :  { %v4403_v11 = vadd.f32 -1.0, %v5441_v13  ;;  %v1152_v52 = vmin.f32 %v6843_v60, 0.0  ;;  %v6855_v18 = vpop.f32.mrb[41].mxu1  ;;  %v5443_v15 = vpop.eup %5442  ;;  %v1658_v30 = vsel %vm1018_vm10, %v6747_v14, %v4402_v55  ;;  %v6863_v50 = vadd.f32 %v6378_v4, %v648_v42 }
 0x13a   :  { %v1328_v58 = vmul.f32 1.442695, %v1154_v53  ;;  %9547 = vst [vmem:[#allocation10_spill] sm:$0xff] %v6855_v18  ;;  %v1155_v23 = vmin.f32 %v6848_v1, 0.0  ;;  %v6865_v24 = vpop.f32.mrb[42].mxu1  ;;  %v4401_v13 = vadd.f32 -1.0, %v5443_v15  ;;  %5121 = vmatmul.mubr.msk.bf16.gmra.mrb[96].mxu1 %vm242_vm0, %v1765_v20  ;;  %v1656_v42 = vsel %vm1016_vm11, %v6750_v61, %v4400_v54 }
 0x13b   :  { %v1659_v22 = vsel %vm1019_vm13, %v6755_v47, %v4403_v11  ;;  %9548 = vst [vmem:[#allocation11_spill] sm:$0xff] %v6865_v24  ;;  %v1324_v53 = vmul.f32 1.442695, %v1152_v52  ;;  %v6868_v18 = vpop.f32.mrb[43].mxu1  ;;  %v1153_v47 = vmin.f32 %v6863_v50, 0.0  ;;  %vm1021_vm3 = vcmp.gt.f32.partialorder %v6810_v56, 0.0 }
 0x13c   :  { %v1767_v48 = vpack.c.bf16 %v1659_v22, %v1658_v30  ;;  %5454 = vpow2.f32 %v1328_v58  ;;  %9549 = vst [vmem:[#allocation12_spill] sm:$0xff] %v6868_v18  ;;  %v1330_v14 = vmul.f32 1.442695, %v1155_v23  ;;  %v1657_v11 = vsel %vm1017_vm14, %v6772_v59, %v4401_v13  ;;  %v6882_v20 = vld [vmem:[%s9533_s2] ss:$0 sm:$0xff] }
 0x13d   :  { %v5006_v55 = vpop.f32.mrb[48].mxu0  ;;  %5456 = vpow2.f32 %v1324_v53  ;;  %v1766_v30 = vpack.c.bf16 %v1657_v11, %v1656_v42  ;;  %v1326_v23 = vmul.f32 1.442695, %v1153_v47  ;;  %v6898_v47 = vpop.f32.mrb[44].mxu1  ;;  %vm1026_vm4 = vcmp.gt.f32.partialorder %v6837_v7, 0.0 }
 0x13e   :  { %v5445_v4 = vpop.eup %5444  ;;  %v6885_v58 = vadd.f32 %v6882_v20, %v5006_v55  ;;  %v661_v52 = vpop.f32.mrb[49].mxu0  ;;  %5458 = vpow2.f32 %v1330_v14  ;;  %v1178_v14 = vmin.f32 %v6765_v26, 0.0  ;;  %9550 = vst [vmem:[#allocation13_spill] sm:$0xff] %v6898_v47  ;;  %vm1024_vm5 = vcmp.gt.f32.partialorder %v6843_v60, 0.0 }
 0x13f   :  { %v5447_v15 = vpop.eup %5446  ;;  %v4406_v22 = vadd.f32 -1.0, %v5445_v4  ;;  %v5007_v61 = vpop.f32.mrb[50].mxu0  ;;  %v6891_v13 = vadd.f32 %v6882_v20, %v661_v52  ;;  %5460 = vpow2.f32 %v1326_v23  ;;  %5124 = vmatprep.mubr.msk.bf16.mxu1 %vm242_vm0, %v1766_v30  ;;  %v6902_v52 = vadd.f32 %v6882_v20, %v6443_v63 }
 0x140   :  { %v5449_v54 = vpop.eup %5448  ;;  %v1158_v59 = vmin.f32 %v6885_v58, 0.0  ;;  %v664_v53 = vpop.f32.mrb[51].mxu0  ;;  %v6894_v42 = vadd.f32 %v6882_v20, %v5007_v61  ;;  %v4404_v4 = vadd.f32 -1.0, %v5447_v15  ;;  %v1376_v47 = vmul.f32 1.442695, %v1178_v14 }
 0x141   :  { %v5451_v55 = vpop.eup %5450  ;;  %v4429_v18 = vadd.f32 -1.0, %v5449_v54  ;;  %v6904_v34 = vpop.f32.mrb[45].mxu1  ;;  %v1662_v61 = vsel %vm1022_vm15, %v6791_v32, %v4406_v22  ;;  %v1156_v15 = vmin.f32 %v6891_v13, 0.0  ;;  %v6938_v14 = vadd.f32 %v6882_v20, %v6452_v5 }
 0x142   :  { %v4407_v11 = vadd.f32 -1.0, %v5451_v55  ;;  %v1336_v24 = vmul.f32 1.442695, %v1158_v59  ;;  %9551 = vst [vmem:[#allocation14_spill] sm:$0xff] %v6904_v34  ;;  %v5453_v23 = vpop.eup %5452  ;;  %v1159_v54 = vmin.f32 %v6894_v42, 0.0  ;;  %v6916_v59 = vpop.f32.mrb[46].mxu1  ;;  %5125 = vmatmul.mubr.msk.bf16.gmra.mrb[100].mxu1 %vm242_vm0, %v1767_v48 }
 0x143   :  { %v6912_v30 = vsel %vm1045_vm12, %v6547_v41, %v4429_v18  ;;  %9552 = vst [vmem:[#allocation15_spill] sm:$0xff] %v6916_v59  ;;  %v4405_v55 = vadd.f32 -1.0, %v5453_v23  ;;  %v6924_v32 = vpop.f32.mrb[47].mxu1  ;;  %v1332_v18 = vmul.f32 1.442695, %v1156_v15  ;;  %v1660_v59 = vsel %vm1020_vm1, %v6797_v36, %v4404_v4 }
 0x144   :  { %v1663_v63 = vsel %vm1023_vm2, %v6804_v35, %v4407_v11  ;;  %5462 = vpow2.f32 %v1336_v24  ;;  %9553 = vst [vmem:[#allocation16_spill] sm:$0xff] %v6924_v32  ;;  %v1338_v22 = vmul.f32 1.442695, %v1159_v54  ;;  %v6933_v11 = vadd.f32 %v6882_v20, %v664_v53 }
 0x145   :  { %v1769_v41 = vpack.c.bf16 %v1663_v63, %v1662_v61  ;;  %v1661_v35 = vsel %vm1021_vm3, %v6810_v56, %v4405_v55  ;;  %v1176_v24 = vmin.f32 %v6902_v52, 0.0  ;;  %v5010_v48 = vpop.f32.mrb[52].mxu0  ;;  %5464 = vpow2.f32 %v1332_v18 }
 0x146   :  { %v5455_v25 = vpop.eup %5454  ;;  %v1768_v23 = vpack.c.bf16 %v1661_v35, %v1660_v59  ;;  %v677_v15 = vpop.f32.mrb[53].mxu0  ;;  %5466 = vpow2.f32 %v1338_v22  ;;  %v1157_v36 = vmin.f32 %v6933_v11, 0.0  ;;  %vm1027_vm6 = vcmp.gt.f32.partialorder %v6848_v1, 0.0 }
 0x147   :  { %v4410_v61 = vadd.f32 -1.0, %v5455_v25  ;;  %v5457_v54 = vpop.eup %5456  ;;  %v1372_v56 = vmul.f32 1.442695, %v1176_v24  ;;  %v5011_v53 = vpop.f32.mrb[54].mxu0  ;;  %5468 = vpow2.f32 %v1376_v47  ;;  %v1179_v18 = vmin.f32 %v6938_v14, 0.0 }
 0x148   :  { %v5459_v4 = vpop.eup %5458  ;;  %v4408_v63 = vadd.f32 -1.0, %v5457_v54  ;;  %5128 = vmatprep.mubr.msk.bf16.mxu1 %vm242_vm0, %v1768_v23  ;;  %v680_v5 = vpop.f32.mrb[55].mxu0  ;;  %v1334_v55 = vmul.f32 1.442695, %v1157_v36  ;;  %v6955_v47 = vadd.f32 %v6882_v20, %v6460_v10  ;;  %v6958_v23 = vadd.f32 %v6882_v20, %v5010_v48 }
 0x149   :  { %v6945_v25 = vpop.f32.mrb[48].mxu1  ;;  %v4411_v59 = vadd.f32 -1.0, %v5459_v4  ;;  %5470 = vpow2.f32 %v1372_v56  ;;  %v5461_v35 = vpop.eup %5460  ;;  %v1666_v24 = vsel %vm1026_vm4, %v6837_v7, %v4410_v61  ;;  %v6961_v54 = vadd.f32 %v6882_v20, %v677_v15 }
 0x14a   :  { %9554 = vst [vmem:[#allocation17_spill] sm:$0xff] %v6945_v25  ;;  %v6948_v22 = vpop.f32.mrb[49].mxu1  ;;  %v4409_v4 = vadd.f32 -1.0, %v5461_v35  ;;  %5472 = vpow2.f32 %v1334_v55  ;;  %v1378_v34 = vmul.f32 1.442695, %v1179_v18  ;;  %5129 = vmatmul.mubr.msk.bf16.gmra.mrb[104].mxu1 %vm242_vm0, %v1769_v41  ;;  %vm1025_vm7 = vcmp.gt.f32.partialorder %v6863_v50, 0.0 }
 0x14b   :  { %9555 = vst [vmem:[#allocation18_spill] sm:$0xff] %v6948_v22  ;;  %v6963_v36 = vpop.f32.mrb[50].mxu1  ;;  %v1667_v56 = vsel %vm1027_vm6, %v6848_v1, %v4411_v59  ;;  %vm1030_vm8 = vcmp.gt.f32.partialorder %v6885_v58, 0.0  ;;  %vm1050_vm9 = vcmp.gt.f32.partialorder %v6765_v26, 0.0  ;;  %v1177_v48 = vmin.f32 %v6955_v47, 0.0 }
 0x14c   :  { %9556 = vst [vmem:[#allocation19_spill] sm:$0xff] %v6963_v36  ;;  %v6969_v7 = vpop.f32.mrb[51].mxu1  ;;  %v1771_v10 = vpack.c.bf16 %v1667_v56, %v1666_v24  ;;  %v1664_v1 = vsel %vm1024_vm5, %v6843_v60, %v4408_v63  ;;  %v1665_v41 = vsel %vm1025_vm7, %v6863_v50, %v4409_v4  ;;  %5474 = vpow2.f32 %v1378_v34 }
 0x14d   :  { %9557 = vst [vmem:[#allocation20_spill] sm:$0xff] %v6969_v7  ;;  %v6975_v61 = vpop.f32.mrb[56].mxu0  ;;  %v1162_v59 = vmin.f32 %v6958_v23, 0.0  ;;  %v1770_v18 = vpack.c.bf16 %v1665_v41, %v1664_v1  ;;  %vm1028_vm10 = vcmp.gt.f32.partialorder %v6891_v13, 0.0  ;;  %v1374_v35 = vmul.f32 1.442695, %v1177_v48 }
 0x14e   :  { %v5463_v15 = vpop.eup %5462  ;;  %v6982_v55 = vpop.f32.mrb[57].mxu0  ;;  %v1160_v24 = vmin.f32 %v6961_v54, 0.0  ;;  %v5357_v7 = vld [vmem:[%s9534_s5 + $0x8] sm:$0xff]   ;;  %vm1031_vm11 = vcmp.gt.f32.partialorder %v6894_v42, 0.0  ;;  %v6993_v34 = vadd.f32 %v6882_v20, %v5011_v53  ;;  %v6997_v50 = vadd.f32 %v6882_v20, %v6482_v38 }
 0x14f   :  { %v6986_v56 = vpop.f32.mrb[58].mxu0  ;;  %v1344_v60 = vmul.f32 1.442695, %v1162_v59  ;;  %v5465_v4 = vpop.eup %5464  ;;  %v4414_v48 = vadd.f32 -1.0, %v5463_v15  ;;  %5476 = vpow2.f32 %v1374_v35  ;;  %v7002_v41 = vadd.f32 %v6882_v20, %v680_v5  ;;  %5132 = vmatprep.mubr.msk.bf16.mxu1 %vm242_vm0, %v1770_v18  ;;  %5218 = vmatprep.subr.bf16.mxu0 %v5357_v7 }
 0x150   :  { %v6999_v63 = vpop.f32.mrb[59].mxu0  ;;  %v1340_v1 = vmul.f32 1.442695, %v1160_v24  ;;  %v7005_v36 = vpop.f32.mrb[52].mxu1  ;;  %v4412_v59 = vadd.f32 -1.0, %v5465_v4  ;;  %vm1048_vm12 = vcmp.gt.f32.partialorder %v6902_v52, 0.0  ;;  %5219 = vmatpush3.bf16.msra.mxu0 %v5357_v7 }
 0x151   :  { %9558 = vst [vmem:[#allocation21_spill] sm:$0xff] %v7005_v36  ;;  %v5467_v53 = vpop.eup %5466  ;;  %5478 = vpow2.f32 %v1344_v60  ;;  %v1163_v38 = vmin.f32 %v6993_v34, 0.0  ;;  %v7009_v22 = vpop.f32.mrb[53].mxu1  ;;  %vm1029_vm13 = vcmp.gt.f32.partialorder %v6933_v11, 0.0  ;;  %vm1051_vm14 = vcmp.gt.f32.partialorder %v6938_v14, 0.0 }
 0x152   :  { %9559 = vst [vmem:[#allocation22_spill] sm:$0xff] %v7009_v22  ;;  %v5469_v15 = vpop.eup %5468  ;;  %v4415_v35 = vadd.f32 -1.0, %v5467_v53  ;;  %v1182_v5 = vmin.f32 %v6997_v50, 0.0  ;;  %v7014_v18 = vpop.f32.mrb[54].mxu1  ;;  %5480 = vpow2.f32 %v1340_v1  ;;  %v7018_v60 = vadd.f32 %v6882_v20, %v6487_v44  ;;  %5133 = vmatmul.mubr.msk.bf16.gmra.mrb[108].mxu1 %vm242_vm0, %v1771_v10 }
 0x153   :  { %9560 = vst [vmem:[#allocation23_spill] sm:$0xff] %v7014_v18  ;;  %v5471_v24 = vpop.eup %5470  ;;  %v4434_v4 = vadd.f32 -1.0, %v5469_v15  ;;  %v1346_v36 = vmul.f32 1.442695, %v1163_v38  ;;  %v7021_v7 = vpop.f32.mrb[55].mxu1  ;;  %v1670_v53 = vsel %vm1030_vm8, %v6885_v58, %v4414_v48  ;;  %v1161_v1 = vmin.f32 %v7002_v41, 0.0 }
 0x154   :  { %9561 = vst [vmem:[#allocation24_spill] sm:$0xff] %v7021_v7  ;;  %v1671_v18 = vsel %vm1031_vm11, %v6894_v42, %v4415_v35  ;;  %v1384_v22 = vmul.f32 1.442695, %v1182_v5  ;;  %v5473_v15 = vpop.eup %5472  ;;  %v1668_v44 = vsel %vm1028_vm10, %v6891_v13, %v4412_v59  ;;  %vm1049_vm15 = vcmp.gt.f32.partialorder %v6955_v47, 0.0 }
 0x155   :  { %v7030_v38 = vpop.f32.mrb[60].mxu0  ;;  %v1773_v10 = vpack.c.bf16 %v1671_v18, %v1670_v53  ;;  %5482 = vpow2.f32 %v1346_v36  ;;  %v4413_v58 = vadd.f32 -1.0, %v5473_v15  ;;  %v4432_v48 = vadd.f32 -1.0, %v5471_v24 }
 0x156   :  { %v7036_v7 = vpop.f32.mrb[61].mxu0  ;;  %5484 = vpow2.f32 %v1384_v22  ;;  %v1342_v42 = vmul.f32 1.442695, %v1161_v1  ;;  %v5475_v5 = vpop.eup %5474  ;;  %v7043_v25 = vsel %vm1050_vm9, %v6765_v26, %v4434_v4  ;;  %v1180_v13 = vmin.f32 %v7018_v60, 0.0 }
 0x157   :  { %v7038_v35 = vpop.f32.mrb[62].mxu0  ;;  %v7048_v59 = vadd.f32 %v6882_v20, %v6498_v49  ;;  %v7052_v36 = vadd.f32 %v6882_v20, %v6506_v27  ;;  %v1669_v18 = vsel %vm1029_vm13, %v6933_v11, %v4413_v58  ;;  %v4435_v24 = vadd.f32 -1.0, %v5475_v5  ;;  %v7063_v4 = vpop.f32.mrb[56].mxu1 }
 0x158   :  { %v7054_v22 = vpop.f32.mrb[63].mxu0  ;;  %5486 = vpow2.f32 %v1342_v42  ;;  %v7061_v26 = vadd.f32 %v6882_v20, %v6975_v61  ;;  %v1772_v49 = vpack.c.bf16 %v1669_v18, %v1668_v44  ;;  %v1380_v53 = vmul.f32 1.442695, %v1180_v13  ;;  %v7070_v15 = vpop.f32.mrb[57].mxu1 }
 0x159   :  { %v1183_v1 = vmin.f32 %v7048_v59, 0.0  ;;  %v7068_v27 = vadd.f32 %v6882_v20, %v6982_v55  ;;  %9562 = vst [vmem:[#allocation25_spill] sm:$0xff] %v7070_v15  ;;  %v5477_v32 = vpop.eup %5476  ;;  %v7075_v11 = vsel %vm1048_vm12, %v6902_v52, %v4432_v48  ;;  %v7080_v61 = vsel %vm1051_vm14, %v6938_v14, %v4435_v24  ;;  %v7084_v58 = vpop.f32.mrb[58].mxu1 }
 0x15a   :  { %vm1034_vm1 = vcmp.gt.f32.partialorder %v6958_v23, 0.0  ;;  %v1181_v44 = vmin.f32 %v7052_v36, 0.0  ;;  %9563 = vst [vmem:[#allocation26_spill] sm:$0xff] %v7084_v58  ;;  %v4433_v5 = vadd.f32 -1.0, %v5477_v32  ;;  %5488 = vpow2.f32 %v1380_v53  ;;  %5136 = vmatprep.mubr.msk.bf16.mxu1 %vm242_vm0, %v1772_v49  ;;  %v7089_v52 = vpop.f32.mrb[59].mxu1 }
 0x15b   :  { %v5479_v55 = vpop.eup %5478  ;;  %v1386_v13 = vmul.f32 1.442695, %v1183_v1  ;;  %9564 = vst [vmem:[#allocation27_spill] sm:$0xff] %v7089_v52  ;;  %vm1032_vm2 = vcmp.gt.f32.partialorder %v6961_v54, 0.0  ;;  %vm1035_vm3 = vcmp.gt.f32.partialorder %v6993_v34, 0.0  ;;  %v1166_v48 = vmin.f32 %v7061_v26, 0.0  ;;  %5137 = vmatmul.mubr.msk.bf16.gmra.mrb[112].mxu1 %vm242_vm0, %v1773_v10 }
 0x15c   :  { %v1382_v14 = vmul.f32 1.442695, %v1181_v44  ;;  %v5481_v18 = vpop.eup %5480  ;;  %v7098_v32 = vsel %vm1049_vm15, %v6955_v47, %v4433_v5  ;;  %vm1054_vm4 = vcmp.gt.f32.partialorder %v6997_v50, 0.0  ;;  %v1164_v24 = vmin.f32 %v7068_v27, 0.0 }
 0x15d   :  { %5490 = vpow2.f32 %v1386_v13  ;;  %v4418_v53 = vadd.f32 -1.0, %v5479_v55  ;;  %v1352_v1 = vmul.f32 1.442695, %v1166_v48  ;;  %vm1033_vm5 = vcmp.gt.f32.partialorder %v7002_v41, 0.0  ;;  %v7121_v48 = vpop.f32.mrb[60].mxu1 }
 0x15e   :  { %5492 = vpow2.f32 %v1382_v14  ;;  %v1348_v10 = vmul.f32 1.442695, %v1164_v24  ;;  %v7107_v42 = vadd.f32 %v6882_v20, %v6986_v56  ;;  %v7111_v47 = vadd.f32 %v6882_v20, %v6524_v16  ;;  %9565 = vst [vmem:[#allocation28_spill] sm:$0xff] %v7121_v48  ;;  %v7126_v56 = vpop.f32.mrb[61].mxu1 }
 0x15f   :  { %v5483_v44 = vpop.eup %5482  ;;  %v4416_v13 = vadd.f32 -1.0, %v5481_v18  ;;  %v7115_v55 = vadd.f32 %v6882_v20, %v6999_v63  ;;  %v7119_v14 = vadd.f32 %v6882_v20, %v6526_v19  ;;  %vm1052_vm6 = vcmp.gt.f32.partialorder %v7018_v60, 0.0  ;;  %9566 = vst [vmem:[#allocation29_spill] sm:$0xff] %v7126_v56 }
 0x160   :  { %v5485_v5 = vpop.eup %5484  ;;  %v4419_v52 = vadd.f32 -1.0, %v5483_v44  ;;  %vm1055_vm7 = vcmp.gt.f32.partialorder %v7048_v59, 0.0  ;;  %5494 = vpow2.f32 %v1352_v1  ;;  %v1167_v16 = vmin.f32 %v7107_v42, 0.0  ;;  %v7135_v44 = vpop.f32.mrb[62].mxu1 }
 0x161   :  { %v1674_v63 = vsel %vm1034_vm1, %v6958_v23, %v4418_v53  ;;  %5496 = vpow2.f32 %v1348_v10  ;;  %v1186_v24 = vmin.f32 %v7111_v47, 0.0  ;;  %v4438_v1 = vadd.f32 -1.0, %v5485_v5  ;;  %v7137_v15 = vpop.f32.mrb[63].mxu1 }
 0x162   :  { %v5487_v18 = vpop.eup %5486  ;;  %v1675_v19 = vsel %vm1035_vm3, %v6993_v34, %v4419_v52  ;;  %v1354_v58 = vmul.f32 1.442695, %v1167_v16  ;;  %v1672_v56 = vsel %vm1032_vm2, %v6961_v54, %v4416_v13  ;;  %v1165_v53 = vmin.f32 %v7115_v55, 0.0 }
 0x163   :  { %v1775_v49 = vpack.c.bf16 %v1675_v19, %v1674_v63  ;;  %v4417_v48 = vadd.f32 -1.0, %v5487_v18  ;;  %v1392_v23 = vmul.f32 1.442695, %v1186_v24  ;;  %v1184_v34 = vmin.f32 %v7119_v14, 0.0 }
 0x164   :  { %v5489_v52 = vpop.eup %5488  ;;  %5498 = vpow2.f32 %v1354_v58  ;;  %v7149_v5 = vadd.f32 %v6882_v20, %v6534_v28  ;;  %v7153_v16 = vadd.f32 %v6882_v20, %v6543_v33  ;;  %v1350_v18 = vmul.f32 1.442695, %v1165_v53 }
 0x165   :  { %v1673_v10 = vsel %vm1033_vm5, %v7002_v41, %v4417_v48  ;;  %v4436_v13 = vadd.f32 -1.0, %v5489_v52  ;;  %5500 = vpow2.f32 %v1392_v23  ;;  %v7158_v19 = vsel %vm1054_vm4, %v6997_v50, %v4438_v1 }
 0x166   :  { %v1774_v54 = vpack.c.bf16 %v1673_v10, %v1672_v56  ;;  %vm1053_vm8 = vcmp.gt.f32.partialorder %v7052_v36, 0.0  ;;  %v1388_v41 = vmul.f32 1.442695, %v1184_v34  ;;  %v1187_v28 = vmin.f32 %v7149_v5, 0.0 }
 0x167   :  { %v5491_v63 = vpop.eup %5490  ;;  %v7165_v33 = vsel %vm1052_vm6, %v7018_v60, %v4436_v13  ;;  %5502 = vpow2.f32 %v1350_v18  ;;  %v1185_v56 = vmin.f32 %v7153_v16, 0.0  ;;  %vm1038_vm9 = vcmp.gt.f32.partialorder %v7061_v26, 0.0 }
 0x168   :  { %v5493_v58 = vpop.eup %5492  ;;  %v4439_v48 = vadd.f32 -1.0, %v5491_v63  ;;  %5140 = vmatprep.mubr.msk.bf16.mxu1 %vm242_vm0, %v1774_v54  ;;  %5504 = vpow2.f32 %v1388_v41  ;;  %v1394_v50 = vmul.f32 1.442695, %v1187_v28  ;;  %v7172_v1 = vadd.f32 %v6882_v20, %v7030_v38 }
 0x169   :  { %v4437_v24 = vadd.f32 -1.0, %v5493_v58  ;;  %5141 = vmatmul.mubr.msk.bf16.gmra.mrb[116].mxu1 %vm242_vm0, %v1775_v49  ;;  %v1390_v23 = vmul.f32 1.442695, %v1185_v56  ;;  %v7182_v53 = vadd.f32 %v6882_v20, %v7036_v7  ;;  %v7186_v34 = vadd.f32 %v6882_v20, %v7038_v35 }
 0x16a   :  { %v7178_v60 = vsel %vm1055_vm7, %v7048_v59, %v4439_v48  ;;  %v5495_v52 = vpop.eup %5494  ;;  %vm1036_vm10 = vcmp.gt.f32.partialorder %v7068_v27, 0.0  ;;  %5506 = vpow2.f32 %v1394_v50  ;;  %vm1039_vm11 = vcmp.gt.f32.partialorder %v7107_v42, 0.0 }
 0x16b   :  { %v7193_v49 = vsel %vm1053_vm8, %v7052_v36, %v4437_v24  ;;  %v5497_v59 = vpop.eup %5496  ;;  %vm1058_vm12 = vcmp.gt.f32.partialorder %v7111_v47, 0.0  ;;  %5508 = vpow2.f32 %v1390_v23  ;;  %vm1037_vm13 = vcmp.gt.f32.partialorder %v7115_v55, 0.0 }
 0x16c   :  { %vm1056_vm14 = vcmp.gt.f32.partialorder %v7119_v14, 0.0  ;;  %v1170_v35 = vmin.f32 %v7172_v1, 0.0  ;;  %v1168_v36 = vmin.f32 %v7182_v53, 0.0  ;;  %v4422_v10 = vadd.f32 -1.0, %v5495_v52 }
 0x16d   :  { %vm1059_vm15 = vcmp.gt.f32.partialorder %v7149_v5, 0.0  ;;  %v1171_v54 = vmin.f32 %v7186_v34, 0.0  ;;  %v7208_v13 = vadd.f32 %v6882_v20, %v6566_v3  ;;  %v4420_v63 = vadd.f32 -1.0, %v5497_v59 }
 0x16e   :  { %v5499_v18 = vpop.eup %5498  ;;  %v1360_v41 = vmul.f32 1.442695, %v1170_v35  ;;  %v1356_v28 = vmul.f32 1.442695, %v1168_v36  ;;  %v7212_v58 = vadd.f32 %v6882_v20, %v7054_v22  ;;  %v7217_v23 = vadd.f32 %v6882_v20, %v6575_v2 }
 0x16f   :  { %v5501_v48 = vpop.eup %5500  ;;  %v4423_v56 = vadd.f32 -1.0, %v5499_v18  ;;  %v1362_v24 = vmul.f32 1.442695, %v1171_v54  ;;  %v1190_v50 = vmin.f32 %v7208_v13, 0.0  ;;  %vm1057_vm1 = vcmp.gt.f32.partialorder %v7153_v16, 0.0 }
 0x170   :  { %v4442_v52 = vadd.f32 -1.0, %v5501_v48  ;;  %5510 = vpow2.f32 %v1360_v41  ;;  %v1169_v3 = vmin.f32 %v7212_v58, 0.0  ;;  %v1678_v22 = vsel %vm1038_vm9, %v7061_v26, %v4422_v10 }
 0x171   :  { %v5503_v59 = vpop.eup %5502  ;;  %v1679_v35 = vsel %vm1039_vm11, %v7107_v42, %v4423_v56  ;;  %5512 = vpow2.f32 %v1356_v28  ;;  %v1400_v36 = vmul.f32 1.442695, %v1190_v50  ;;  %v1676_v2 = vsel %vm1036_vm10, %v7068_v27, %v4420_v63 }
 0x172   :  { %v5505_v54 = vpop.eup %5504  ;;  %v1777_v18 = vpack.c.bf16 %v1679_v35, %v1678_v22  ;;  %v4421_v41 = vadd.f32 -1.0, %v5503_v59  ;;  %5514 = vpow2.f32 %v1362_v24  ;;  %v1358_v38 = vmul.f32 1.442695, %v1169_v3 }
 0x173   :  { %v4440_v48 = vadd.f32 -1.0, %v5505_v54  ;;  %5516 = vpow2.f32 %v1400_v36  ;;  %v1188_v7 = vmin.f32 %v7217_v23, 0.0  ;;  %v7234_v42 = vsel %vm1058_vm12, %v7111_v47, %v4442_v52 }
 0x174   :  { %v5507_v26 = vpop.eup %5506  ;;  %v1677_v10 = vsel %vm1037_vm13, %v7115_v55, %v4421_v41  ;;  %v7241_v27 = vadd.f32 %v6882_v20, %v6582_v12  ;;  %v7245_v63 = vadd.f32 %v6882_v20, %v6585_v21  ;;  %5518 = vpow2.f32 %v1358_v38 }
 0x175   :  { %v5509_v28 = vpop.eup %5508  ;;  %v1776_v56 = vpack.c.bf16 %v1677_v10, %v1676_v2  ;;  %v4443_v24 = vadd.f32 -1.0, %v5507_v26  ;;  %v7249_v47 = vadd.f32 %v6882_v20, %v6610_v37  ;;  %v7254_v55 = vsel %vm1056_vm14, %v7119_v14, %v4440_v48 }
 0x176   :  { %v4441_v50 = vadd.f32 -1.0, %v5509_v28  ;;  %v1396_v12 = vmul.f32 1.442695, %v1188_v7  ;;  %v1191_v52 = vmin.f32 %v7241_v27, 0.0  ;;  %vm1042_vm2 = vcmp.gt.f32.partialorder %v7172_v1, 0.0 }
 0x177   :  { %v7260_v21 = vsel %vm1059_vm15, %v7149_v5, %v4443_v24  ;;  %v1189_v38 = vmin.f32 %v7245_v63, 0.0  ;;  %5144 = vmatprep.mubr.msk.bf16.mxu1 %vm242_vm0, %v1776_v56  ;;  %vm1040_vm3 = vcmp.gt.f32.partialorder %v7182_v53, 0.0  ;;  %v1194_v59 = vmin.f32 %v7249_v47, 0.0 }
 0x178   :  { %v1787_v37 = vpack.c.bf16 %v7260_v21, %v7234_v42  ;;  %v7270_v14 = vsel %vm1057_vm1, %v7153_v16, %v4441_v50  ;;  %5520 = vpow2.f32 %v1396_v12  ;;  %v1402_v7 = vmul.f32 1.442695, %v1191_v52  ;;  %5145 = vmatmul.mubr.msk.bf16.gmra.mrb[120].mxu1 %vm242_vm0, %v1777_v18 }
 0x179   :  { %v1786_v5 = vpack.c.bf16 %v7270_v14, %v7254_v55  ;;  %v1398_v3 = vmul.f32 1.442695, %v1189_v38  ;;  %v7279_v22 = vadd.f32 %v6882_v20, %v6625_v6  ;;  %vm1043_vm4 = vcmp.gt.f32.partialorder %v7186_v34, 0.0  ;;  %v9583_v14 = vld [vmem:[#allocation12_spill] sm:$0xff] }
 0x17a   :  { %v5511_v35 = vpop.eup %5510  ;;  %5522 = vpow2.f32 %v1402_v7  ;;  %v7284_v16 = vadd.f32 %v6882_v20, %v6631_v8  ;;  %v7288_v36 = vadd.f32 %v6882_v20, %v6640_v31  ;;  %v1408_v18 = vmul.f32 1.442695, %v1194_v59 }
 0x17b   :  { %v5513_v54 = vpop.eup %5512  ;;  %v4426_v2 = vadd.f32 -1.0, %v5511_v35  ;;  %5524 = vpow2.f32 %v1398_v3  ;;  %v7292_v6 = vadd.f32 %v6882_v20, %v6668_v57  ;;  %vm1062_vm5 = vcmp.gt.f32.partialorder %v7208_v13, 0.0 }
 0x17c   :  { %v5515_v41 = vpop.eup %5514  ;;  %vm1041_vm6 = vcmp.gt.f32.partialorder %v7212_v58, 0.0  ;;  %v1192_v8 = vmin.f32 %v7279_v22, 0.0  ;;  %v1195_v48 = vmin.f32 %v7284_v16, 0.0  ;;  %vm1060_vm7 = vcmp.gt.f32.partialorder %v7217_v23, 0.0 }
 0x17d   :  { %v5517_v26 = vpop.eup %5516  ;;  %v4427_v31 = vadd.f32 -1.0, %v5515_v41  ;;  %vm1063_vm8 = vcmp.gt.f32.partialorder %v7241_v27, 0.0  ;;  %5526 = vpow2.f32 %v1408_v18  ;;  %v4424_v10 = vadd.f32 -1.0, %v5513_v54 }
 0x17e   :  { %vm1061_vm9 = vcmp.gt.f32.partialorder %v7245_v63, 0.0  ;;  %v1404_v57 = vmul.f32 1.442695, %v1192_v8  ;;  %v1410_v28 = vmul.f32 1.442695, %v1195_v48  ;;  %v5519_v56 = vpop.eup %5518  ;;  %v1682_v24 = vsel %vm1042_vm2, %v7172_v1, %v4426_v2 }
 0x17f   :  { %v1683_v50 = vsel %vm1043_vm4, %v7186_v34, %v4427_v31  ;;  %v1193_v12 = vmin.f32 %v7288_v36, 0.0  ;;  %v1198_v52 = vmin.f32 %v7292_v6, 0.0  ;;  %v4446_v7 = vadd.f32 -1.0, %v5517_v26 }
 0x180   :  { %v1779_v38 = vpack.c.bf16 %v1683_v50, %v1682_v24  ;;  %v4425_v3 = vadd.f32 -1.0, %v5519_v56  ;;  %5528 = vpow2.f32 %v1404_v57  ;;  %v7311_v54 = vadd.f32 %v6882_v20, %v6674_v29 }
 0x181   :  { %5530 = vpow2.f32 %v1410_v28  ;;  %v1406_v59 = vmul.f32 1.442695, %v1193_v12  ;;  %v1416_v35 = vmul.f32 1.442695, %v1198_v52  ;;  %v1680_v34 = vsel %vm1040_vm3, %v7182_v53, %v4424_v10 }
 0x182   :  { %v5521_v1 = vpop.eup %5520  ;;  %v1681_v2 = vsel %vm1041_vm6, %v7212_v58, %v4425_v3  ;;  %v7321_v18 = vadd.f32 %v6882_v20, %v6684_v40  ;;  %v7325_v41 = vadd.f32 %v6882_v20, %v6687_v46  ;;  %v7329_v48 = vadd.f32 %v6882_v20, %v6723_v17 }
 0x183   :  { %v1778_v8 = vpack.c.bf16 %v1681_v2, %v1680_v34  ;;  %v4444_v29 = vadd.f32 -1.0, %v5521_v1  ;;  %5532 = vpow2.f32 %v1406_v59  ;;  %vm1066_vm10 = vcmp.gt.f32.partialorder %v7249_v47, 0.0 }
 0x184   :  { %v5523_v53 = vpop.eup %5522  ;;  %5534 = vpow2.f32 %v1416_v35  ;;  %v1196_v58 = vmin.f32 %v7311_v54, 0.0  ;;  %v1199_v40 = vmin.f32 %v7321_v18, 0.0  ;;  %v7337_v46 = vsel %vm1062_vm5, %v7208_v13, %v4446_v7 }
 0x185   :  { %v5525_v26 = vpop.eup %5524  ;;  %v4447_v31 = vadd.f32 -1.0, %v5523_v53  ;;  %vm1064_vm11 = vcmp.gt.f32.partialorder %v7279_v22, 0.0  ;;  %v1197_v17 = vmin.f32 %v7325_v41, 0.0  ;;  %5148 = vmatprep.mubr.msk.bf16.mxu1 %vm242_vm0, %v1778_v8  ;;  %v7345_v10 = vsel %vm1060_vm7, %v7217_v23, %v4444_v29 }
 0x186   :  { %v4445_v57 = vadd.f32 -1.0, %v5525_v26  ;;  %v1412_v28 = vmul.f32 1.442695, %v1196_v58  ;;  %v1418_v56 = vmul.f32 1.442695, %v1199_v40  ;;  %5149 = vmatmul.mubr.msk.bf16.gmra.mrb[124].mxu1 %vm242_vm0, %v1779_v38  ;;  %v1202_v12 = vmin.f32 %v7329_v48, 0.0 }
 0x187   :  { %v5527_v24 = vpop.eup %5526  ;;  %v7351_v13 = vsel %vm1063_vm8, %v7241_v27, %v4447_v31  ;;  %v1414_v50 = vmul.f32 1.442695, %v1197_v17  ;;  %v7356_v52 = vadd.f32 %v6882_v20, %v6727_v51  ;;  %v9567_v23 = vpack.c.bf16 %v6912_v30, %v6721_v45 }
 0x188   :  { %v1789_v38 = vpack.c.bf16 %v7351_v13, %v7337_v46  ;;  %v7367_v27 = vsel %vm1061_vm9, %v7245_v63, %v4445_v57  ;;  %v4450_v7 = vadd.f32 -1.0, %v5527_v24  ;;  %5536 = vpow2.f32 %v1412_v28  ;;  %v9571_v24 = vld [vmem:[#allocation3_spill] sm:$0xff] }
 0x189   :  { %5152 = vmatprep.mubr.msk.bf16.mxu1 %vm242_vm0, %v9567_v23  ;;  %v1788_v3 = vpack.c.bf16 %v7367_v27, %v7345_v10  ;;  %vm1067_vm12 = vcmp.gt.f32.partialorder %v7284_v16, 0.0  ;;  %5538 = vpow2.f32 %v1418_v56  ;;  %v1424_v51 = vmul.f32 1.442695, %v1202_v12 }
 0x18a   :  { %v5529_v45 = vpop.eup %5528  ;;  %vm1065_vm13 = vcmp.gt.f32.partialorder %v7288_v36, 0.0  ;;  %5540 = vpow2.f32 %v1414_v50  ;;  %v1200_v30 = vmin.f32 %v7356_v52, 0.0  ;;  %v7376_v59 = vadd.f32 %v6882_v20, %v6731_v62 }
 0x18b   :  { %v5531_v63 = vpop.eup %5530  ;;  %v4448_v35 = vadd.f32 -1.0, %v5529_v45  ;;  %5542 = vpow2.f32 %v1424_v51  ;;  %v7380_v1 = vadd.f32 %v6882_v20, %v6739_v39  ;;  %v7384_v34 = vadd.f32 %v6882_v20, %v6760_v9 }
 0x18c   :  { %v7389_v2 = vsel %vm1066_vm10, %v7249_v47, %v4450_v7  ;;  %v4451_v8 = vadd.f32 -1.0, %v5531_v63  ;;  %v1420_v29 = vmul.f32 1.442695, %v1200_v30  ;;  %v1203_v62 = vmin.f32 %v7376_v59, 0.0  ;;  %v9572_v30 = vld [vmem:[#allocation4_spill] sm:$0xff] }
 0x18d   :  { %v5533_v53 = vpop.eup %5532  ;;  %v7395_v58 = vsel %vm1064_vm11, %v7279_v22, %v4448_v35  ;;  %vm1070_vm14 = vcmp.gt.f32.partialorder %v7292_v6, 0.0  ;;  %vm1068_vm15 = vcmp.gt.f32.partialorder %v7311_v54, 0.0  ;;  %v1201_v39 = vmin.f32 %v7380_v1, 0.0 }
 0x18e   :  { %v5535_v9 = vpop.eup %5534  ;;  %v7403_v47 = vsel %vm1067_vm12, %v7284_v16, %v4451_v8  ;;  %v4449_v40 = vadd.f32 -1.0, %v5533_v53  ;;  %5544 = vpow2.f32 %v1420_v29  ;;  %v1426_v26 = vmul.f32 1.442695, %v1203_v62  ;;  %v9573_v53 = vld [vmem:[#allocation5_spill] sm:$0xff] }
 0x18f   :  { %v9568_v31 = vpack.c.bf16 %v6648_v43, %v6623_v0  ;;  %v1791_v22 = vpack.c.bf16 %v7403_v47, %v7389_v2  ;;  %v4454_v17 = vadd.f32 -1.0, %v5535_v9  ;;  %v1422_v57 = vmul.f32 1.442695, %v1201_v39  ;;  %v9570_v0 = vld [vmem:[#allocation2_spill] sm:$0xff] }
 0x190   :  { %v1206_v28 = vmin.f32 %v7384_v34, 0.0  ;;  %v9569_v56 = vpack.c.bf16 %v7098_v32, %v7075_v11  ;;  %v7419_v16 = vsel %vm1065_vm13, %v7288_v36, %v4449_v40  ;;  %5546 = vpow2.f32 %v1426_v26 }
 0x191   :  { %5153 = vmatmul.mubr.msk.bf16.gmra.mrb[128].mxu1 %vm242_vm0, %v9568_v31  ;;  %v7423_v43 = vadd.f32 %v6882_v20, %v9570_v0  ;;  %v7427_v50 = vadd.f32 %v6882_v20, %v9571_v24  ;;  %v1790_v12 = vpack.c.bf16 %v7419_v16, %v7395_v58  ;;  %vm1071_vm1 = vcmp.gt.f32.partialorder %v7321_v18, 0.0  ;;  %v9574_v31 = vld [vmem:[#allocation6_spill] sm:$0xff] }
 0x192   :  { %5156 = vmatprep.mubr.msk.bf16.mxu1 %vm242_vm0, %v9569_v56  ;;  %5548 = vpow2.f32 %v1422_v57  ;;  %v1432_v11 = vmul.f32 1.442695, %v1206_v28  ;;  %v5537_v32 = vpop.eup %5536  ;;  %vm1069_vm2 = vcmp.gt.f32.partialorder %v7325_v41, 0.0  ;;  %vm1074_vm3 = vcmp.gt.f32.partialorder %v7329_v48, 0.0 }
 0x193   :  { %v1204_v36 = vmin.f32 %v7423_v43, 0.0  ;;  %v1207_v23 = vmin.f32 %v7427_v50, 0.0  ;;  %v5539_v7 = vpop.eup %5538  ;;  %v7439_v51 = vsel %vm1070_vm14, %v7292_v6, %v4454_v17  ;;  %v4452_v45 = vadd.f32 -1.0, %v5537_v32 }
 0x194   :  { %5550 = vpow2.f32 %v1432_v11  ;;  %v7443_v63 = vadd.f32 %v6882_v20, %v9572_v30  ;;  %v5541_v35 = vpop.eup %5540  ;;  %v4455_v8 = vadd.f32 -1.0, %v5539_v7  ;;  %v7447_v39 = vadd.f32 %v6882_v20, %v9573_v53 }
 0x195   :  { %v1428_v29 = vmul.f32 1.442695, %v1204_v36  ;;  %v1434_v62 = vmul.f32 1.442695, %v1207_v23  ;;  %v5543_v9 = vpop.eup %5542  ;;  %v7452_v6 = vsel %vm1068_vm15, %v7311_v54, %v4452_v45  ;;  %v4453_v40 = vadd.f32 -1.0, %v5541_v35  ;;  %v9577_v36 = vld [vmem:[#allocation7_spill] sm:$0xff] }
 0x196   :  { %v1205_v26 = vmin.f32 %v7443_v63, 0.0  ;;  %v7457_v17 = vadd.f32 %v6882_v20, %v9574_v31  ;;  %v7462_v57 = vsel %vm1071_vm1, %v7321_v18, %v4455_v8  ;;  %v4458_v28 = vadd.f32 -1.0, %v5543_v9  ;;  %v9578_v45 = vld [vmem:[#allocation8_spill] sm:$0xff]  ;;  %v9580_v9 = vld [vmem:[#allocation10_spill] sm:$0xff] }
 0x197   :  { %vm1072_vm4 = vcmp.gt.f32.partialorder %v7356_v52, 0.0  ;;  %5552 = vpow2.f32 %v1428_v29  ;;  %v9575_v54 = vpack.c.bf16 %v7080_v61, %v7043_v25  ;;  %v1793_v56 = vpack.c.bf16 %v7462_v57, %v7439_v51  ;;  %v9599_v51 = vld [vmem:[#allocation28_spill] sm:$0xff] }
 0x198   :  { %v7474_v0 = vsel %vm1069_vm2, %v7325_v41, %v4453_v40  ;;  %5554 = vpow2.f32 %v1434_v62  ;;  %v1430_v18 = vmul.f32 1.442695, %v1205_v26  ;;  %v9576_v24 = vpack.c.bf16 %v7193_v49, %v7165_v33  ;;  %v5545_v11 = vpop.eup %5544  ;;  %v9579_v62 = vld [vmem:[#allocation9_spill] sm:$0xff] }
 0x199   :  { %5157 = vmatmul.mubr.msk.bf16.gmra.mrb[132].mxu1 %vm242_vm0, %v9575_v54  ;;  %v1792_v25 = vpack.c.bf16 %v7474_v0, %v7452_v6  ;;  %vm1075_vm5 = vcmp.gt.f32.partialorder %v7376_v59, 0.0  ;;  %vm1073_vm6 = vcmp.gt.f32.partialorder %v7380_v1, 0.0  ;;  %v1210_v61 = vmin.f32 %v7447_v39, 0.0 }
 0x19a   :  { %5160 = vmatprep.mubr.msk.bf16.mxu1 %vm242_vm0, %v9576_v24  ;;  %v4456_v32 = vadd.f32 -1.0, %v5545_v11  ;;  %5556 = vpow2.f32 %v1430_v18  ;;  %v1208_v41 = vmin.f32 %v7457_v17, 0.0  ;;  %v7488_v23 = vadd.f32 %v6882_v20, %v9577_v36  ;;  %v5547_v33 = vpop.eup %5546  ;;  %v9582_v36 = vld [vmem:[#allocation11_spill] sm:$0xff] }
 0x19b   :  { %v7493_v49 = vsel %vm1074_vm3, %v7329_v48, %v4458_v28  ;;  %vm1078_vm7 = vcmp.gt.f32.partialorder %v7384_v34, 0.0  ;;  %v1440_v7 = vmul.f32 1.442695, %v1210_v61  ;;  %v7498_v30 = vadd.f32 %v6882_v20, %v9578_v45 }
 0x19c   :  { %v5549_v35 = vpop.eup %5548  ;;  %v4459_v8 = vadd.f32 -1.0, %v5547_v33  ;;  %v1436_v29 = vmul.f32 1.442695, %v1208_v41  ;;  %v7502_v53 = vadd.f32 %v6882_v20, %v9579_v62  ;;  %v7506_v40 = vadd.f32 %v6882_v20, %v9580_v9 }
 0x19d   :  { %v7511_v48 = vsel %vm1072_vm4, %v7356_v52, %v4456_v32  ;;  %v4457_v26 = vadd.f32 -1.0, %v5549_v35  ;;  %5558 = vpow2.f32 %v1440_v7  ;;  %v1211_v31 = vmin.f32 %v7488_v23, 0.0 }
 0x19e   :  { %v5551_v28 = vpop.eup %5550  ;;  %v7517_v54 = vsel %vm1075_vm5, %v7376_v59, %v4459_v8  ;;  %vm1076_vm8 = vcmp.gt.f32.partialorder %v7423_v43, 0.0  ;;  %5560 = vpow2.f32 %v1436_v29  ;;  %v1209_v20 = vmin.f32 %v7498_v30, 0.0 }
 0x19f   :  { %v1795_v18 = vpack.c.bf16 %v7517_v54, %v7493_v49  ;;  %v7526_v52 = vsel %vm1073_vm6, %v7380_v1, %v4457_v26  ;;  %v4462_v24 = vadd.f32 -1.0, %v5551_v28  ;;  %v1442_v11 = vmul.f32 1.442695, %v1211_v31  ;;  %v7841_v54 = vld [vmem:[%s9535_s4] ss:$0 sm:$0xff] }
 0x1a0   :  { %v9581_v61 = vpack.c.bf16 %v7178_v60, %v7158_v19  ;;  %v1794_v59 = vpack.c.bf16 %v7526_v52, %v7511_v48  ;;  %vm1079_vm9 = vcmp.gt.f32.partialorder %v7427_v50, 0.0  ;;  %v1438_v32 = vmul.f32 1.442695, %v1209_v20  ;;  %v7545_v60 = vld [vmem:[%s9533_s2] ss:$0 sm:$0xff] }
 0x1a1   :  { %v1214_v41 = vmin.f32 %v7502_v53, 0.0  ;;  %v5553_v1 = vpop.eup %5552  ;;  %vm1077_vm10 = vcmp.gt.f32.partialorder %v7443_v63, 0.0  ;;  %5562 = vpow2.f32 %v1442_v11  ;;  %v1212_v19 = vmin.f32 %v7506_v40, 0.0 }
 0x1a2   :  { %5161 = vmatmul.mubr.msk.bf16.gmra.mrb[136].mxu1 %vm242_vm0, %v9581_v61  ;;  %v7549_v33 = vadd.f32 %v7545_v60, %v9582_v36  ;;  %v5555_v7 = vpop.eup %5554  ;;  %v4460_v45 = vadd.f32 -1.0, %v5553_v1  ;;  %5564 = vpow2.f32 %v1438_v32  ;;  %v7558_v35 = vsel %vm1078_vm7, %v7384_v34, %v4462_v24  ;;  %v9584_v61 = vld [vmem:[#allocation13_spill] sm:$0xff]  ;;  %v9585_v32 = vld [vmem:[#allocation14_spill] sm:$0xff] }
 0x1a3   :  { %5164 = vmatprep.mubr.msk.bf16.mxu1 %vm242_vm0, %v1786_v5  ;;  %v1448_v55 = vmul.f32 1.442695, %v1214_v41  ;;  %v7553_v5 = vadd.f32 %v7545_v60, %v9583_v14  ;;  %v4463_v8 = vadd.f32 -1.0, %v5555_v7  ;;  %v1444_v29 = vmul.f32 1.442695, %v1212_v19  ;;  %v9586_v19 = vld [vmem:[#allocation15_spill] sm:$0xff] }
 0x1a4   :  { %v1215_v62 = vmin.f32 %v7549_v33, 0.0  ;;  %v5557_v9 = vpop.eup %5556  ;;  %v7564_v26 = vsel %vm1076_vm8, %v7423_v43, %v4460_v45  ;;  %vm1082_vm11 = vcmp.gt.f32.partialorder %v7447_v39, 0.0  ;;  %v7577_v43 = vadd.f32 %v7545_v60, %v9584_v61  ;;  %v9587_v7 = vld [vmem:[#allocation16_spill] sm:$0xff] }
 0x1a5   :  { %5566 = vpow2.f32 %v1448_v55  ;;  %v1213_v31 = vmin.f32 %v7553_v5, 0.0  ;;  %v7571_v34 = vsel %vm1079_vm9, %v7427_v50, %v4463_v8  ;;  %v4461_v28 = vadd.f32 -1.0, %v5557_v9 }
 0x1a6   :  { %5568 = vpow2.f32 %v1444_v29  ;;  %v1450_v20 = vmul.f32 1.442695, %v1215_v62  ;;  %v1797_v24 = vpack.c.bf16 %v7571_v34, %v7558_v35  ;;  %v7581_v41 = vadd.f32 %v7545_v60, %v9585_v32 }
 0x1a7   :  { %v1446_v11 = vmul.f32 1.442695, %v1213_v31  ;;  %v5559_v1 = vpop.eup %5558  ;;  %v7586_v50 = vsel %vm1077_vm10, %v7443_v63, %v4461_v28  ;;  %v7594_v36 = vadd.f32 %v7545_v60, %v9586_v19  ;;  %v7598_v45 = vadd.f32 %v7545_v60, %v9587_v7 }
 0x1a8   :  { %5570 = vpow2.f32 %v1450_v20  ;;  %v5561_v55 = vpop.eup %5560  ;;  %v1796_v14 = vpack.c.bf16 %v7586_v50, %v7564_v26  ;;  %v4466_v63 = vadd.f32 -1.0, %v5559_v1  ;;  %vm1080_vm12 = vcmp.gt.f32.partialorder %v7457_v17, 0.0  ;;  %v9589_v1 = vld [vmem:[#allocation18_spill] sm:$0xff] }
 0x1a9   :  { %5572 = vpow2.f32 %v1446_v11  ;;  %v4464_v42 = vadd.f32 -1.0, %v5561_v55  ;;  %vm1083_vm13 = vcmp.gt.f32.partialorder %v7488_v23, 0.0  ;;  %v1218_v21 = vmin.f32 %v7577_v43, 0.0  ;;  %v9588_v11 = vld [vmem:[#allocation17_spill] sm:$0xff] }
 0x1aa   :  { %5165 = vmatmul.mubr.msk.bf16.gmra.mrb[140].mxu1 %vm242_vm0, %v1787_v37  ;;  %v1216_v37 = vmin.f32 %v7581_v41, 0.0  ;;  %vm1081_vm14 = vcmp.gt.f32.partialorder %v7498_v30, 0.0  ;;  %vm1086_vm15 = vcmp.gt.f32.partialorder %v7502_v53, 0.0  ;;  %vm1084_vm1 = vcmp.gt.f32.partialorder %v7506_v40, 0.0 }
 0x1ab   :  { %5168 = vmatprep.mubr.msk.bf16.mxu1 %vm242_vm0, %v1788_v3  ;;  %v1219_v8 = vmin.f32 %v7594_v36, 0.0  ;;  %v5563_v29 = vpop.eup %5562  ;;  %v7617_v10 = vsel %vm1082_vm11, %v7447_v39, %v4466_v63  ;;  %v1456_v27 = vmul.f32 1.442695, %v1218_v21  ;;  %v1217_v62 = vmin.f32 %v7598_v45, 0.0  ;;  %v9590_v63 = vld [vmem:[#allocation19_spill] sm:$0xff] }
 0x1ac   :  { %v1452_v3 = vmul.f32 1.442695, %v1216_v37  ;;  %v5565_v9 = vpop.eup %5564  ;;  %v7623_v31 = vsel %vm1080_vm12, %v7457_v17, %v4464_v42  ;;  %v4467_v28 = vadd.f32 -1.0, %v5563_v29  ;;  %v7627_v61 = vadd.f32 %v7545_v60, %v9588_v11 }
 0x1ad   :  { %v1458_v20 = vmul.f32 1.442695, %v1219_v8  ;;  %v4465_v32 = vadd.f32 -1.0, %v5565_v9  ;;  %5574 = vpow2.f32 %v1456_v27  ;;  %v1454_v39 = vmul.f32 1.442695, %v1217_v62 }
 0x1ae   :  { %v7631_v19 = vadd.f32 %v7545_v60, %v9589_v1  ;;  %v7636_v55 = vsel %vm1083_vm13, %v7488_v23, %v4467_v28  ;;  %5576 = vpow2.f32 %v1452_v3  ;;  %v1222_v17 = vmin.f32 %v7627_v61, 0.0 }
 0x1af   :  { %v5567_v7 = vpop.eup %5566  ;;  %v7641_v42 = vadd.f32 %v7545_v60, %v9590_v63  ;;  %v1799_v37 = vpack.c.bf16 %v7636_v55, %v7617_v10  ;;  %v7648_v8 = vsel %vm1081_vm14, %v7498_v30, %v4465_v32  ;;  %5578 = vpow2.f32 %v1458_v20  ;;  %v9592_v20 = vld [vmem:[#allocation21_spill] sm:$0xff] }
 0x1b0   :  { %v5569_v21 = vpop.eup %5568  ;;  %v4470_v29 = vadd.f32 -1.0, %v5567_v7  ;;  %v1798_v23 = vpack.c.bf16 %v7648_v8, %v7623_v31  ;;  %5580 = vpow2.f32 %v1454_v39  ;;  %v1464_v3 = vmul.f32 1.442695, %v1222_v17  ;;  %v9594_v7 = vld [vmem:[#allocation23_spill] sm:$0xff] }
 0x1b1   :  { %v4468_v27 = vadd.f32 -1.0, %v5569_v21  ;;  %vm1087_vm2 = vcmp.gt.f32.partialorder %v7549_v33, 0.0  ;;  %vm1085_vm3 = vcmp.gt.f32.partialorder %v7553_v5, 0.0  ;;  %v1220_v46 = vmin.f32 %v7631_v19, 0.0 }
 0x1b2   :  { %5169 = vmatmul.mubr.msk.bf16.gmra.mrb[144].mxu1 %vm242_vm0, %v1789_v38  ;;  %v5571_v30 = vpop.eup %5570  ;;  %v7663_v62 = vsel %vm1086_vm15, %v7502_v53, %v4470_v29  ;;  %5582 = vpow2.f32 %v1464_v3  ;;  %v1223_v16 = vmin.f32 %v7641_v42, 0.0  ;;  %v9591_v53 = vld [vmem:[#allocation20_spill] sm:$0xff]  ;;  %v7680_v11 = vadd.f32 %v7545_v60, %v9592_v20 }
 0x1b3   :  { %5172 = vmatprep.mubr.msk.bf16.mxu1 %vm242_vm0, %v1790_v12  ;;  %v5573_v13 = vpop.eup %5572  ;;  %v7671_v38 = vsel %vm1084_vm1, %v7506_v40, %v4468_v27  ;;  %v4471_v58 = vadd.f32 -1.0, %v5571_v30  ;;  %v1460_v9 = vmul.f32 1.442695, %v1220_v46  ;;  %v7676_v28 = vadd.f32 %v7545_v60, %v9591_v53  ;;  %v9593_v40 = vld [vmem:[#allocation22_spill] sm:$0xff] }
 0x1b4   :  { %v4469_v12 = vadd.f32 -1.0, %v5573_v13  ;;  %v1466_v39 = vmul.f32 1.442695, %v1223_v16  ;;  %v7687_v1 = vadd.f32 %v7545_v60, %v9593_v40  ;;  %v7691_v17 = vadd.f32 %v7545_v60, %v9594_v7  ;;  %v9595_v16 = vld [vmem:[#allocation24_spill] sm:$0xff] }
 0x1b5   :  { %v7683_v32 = vsel %vm1087_vm2, %v7549_v33, %v4471_v58  ;;  %vm1090_vm4 = vcmp.gt.f32.partialorder %v7577_v43, 0.0  ;;  %5584 = vpow2.f32 %v1460_v9  ;;  %vm1088_vm5 = vcmp.gt.f32.partialorder %v7581_v41, 0.0 }
 0x1b6   :  { %v1801_v63 = vpack.c.bf16 %v7683_v32, %v7663_v62  ;;  %v7698_v21 = vsel %vm1085_vm3, %v7553_v5, %v4469_v12  ;;  %5586 = vpow2.f32 %v1466_v39  ;;  %v1221_v29 = vmin.f32 %v7676_v28, 0.0 }
 0x1b7   :  { %v1800_v33 = vpack.c.bf16 %v7698_v21, %v7671_v38  ;;  %v5575_v27 = vpop.eup %5574  ;;  %vm1091_vm6 = vcmp.gt.f32.partialorder %v7594_v36, 0.0  ;;  %vm1089_vm7 = vcmp.gt.f32.partialorder %v7598_v45, 0.0  ;;  %v1226_v3 = vmin.f32 %v7680_v11, 0.0 }
 0x1b8   :  { %v1224_v5 = vmin.f32 %v7687_v1, 0.0  ;;  %v5577_v30 = vpop.eup %5576  ;;  %v4474_v46 = vadd.f32 -1.0, %v5575_v27  ;;  %v1462_v13 = vmul.f32 1.442695, %v1221_v29  ;;  %v1227_v58 = vmin.f32 %v7691_v17, 0.0 }
 0x1b9   :  { %v7720_v12 = vadd.f32 %v7545_v60, %v9595_v16  ;;  %v5579_v9 = vpop.eup %5578  ;;  %v4472_v53 = vadd.f32 -1.0, %v5577_v30  ;;  %v1472_v20 = vmul.f32 1.442695, %v1226_v3  ;;  %v7724_v47 = vadd.f32 %v7545_v60, %v7063_v4  ;;  %v9596_v30 = vld [vmem:[#allocation25_spill] sm:$0xff]  ;;  %v9598_v16 = vld [vmem:[#allocation27_spill] sm:$0xff] }
 0x1ba   :  { %5173 = vmatmul.mubr.msk.bf16.gmra.mrb[148].mxu1 %vm242_vm0, %v1791_v22  ;;  %v1468_v2 = vmul.f32 1.442695, %v1224_v5  ;;  %v5581_v22 = vpop.eup %5580  ;;  %v7729_v39 = vsel %vm1090_vm4, %v7577_v43, %v4474_v46  ;;  %v4475_v6 = vadd.f32 -1.0, %v5579_v9  ;;  %5588 = vpow2.f32 %v1462_v13 }
 0x1bb   :  { %5176 = vmatprep.mubr.msk.bf16.mxu1 %vm242_vm0, %v1792_v25  ;;  %v1474_v0 = vmul.f32 1.442695, %v1227_v58  ;;  %v7734_v25 = vsel %vm1088_vm5, %v7581_v41, %v4472_v53  ;;  %v4473_v40 = vadd.f32 -1.0, %v5581_v22  ;;  %vm1094_vm8 = vcmp.gt.f32.partialorder %v7627_v61, 0.0 }
 0x1bc   :  { %5590 = vpow2.f32 %v1472_v20  ;;  %v5583_v4 = vpop.eup %5582  ;;  %v7740_v7 = vsel %vm1091_vm6, %v7594_v36, %v4475_v6  ;;  %vm1092_vm9 = vcmp.gt.f32.partialorder %v7631_v19, 0.0  ;;  %v1225_v43 = vmin.f32 %v7720_v12, 0.0 }
 0x1bd   :  { %5592 = vpow2.f32 %v1468_v2  ;;  %v1803_v29 = vpack.c.bf16 %v7740_v7, %v7729_v39  ;;  %v7749_v41 = vsel %vm1089_vm7, %v7598_v45, %v4473_v40  ;;  %v4478_v27 = vadd.f32 -1.0, %v5583_v4  ;;  %v9597_v45 = vld [vmem:[#allocation26_spill] sm:$0xff] }
 0x1be   :  { %5594 = vpow2.f32 %v1474_v0  ;;  %v1802_v3 = vpack.c.bf16 %v7749_v41, %v7734_v25  ;;  %v1470_v36 = vmul.f32 1.442695, %v1225_v43  ;;  %v1230_v5 = vmin.f32 %v7724_v47, 0.0 }
 0x1bf   :  { %v7756_v46 = vadd.f32 %v7545_v60, %v9596_v30  ;;  %v5585_v13 = vpop.eup %5584  ;;  %vm1095_vm10 = vcmp.gt.f32.partialorder %v7641_v42, 0.0  ;;  %vm1093_vm11 = vcmp.gt.f32.partialorder %v7676_v28, 0.0  ;;  %v7766_v58 = vadd.f32 %v7545_v60, %v9597_v45 }
 0x1c0   :  { %v7770_v9 = vadd.f32 %v7545_v60, %v9598_v16  ;;  %v5587_v53 = vpop.eup %5586  ;;  %v7775_v20 = vsel %vm1094_vm8, %v7627_v61, %v4478_v27  ;;  %5596 = vpow2.f32 %v1470_v36  ;;  %v1480_v2 = vmul.f32 1.442695, %v1230_v5  ;;  %v9600_v36 = vld [vmem:[#allocation29_spill] sm:$0xff] }
 0x1c1   :  { %v7783_v57 = vadd.f32 %v7545_v60, %v9599_v51  ;;  %v4479_v22 = vadd.f32 -1.0, %v5587_v53  ;;  %v1228_v6 = vmin.f32 %v7756_v46, 0.0  ;;  %v1231_v0 = vmin.f32 %v7766_v58, 0.0 }
 0x1c2   :  { %5177 = vmatmul.mubr.msk.bf16.gmra.mrb[152].mxu1 %vm242_vm0, %v1793_v56  ;;  %v4476_v56 = vadd.f32 -1.0, %v5585_v13  ;;  %vm1098_vm12 = vcmp.gt.f32.partialorder %v7680_v11, 0.0  ;;  %vm1096_vm13 = vcmp.gt.f32.partialorder %v7687_v1, 0.0  ;;  %5598 = vpow2.f32 %v1480_v2 }
 0x1c3   :  { %5180 = vmatprep.mubr.msk.bf16.mxu1 %vm242_vm0, %v1794_v59  ;;  %v1229_v61 = vmin.f32 %v7770_v9, 0.0  ;;  %v7793_v48 = vsel %vm1095_vm10, %v7641_v42, %v4479_v22  ;;  %vm1099_vm14 = vcmp.gt.f32.partialorder %v7691_v17, 0.0  ;;  %v1476_v52 = vmul.f32 1.442695, %v1228_v6 }
 0x1c4   :  { %v1482_v59 = vmul.f32 1.442695, %v1231_v0  ;;  %v5589_v40 = vpop.eup %5588  ;;  %v1805_v4 = vpack.c.bf16 %v7793_v48, %v7775_v20  ;;  %v1234_v27 = vmin.f32 %v7783_v57, 0.0  ;;  %v7801_v5 = vadd.f32 %v7545_v60, %v9600_v36 }
 0x1c5   :  { %v1478_v43 = vmul.f32 1.442695, %v1229_v61  ;;  %v7806_v42 = vsel %vm1092_vm9, %v7631_v19, %v4476_v56  ;;  %v4477_v13 = vadd.f32 -1.0, %v5589_v40  ;;  %5600 = vpow2.f32 %v1476_v52 }
 0x1c6   :  { %v5591_v30 = vpop.eup %5590  ;;  %v7810_v45 = vadd.f32 %v7545_v60, %v7135_v44  ;;  %5602 = vpow2.f32 %v1482_v59  ;;  %v1488_v2 = vmul.f32 1.442695, %v1234_v27  ;;  %v7814_v51 = vadd.f32 %v7545_v60, %v7137_v15 }
 0x1c7   :  { %v5593_v16 = vpop.eup %5592  ;;  %v4482_v53 = vadd.f32 -1.0, %v5591_v30  ;;  %v7819_v19 = vsel %vm1093_vm11, %v7676_v28, %v4477_v13  ;;  %5604 = vpow2.f32 %v1478_v43  ;;  %v1232_v6 = vmin.f32 %v7801_v5, 0.0 }
 0x1c8   :  { %v5595_v22 = vpop.eup %5594  ;;  %v4480_v56 = vadd.f32 -1.0, %v5593_v16  ;;  %v1804_v44 = vpack.c.bf16 %v7819_v19, %v7806_v42  ;;  %5606 = vpow2.f32 %v1488_v2  ;;  %v1235_v49 = vmin.f32 %v7810_v45, 0.0 }
 0x1c9   :  { %v7831_v15 = vsel %vm1098_vm12, %v7680_v11, %v4482_v53  ;;  %v4483_v60 = vadd.f32 -1.0, %v5595_v22  ;;  %v1484_v28 = vmul.f32 1.442695, %v1232_v6  ;;  %vm1097_vm15 = vcmp.gt.f32.partialorder %v7720_v12, 0.0 }
 0x1ca   :  { %5181 = vmatmul.mubr.msk.bf16.gmra.mrb[156].mxu1 %vm242_vm0, %v1795_v18  ;;  %v5597_v18 = vpop.eup %5596  ;;  %v7846_v11 = vsel %vm1096_vm13, %v7687_v1, %v4480_v56  ;;  %v1233_v50 = vmin.f32 %v7814_v51, 0.0  ;;  %v1490_v52 = vmul.f32 1.442695, %v1235_v49  ;;  %vm1102_vm1 = vcmp.gt.f32.partialorder %v7724_v47, 0.0 }
 0x1cb   :  { %5184 = vmatprep.mubr.msk.bf16.mxu1 %vm242_vm0, %v1796_v14  ;;  %v7851_v26 = vsel %vm1099_vm14, %v7691_v17, %v4483_v60  ;;  %v5090_v14 = vpop.f32.mrb[64].mxu1  ;;  %v4481_v61 = vadd.f32 -1.0, %v5597_v18  ;;  %5608 = vpow2.f32 %v1484_v28  ;;  %vm1100_vm2 = vcmp.gt.f32.partialorder %v7756_v46, 0.0 }
 0x1cc   :  { %v1807_v0 = vpack.c.bf16 %v7851_v26, %v7831_v15  ;;  %v2061_v59 = vpop.f32.mrb[65].mxu1  ;;  %v5599_v40 = vpop.eup %5598  ;;  %v1486_v1 = vmul.f32 1.442695, %v1233_v50  ;;  %v7858_v43 = vadd.f32 %v5090_v14, %v7841_v54  ;;  %5610 = vpow2.f32 %v1490_v52 }
 0x1cd   :  { %v7861_v17 = vadd.f32 %v7841_v54, %v2061_v59  ;;  %v5091_v27 = vpop.f32.mrb[66].mxu1  ;;  %v7864_v36 = vsel %vm1097_vm15, %v7720_v12, %v4481_v61  ;;  %v4486_v30 = vadd.f32 -1.0, %v5599_v40  ;;  %vm1103_vm3 = vcmp.gt.f32.partialorder %v7766_v58, 0.0 }
 0x1ce   :  { %v7867_v13 = vadd.f32 %v5091_v27, %v7841_v54  ;;  %v2064_v16 = vpop.f32.mrb[67].mxu1  ;;  %v1806_v53 = vpack.c.bf16 %v7864_v36, %v7846_v11  ;;  %5612 = vpow2.f32 %v1486_v1  ;;  %v2702_v2 = vmin.f32 %v7858_v43, 0.0 }
 0x1cf   :  { %v5601_v22 = vpop.eup %5600  ;;  %v2700_v12 = vmin.f32 %v7861_v17, 0.0  ;;  %v7886_v49 = vadd.f32 %v7841_v54, %v2064_v16  ;;  %v7889_v35 = vsel %vm1102_vm1, %v7724_v47, %v4486_v30  ;;  %vm1101_vm4 = vcmp.gt.f32.partialorder %v7770_v9, 0.0 }
 0x1d0   :  { %v5603_v56 = vpop.eup %5602  ;;  %v4484_v6 = vadd.f32 -1.0, %v5601_v22  ;;  %v2832_v60 = vmul.f32 1.442695, %v2702_v2  ;;  %v2703_v28 = vmin.f32 %v7867_v13, 0.0  ;;  %vm1106_vm5 = vcmp.gt.f32.partialorder %v7783_v57, 0.0 }
 0x1d1   :  { %v5605_v18 = vpop.eup %5604  ;;  %v4487_v34 = vadd.f32 -1.0, %v5603_v56  ;;  %v2701_v40 = vmin.f32 %v7886_v49, 0.0  ;;  %vm1104_vm6 = vcmp.gt.f32.partialorder %v7801_v5, 0.0  ;;  %vm1107_vm7 = vcmp.gt.f32.partialorder %v7810_v45, 0.0 }
 0x1d2   :  { %5185 = vmatmul.mubr.msk.bf16.gmra.mrb[160].mxu1 %vm242_vm0, %v1797_v24  ;;  %v2828_v24 = vmul.f32 1.442695, %v2700_v12  ;;  %v5607_v50 = vpop.eup %5606  ;;  %v7895_v31 = vsel %vm1100_vm2, %v7756_v46, %v4484_v6  ;;  %v4485_v8 = vadd.f32 -1.0, %v5605_v18  ;;  %5614 = vpow2.f32 %v2832_v60 }
 0x1d3   :  { %5188 = vmatprep.mubr.msk.bf16.mxu1 %vm242_vm0, %v1798_v23  ;;  %v2834_v23 = vmul.f32 1.442695, %v2703_v28  ;;  %v5094_v14 = vpop.f32.mrb[68].mxu1  ;;  %v7900_v61 = vsel %vm1103_vm3, %v7766_v58, %v4487_v34  ;;  %v4490_v47 = vadd.f32 -1.0, %v5607_v50  ;;  %vm1105_vm8 = vcmp.gt.f32.partialorder %v7814_v51, 0.0 }
 0x1d4   :  { %5616 = vpow2.f32 %v2828_v24  ;;  %v2077_v52 = vpop.f32.mrb[69].mxu1  ;;  %v1809_v59 = vpack.c.bf16 %v7900_v61, %v7889_v35  ;;  %v7906_v46 = vsel %vm1101_vm4, %v7770_v9, %v4485_v8  ;;  %v7913_v30 = vadd.f32 %v5094_v14, %v7841_v54 }
 0x1d5   :  { %5618 = vpow2.f32 %v2834_v23  ;;  %v5095_v1 = vpop.f32.mrb[70].mxu1  ;;  %v5609_v27 = vpop.eup %5608  ;;  %v1808_v58 = vpack.c.bf16 %v7906_v46, %v7895_v31  ;;  %v7916_v16 = vadd.f32 %v7841_v54, %v2077_v52  ;;  %v2830_v9 = vmul.f32 1.442695, %v2701_v40 }
 0x1d6   :  { %v2080_v2 = vpop.f32.mrb[71].mxu1  ;;  %v4488_v22 = vadd.f32 -1.0, %v5609_v27  ;;  %v7919_v12 = vadd.f32 %v5095_v1, %v7841_v54  ;;  %v5611_v6 = vpop.eup %5610  ;;  %v2706_v60 = vmin.f32 %v7913_v30, 0.0  ;;  %v7935_v34 = vsel %vm1106_vm5, %v7783_v57, %v4490_v47 }
 0x1d7   :  { %v7922_v56 = vadd.f32 %v7841_v54, %v2080_v2  ;;  %v2704_v28 = vmin.f32 %v7916_v16, 0.0  ;;  %v4491_v50 = vadd.f32 -1.0, %v5611_v6  ;;  %5620 = vpow2.f32 %v2830_v9 }
 0x1d8   :  { %v5613_v18 = vpop.eup %5612  ;;  %v7940_v24 = vsel %vm1104_vm6, %v7801_v5, %v4488_v22  ;;  %v2840_v55 = vmul.f32 1.442695, %v2706_v60  ;;  %v2707_v8 = vmin.f32 %v7919_v12, 0.0  ;;  %vm2574_vm9 = vcmp.gt.f32.partialorder %v7858_v43, 0.0 }
 0x1d9   :  { %v4489_v10 = vadd.f32 -1.0, %v5613_v18  ;;  %v7948_v57 = vsel %vm1107_vm7, %v7810_v45, %v4491_v50  ;;  %v2705_v23 = vmin.f32 %v7922_v56, 0.0  ;;  %vm2575_vm10 = vcmp.gt.f32.partialorder %v7867_v13, 0.0 }
 0x1da   :  { %5189 = vmatmul.mubr.msk.bf16.gmra.mrb[164].mxu1 %vm242_vm0, %v1799_v37  ;;  %v2836_v37 = vmul.f32 1.442695, %v2704_v28  ;;  %v1811_v5 = vpack.c.bf16 %v7948_v57, %v7935_v34  ;;  %5622 = vpow2.f32 %v2840_v55  ;;  %v2842_v21 = vmul.f32 1.442695, %v2707_v8 }
 0x1db   :  { %5192 = vmatprep.mubr.msk.bf16.mxu1 %vm242_vm0, %v1800_v33  ;;  %v7956_v38 = vsel %vm1105_vm8, %v7814_v51, %v4489_v10  ;;  %v2838_v47 = vmul.f32 1.442695, %v2705_v23  ;;  %v5098_v40 = vpop.f32.mrb[72].mxu1  ;;  %vm2572_vm11 = vcmp.gt.f32.partialorder %v7861_v17, 0.0  ;;  %vm2573_vm12 = vcmp.gt.f32.partialorder %v7886_v49, 0.0 }
 0x1dc   :  { %v5615_v33 = vpop.eup %5614  ;;  %v1810_v14 = vpack.c.bf16 %v7956_v38, %v7940_v24  ;;  %5624 = vpow2.f32 %v2836_v37  ;;  %v7961_v27 = vadd.f32 %v5098_v40, %v7841_v54  ;;  %v2093_v2 = vpop.f32.mrb[73].mxu1  ;;  %vm2578_vm13 = vcmp.gt.f32.partialorder %v7913_v30, 0.0 }
 0x1dd   :  { %v4561_v52 = vadd.f32 -1.0, %v5615_v33  ;;  %5626 = vpow2.f32 %v2842_v21  ;;  %v7969_v22 = vadd.f32 %v7841_v54, %v2093_v2  ;;  %v5099_v9 = vpop.f32.mrb[74].mxu1  ;;  %vm2576_vm14 = vcmp.gt.f32.partialorder %v7916_v16, 0.0 }
 0x1de   :  { %v5617_v45 = vpop.eup %5616  ;;  %5628 = vpow2.f32 %v2838_v47  ;;  %v2710_v60 = vmin.f32 %v7961_v27, 0.0  ;;  %v7978_v62 = vadd.f32 %v5099_v9, %v7841_v54  ;;  %v2096_v32 = vpop.f32.mrb[75].mxu1  ;;  %vm2579_vm15 = vcmp.gt.f32.partialorder %v7919_v12, 0.0 }
 0x1df   :  { %v5619_v1 = vpop.eup %5618  ;;  %v4559_v6 = vadd.f32 -1.0, %v5617_v45  ;;  %v2708_v18 = vmin.f32 %v7969_v22, 0.0  ;;  %v7984_v50 = vadd.f32 %v7841_v54, %v2096_v32  ;;  %vm2577_vm1 = vcmp.gt.f32.partialorder %v7922_v56, 0.0 }
 0x1e0   :  { %v4562_v51 = vadd.f32 -1.0, %v5619_v1  ;;  %v2711_v10 = vmin.f32 %v7978_v62, 0.0  ;;  %vm2582_vm2 = vcmp.gt.f32.partialorder %v7961_v27, 0.0  ;;  %vm2580_vm3 = vcmp.gt.f32.partialorder %v7969_v22, 0.0 }
 0x1e1   :  { %v5621_v25 = vpop.eup %5620  ;;  %v2844_v37 = vmul.f32 1.442695, %v2708_v18  ;;  %v2709_v8 = vmin.f32 %v7984_v50, 0.0  ;;  %v3212_v23 = vsel %vm2572_vm11, %v7861_v17, %v4559_v6  ;;  %vm2583_vm4 = vcmp.gt.f32.partialorder %v7978_v62, 0.0 }
 0x1e2   :  { %5193 = vmatmul.mubr.msk.bf16.gmra.mrb[168].mxu1 %vm242_vm0, %v1801_v63  ;;  %v3214_v63 = vsel %vm2574_vm9, %v7858_v43, %v4561_v52  ;;  %v3215_v28 = vsel %vm2575_vm10, %v7867_v13, %v4562_v51  ;;  %v4560_v55 = vadd.f32 -1.0, %v5621_v25  ;;  %v2850_v43 = vmul.f32 1.442695, %v2711_v10 }
 0x1e3   :  { %5196 = vmatprep.mubr.msk.bf16.mxu1 %vm242_vm0, %v1802_v3  ;;  %v3341_v41 = vpack.c.bf16 %v3215_v28, %v3214_v63  ;;  %v2848_v3 = vmul.f32 1.442695, %v2710_v60  ;;  %v2846_v33 = vmul.f32 1.442695, %v2709_v8  ;;  %vm2581_vm5 = vcmp.gt.f32.partialorder %v7984_v50, 0.0 }
 0x1e4   :  { %v5623_v13 = vpop.eup %5622  ;;  %v3213_v21 = vsel %vm2573_vm12, %v7886_v49, %v4560_v55  ;;  %v5102_v47 = vpop.f32.mrb[76].mxu1 }
 0x1e5   :  { %5630 = vpow2.f32 %v2848_v3  ;;  %v3340_v52 = vpack.c.bf16 %v3213_v21, %v3212_v23  ;;  %v4565_v40 = vadd.f32 -1.0, %v5623_v13  ;;  %v7993_v1 = vadd.f32 %v5102_v47, %v7841_v54  ;;  %v2109_v2 = vpop.f32.mrb[77].mxu1 }
 0x1e6   :  { %5632 = vpow2.f32 %v2844_v37  ;;  %v5625_v45 = vpop.eup %5624  ;;  %v8001_v49 = vadd.f32 %v7841_v54, %v2109_v2  ;;  %v5103_v9 = vpop.f32.mrb[78].mxu1 }
 0x1e7   :  { %5634 = vpow2.f32 %v2850_v43  ;;  %v5627_v51 = vpop.eup %5626  ;;  %v4563_v17 = vadd.f32 -1.0, %v5625_v45  ;;  %v2714_v7 = vmin.f32 %v7993_v1, 0.0  ;;  %5220 = vmatprep.mubr.msk.bf16.mxu0 %vm242_vm0, %v3340_v52  ;;  %v3218_v60 = vsel %vm2578_vm13, %v7913_v30, %v4565_v40 }
 0x1e8   :  { %5636 = vpow2.f32 %v2846_v33  ;;  %v5629_v6 = vpop.eup %5628  ;;  %v4566_v39 = vadd.f32 -1.0, %v5627_v51  ;;  %v2712_v63 = vmin.f32 %v8001_v49, 0.0  ;;  %5221 = vmatmul.mubr.msk.bf16.vlgmr.msra.gmra.mrb[64].mxu0 %vm242_vm0, %v3341_v41  ;;  %vm2586_vm6 = vcmp.gt.f32.partialorder %v7993_v1, 0.0 }
 0x1e9   :  { %v4564_v32 = vadd.f32 -1.0, %v5629_v6  ;;  %v2856_v19 = vmul.f32 1.442695, %v2714_v7  ;;  %v3216_v18 = vsel %vm2576_vm14, %v7916_v16, %v4563_v17  ;;  %vm2584_vm7 = vcmp.gt.f32.partialorder %v8001_v49, 0.0 }
 0x1ea   :  { %5197 = vmatmul.mubr.msk.bf16.gmra.mrb[172].mxu1 %vm242_vm0, %v1803_v29  ;;  %v2112_v29 = vpop.f32.mrb[79].mxu1  ;;  %v3219_v42 = vsel %vm2579_vm15, %v7919_v12, %v4566_v39  ;;  %v2852_v3 = vmul.f32 1.442695, %v2712_v63 }
 0x1eb   :  { %5200 = vmatprep.mubr.msk.bf16.mxu1 %vm242_vm0, %v1804_v44  ;;  %v8017_v44 = vadd.f32 %v5103_v9, %v7841_v54  ;;  %v8020_v28 = vadd.f32 %v7841_v54, %v2112_v29  ;;  %v3343_v25 = vpack.c.bf16 %v3219_v42, %v3218_v60  ;;  %v3217_v30 = vsel %vm2577_vm1, %v7922_v56, %v4564_v32 }
 0x1ec   :  { %v3342_v10 = vpack.c.bf16 %v3217_v30, %v3216_v18  ;;  %5638 = vpow2.f32 %v2856_v19 }
 0x1ed   :  { %v2715_v55 = vmin.f32 %v8017_v44, 0.0  ;;  %5640 = vpow2.f32 %v2852_v3  ;;  %v2713_v12 = vmin.f32 %v8020_v28, 0.0  ;;  %v5106_v8 = vpop.f32.mrb[80].mxu1  ;;  %vm2587_vm8 = vcmp.gt.f32.partialorder %v8017_v44, 0.0 }
 0x1ee   :  { %5224 = vmatprep.mubr.msk.bf16.mxu0 %vm242_vm0, %v3342_v10  ;;  %v8032_v13 = vadd.f32 %v5106_v8, %v7841_v54  ;;  %v2125_v23 = vpop.f32.mrb[81].mxu1  ;;  %vm2585_vm9 = vcmp.gt.f32.partialorder %v8020_v28, 0.0 }
 0x1ef   :  { %v5631_v41 = vpop.eup %5630  ;;  %v2858_v37 = vmul.f32 1.442695, %v2715_v55  ;;  %v2854_v56 = vmul.f32 1.442695, %v2713_v12  ;;  %v8040_v20 = vadd.f32 %v7841_v54, %v2125_v23  ;;  %v5107_v48 = vpop.f32.mrb[82].mxu1 }
 0x1f0   :  { %v5633_v43 = vpop.eup %5632  ;;  %v4569_v16 = vadd.f32 -1.0, %v5631_v41  ;;  %v2128_v45 = vpop.f32.mrb[83].mxu1  ;;  %5225 = vmatmul.mubr.msk.bf16.gmra.mrb[68].mxu0 %vm242_vm0, %v3343_v25  ;;  %v8051_v2 = vadd.f32 %v5107_v48, %v7841_v54  ;;  %vm2590_vm10 = vcmp.gt.f32.partialorder %v8032_v13, 0.0 }
 0x1f1   :  { %v5635_v21 = vpop.eup %5634  ;;  %v4567_v33 = vadd.f32 -1.0, %v5633_v43  ;;  %5642 = vpow2.f32 %v2858_v37  ;;  %v2716_v40 = vmin.f32 %v8040_v20, 0.0  ;;  %v8054_v51 = vadd.f32 %v7841_v54, %v2128_v45 }
 0x1f2   :  { %5201 = vmatmul.mubr.msk.bf16.gmra.mrb[176].mxu1 %vm242_vm0, %v1805_v4  ;;  %v5637_v4 = vpop.eup %5636  ;;  %v4570_v47 = vadd.f32 -1.0, %v5635_v21  ;;  %5644 = vpow2.f32 %v2854_v56  ;;  %v3222_v11 = vsel %vm2582_vm2, %v7961_v27, %v4569_v16  ;;  %v2719_v29 = vmin.f32 %v8051_v2, 0.0 }
 0x1f3   :  { %5204 = vmatprep.mubr.msk.bf16.mxu1 %vm242_vm0, %v1806_v53  ;;  %v4568_v36 = vadd.f32 -1.0, %v5637_v4  ;;  %v2718_v53 = vmin.f32 %v8032_v13, 0.0  ;;  %v3220_v17 = vsel %vm2580_vm3, %v7969_v22, %v4567_v33  ;;  %v2860_v7 = vmul.f32 1.442695, %v2716_v40 }
 0x1f4   :  { %v3223_v52 = vsel %vm2583_vm4, %v7978_v62, %v4570_v47  ;;  %v2717_v62 = vmin.f32 %v8054_v51, 0.0  ;;  %v2866_v22 = vmul.f32 1.442695, %v2719_v29  ;;  %vm2588_vm11 = vcmp.gt.f32.partialorder %v8040_v20, 0.0 }
 0x1f5   :  { %v3345_v9 = vpack.c.bf16 %v3223_v52, %v3222_v11  ;;  %v3221_v27 = vsel %vm2581_vm5, %v7984_v50, %v4568_v36  ;;  %v2864_v6 = vmul.f32 1.442695, %v2718_v53  ;;  %v5110_v32 = vpop.f32.mrb[84].mxu1  ;;  %vm2591_vm12 = vcmp.gt.f32.partialorder %v8051_v2, 0.0 }
 0x1f6   :  { %v3344_v39 = vpack.c.bf16 %v3221_v27, %v3220_v17  ;;  %v5639_v60 = vpop.eup %5638  ;;  %v8065_v50 = vadd.f32 %v5110_v32, %v7841_v54  ;;  %v2141_v42 = vpop.f32.mrb[85].mxu1  ;;  %v2862_v19 = vmul.f32 1.442695, %v2717_v62  ;;  %vm2589_vm13 = vcmp.gt.f32.partialorder %v8054_v51, 0.0 }
 0x1f7   :  { %5646 = vpow2.f32 %v2864_v6  ;;  %v5641_v63 = vpop.eup %5640  ;;  %v8073_v18 = vadd.f32 %v7841_v54, %v2141_v42  ;;  %v5111_v15 = vpop.f32.mrb[86].mxu1  ;;  %v4573_v26 = vadd.f32 -1.0, %v5639_v60 }
 0x1f8   :  { %5648 = vpow2.f32 %v2860_v7  ;;  %5228 = vmatprep.mubr.msk.bf16.mxu0 %vm242_vm0, %v3344_v39  ;;  %v2144_v25 = vpop.f32.mrb[87].mxu1  ;;  %v4571_v31 = vadd.f32 -1.0, %v5641_v63  ;;  %v8081_v55 = vadd.f32 %v5111_v15, %v7841_v54  ;;  %vm2594_vm14 = vcmp.gt.f32.partialorder %v8065_v50, 0.0 }
 0x1f9   :  { %5650 = vpow2.f32 %v2866_v22  ;;  %5229 = vmatmul.mubr.msk.bf16.gmra.mrb[72].mxu0 %vm242_vm0, %v3345_v9  ;;  %v2720_v46 = vmin.f32 %v8073_v18, 0.0  ;;  %v8084_v12 = vadd.f32 %v7841_v54, %v2144_v25  ;;  %v3226_v8 = vsel %vm2586_vm6, %v7993_v1, %v4573_v26 }
 0x1fa   :  { %5205 = vmatmul.mubr.msk.bf16.gmra.mrb[180].mxu1 %vm242_vm0, %v1807_v0  ;;  %v2722_v0 = vmin.f32 %v8065_v50, 0.0  ;;  %5652 = vpow2.f32 %v2862_v19  ;;  %v2723_v16 = vmin.f32 %v8081_v55, 0.0  ;;  %v3224_v56 = vsel %vm2584_vm7, %v8001_v49, %v4571_v31 }
 0x1fb   :  { %5208 = vmatprep.mubr.msk.bf16.mxu1 %vm242_vm0, %v1808_v58  ;;  %v5643_v30 = vpop.eup %5642  ;;  %v2868_v37 = vmul.f32 1.442695, %v2720_v46  ;;  %vm2592_vm15 = vcmp.gt.f32.partialorder %v8073_v18, 0.0  ;;  %vm2595_vm1 = vcmp.gt.f32.partialorder %v8081_v55, 0.0  ;;  %vm2593_vm2 = vcmp.gt.f32.partialorder %v8084_v12, 0.0 }
 0x1fc   :  { %v5645_v58 = vpop.eup %5644  ;;  %v4574_v3 = vadd.f32 -1.0, %v5643_v30  ;;  %v2872_v10 = vmul.f32 1.442695, %v2722_v0  ;;  %v2874_v1 = vmul.f32 1.442695, %v2723_v16 }
 0x1fd   :  { %v4572_v41 = vadd.f32 -1.0, %v5645_v58  ;;  %v5114_v33 = vpop.f32.mrb[88].mxu1 }
 0x1fe   :  { %v3227_v43 = vsel %vm2587_vm8, %v8017_v44, %v4574_v3  ;;  %5654 = vpow2.f32 %v2872_v10  ;;  %v2721_v44 = vmin.f32 %v8084_v12, 0.0  ;;  %v8103_v4 = vadd.f32 %v5114_v33, %v7841_v54  ;;  %v2157_v47 = vpop.f32.mrb[89].mxu1 }
 0x1ff   :  { %v3347_v23 = vpack.c.bf16 %v3227_v43, %v3226_v8  ;;  %v3225_v21 = vsel %vm2585_vm9, %v8020_v28, %v4572_v41  ;;  %5656 = vpow2.f32 %v2868_v37  ;;  %v8110_v49 = vadd.f32 %v7841_v54, %v2157_v47  ;;  %v5115_v28 = vpop.f32.mrb[90].mxu1 }
 0x200   :  { %v3346_v48 = vpack.c.bf16 %v3225_v21, %v3224_v56  ;;  %5658 = vpow2.f32 %v2874_v1  ;;  %v2160_v11 = vpop.f32.mrb[91].mxu1  ;;  %v2726_v53 = vmin.f32 %v8103_v4, 0.0  ;;  %vm2598_vm3 = vcmp.gt.f32.partialorder %v8103_v4, 0.0 }
 0x201   :  { %v5647_v45 = vpop.eup %5646  ;;  %v2724_v24 = vmin.f32 %v8110_v49, 0.0  ;;  %v8122_v52 = vadd.f32 %v7841_v54, %v2160_v11  ;;  %vm2596_vm4 = vcmp.gt.f32.partialorder %v8110_v49, 0.0 }
 0x202   :  { %5209 = vmatmul.mubr.msk.bf16.gmra.mrb[184].mxu1 %vm242_vm0, %v1809_v59  ;;  %v5649_v35 = vpop.eup %5648  ;;  %v4577_v61 = vadd.f32 -1.0, %v5647_v45  ;;  %v2870_v59 = vmul.f32 1.442695, %v2721_v44  ;;  %5232 = vmatprep.mubr.msk.bf16.mxu0 %vm242_vm0, %v3346_v48  ;;  %v2880_v9 = vmul.f32 1.442695, %v2726_v53 }
 0x203   :  { %5212 = vmatprep.mubr.msk.bf16.mxu1 %vm242_vm0, %v1810_v14  ;;  %v4575_v36 = vadd.f32 -1.0, %v5649_v35  ;;  %5233 = vmatmul.mubr.msk.bf16.gmra.mrb[76].mxu0 %vm242_vm0, %v3347_v23  ;;  %v5651_v38 = vpop.eup %5650  ;;  %v8119_v14 = vadd.f32 %v5115_v28, %v7841_v54  ;;  %v2876_v27 = vmul.f32 1.442695, %v2724_v24  ;;  %v2725_v62 = vmin.f32 %v8122_v52, 0.0 }
 0x204   :  { %5660 = vpow2.f32 %v2870_v59  ;;  %v5653_v40 = vpop.eup %5652  ;;  %v4578_v17 = vadd.f32 -1.0, %v5651_v38  ;;  %v3230_v6 = vsel %vm2590_vm10, %v8032_v13, %v4577_v61  ;;  %vm2597_vm6 = vcmp.gt.f32.partialorder %v8122_v52, 0.0 }
 0x205   :  { %v4576_v39 = vadd.f32 -1.0, %v5653_v40  ;;  %v2727_v7 = vmin.f32 %v8119_v14, 0.0  ;;  %v3228_v29 = vsel %vm2588_vm11, %v8040_v20, %v4575_v36  ;;  %5662 = vpow2.f32 %v2880_v9  ;;  %v5118_v32 = vpop.f32.mrb[92].mxu1 }
 0x206   :  { %v3231_v60 = vsel %vm2591_vm12, %v8051_v2, %v4578_v17  ;;  %5664 = vpow2.f32 %v2876_v27  ;;  %v2173_v19 = vpop.f32.mrb[93].mxu1  ;;  %v2878_v26 = vmul.f32 1.442695, %v2725_v62  ;;  %v8137_v2 = vadd.f32 %v5118_v32, %v7841_v54 }
 0x207   :  { %v3349_v22 = vpack.c.bf16 %v3231_v60, %v3230_v6  ;;  %v3229_v42 = vsel %vm2589_vm13, %v8054_v51, %v4576_v39  ;;  %v2882_v13 = vmul.f32 1.442695, %v2727_v7  ;;  %v5119_v0 = vpop.f32.mrb[94].mxu1  ;;  %v8140_v30 = vadd.f32 %v7841_v54, %v2173_v19 }
 0x208   :  { %v5655_v63 = vpop.eup %5654  ;;  %v3348_v20 = vpack.c.bf16 %v3229_v42, %v3228_v29  ;;  %v8143_v51 = vadd.f32 %v5119_v0, %v7841_v54  ;;  %v2176_v34 = vpop.f32.mrb[95].mxu1  ;;  %v2730_v57 = vmin.f32 %v8137_v2, 0.0  ;;  %vm2599_vm5 = vcmp.gt.f32.partialorder %v8119_v14, 0.0 }
 0x209   :  { %v5657_v15 = vpop.eup %5656  ;;  %v4581_v25 = vadd.f32 -1.0, %v5655_v63  ;;  %5666 = vpow2.f32 %v2882_v13  ;;  %v2728_v46 = vmin.f32 %v8140_v30, 0.0  ;;  %v8153_v41 = vadd.f32 %v7841_v54, %v2176_v34 }
 0x20a   :  { %5213 = vmatmul.mubr.msk.bf16.gmra.mrb[188].mxu1 %vm242_vm0, %v1811_v5  ;;  %5668 = vpow2.f32 %v2878_v26  ;;  %5236 = vmatprep.mubr.msk.bf16.mxu0 %vm242_vm0, %v3348_v20  ;;  %v5659_v5 = vpop.eup %5658  ;;  %v4579_v31 = vadd.f32 -1.0, %v5657_v15  ;;  %v2888_v3 = vmul.f32 1.442695, %v2730_v57  ;;  %v2731_v10 = vmin.f32 %v8143_v51, 0.0 }
 0x20b   :  { %5237 = vmatmul.mubr.msk.bf16.gmra.mrb[80].mxu0 %vm242_vm0, %v3349_v22  ;;  %v4582_v58 = vadd.f32 -1.0, %v5659_v5  ;;  %v3234_v8 = vsel %vm2594_vm14, %v8065_v50, %v4581_v25  ;;  %v2884_v43 = vmul.f32 1.442695, %v2728_v46  ;;  %v2729_v1 = vmin.f32 %v8153_v41, 0.0 }
 0x20c   :  { %5670 = vpow2.f32 %v2888_v3  ;;  %v2890_v23 = vmul.f32 1.442695, %v2731_v10  ;;  %v3232_v33 = vsel %vm2592_vm15, %v8073_v18, %v4579_v31  ;;  %vm2602_vm7 = vcmp.gt.f32.partialorder %v8137_v2, 0.0 }
 0x20d   :  { %v3235_v16 = vsel %vm2595_vm1, %v8081_v55, %v4582_v58  ;;  %v5122_v21 = vpop.f32.mrb[96].mxu1  ;;  %5672 = vpow2.f32 %v2884_v43  ;;  %v2886_v59 = vmul.f32 1.442695, %v2729_v1  ;;  %vm2603_vm8 = vcmp.gt.f32.partialorder %v8143_v51, 0.0 }
 0x20e   :  { %v5661_v37 = vpop.eup %5660  ;;  %v3351_v48 = vpack.c.bf16 %v3235_v16, %v3234_v8  ;;  %v2189_v50 = vpop.f32.mrb[97].mxu1  ;;  %5674 = vpow2.f32 %v2890_v23  ;;  %v8165_v45 = vadd.f32 %v5122_v21, %v7841_v54  ;;  %vm2600_vm9 = vcmp.gt.f32.partialorder %v8140_v30, 0.0 }
 0x20f   :  { %v4580_v56 = vadd.f32 -1.0, %v5661_v37  ;;  %v5663_v44 = vpop.eup %5662  ;;  %v8168_v55 = vadd.f32 %v7841_v54, %v2189_v50  ;;  %v5123_v28 = vpop.f32.mrb[98].mxu1  ;;  %5676 = vpow2.f32 %v2886_v59  ;;  %vm2601_vm10 = vcmp.gt.f32.partialorder %v8153_v41, 0.0 }
 0x210   :  { %v5665_v35 = vpop.eup %5664  ;;  %v8171_v18 = vadd.f32 %v5123_v28, %v7841_v54  ;;  %v2192_v11 = vpop.f32.mrb[99].mxu1  ;;  %v4585_v36 = vadd.f32 -1.0, %v5663_v44  ;;  %vm2606_vm11 = vcmp.gt.f32.partialorder %v8165_v45, 0.0 }
 0x211   :  { %v3233_v47 = vsel %vm2593_vm2, %v8084_v12, %v4580_v56  ;;  %v2734_v12 = vmin.f32 %v8165_v45, 0.0  ;;  %v4583_v24 = vadd.f32 -1.0, %v5665_v35  ;;  %v2732_v38 = vmin.f32 %v8168_v55, 0.0 }
 0x212   :  { %v3350_v61 = vpack.c.bf16 %v3233_v47, %v3232_v33  ;;  %v2735_v27 = vmin.f32 %v8171_v18, 0.0  ;;  %v8183_v7 = vadd.f32 %v7841_v54, %v2192_v11  ;;  %v3238_v29 = vsel %vm2598_vm3, %v8103_v4, %v4585_v36 }
 0x213   :  { %v5667_v53 = vpop.eup %5666  ;;  %v2896_v9 = vmul.f32 1.442695, %v2734_v12  ;;  %v2892_v39 = vmul.f32 1.442695, %v2732_v38  ;;  %v3236_v63 = vsel %vm2596_vm4, %v8110_v49, %v4583_v24  ;;  %vm2607_vm12 = vcmp.gt.f32.partialorder %v8171_v18, 0.0 }
 0x214   :  { %5240 = vmatprep.mubr.msk.bf16.mxu0 %vm242_vm0, %v3350_v61  ;;  %v5669_v40 = vpop.eup %5668  ;;  %v4586_v17 = vadd.f32 -1.0, %v5667_v53  ;;  %v2898_v62 = vmul.f32 1.442695, %v2735_v27  ;;  %v2733_v20 = vmin.f32 %v8183_v7, 0.0  ;;  %vm2604_vm13 = vcmp.gt.f32.partialorder %v8168_v55, 0.0 }
 0x215   :  { %5241 = vmatmul.mubr.msk.bf16.gmra.mrb[84].mxu0 %vm242_vm0, %v3351_v48  ;;  %v4584_v6 = vadd.f32 -1.0, %v5669_v40  ;;  %5678 = vpow2.f32 %v2896_v9  ;;  %v5126_v32 = vpop.f32.mrb[100].mxu1  ;;  %vm2605_vm14 = vcmp.gt.f32.partialorder %v8183_v7, 0.0 }
 0x216   :  { %v3239_v60 = vsel %vm2599_vm5, %v8119_v14, %v4586_v17  ;;  %5680 = vpow2.f32 %v2892_v39  ;;  %v2205_v13 = vpop.f32.mrb[101].mxu1  ;;  %v5671_v19 = vpop.eup %5670  ;;  %v8195_v4 = vadd.f32 %v5126_v32, %v7841_v54  ;;  %v2894_v57 = vmul.f32 1.442695, %v2733_v20 }
 0x217   :  { %v3353_v22 = vpack.c.bf16 %v3239_v60, %v3238_v29  ;;  %v3237_v42 = vsel %vm2597_vm6, %v8122_v52, %v4584_v6  ;;  %5682 = vpow2.f32 %v2898_v62  ;;  %v5127_v14 = vpop.f32.mrb[102].mxu1  ;;  %v5673_v26 = vpop.eup %5672  ;;  %v4589_v0 = vadd.f32 -1.0, %v5671_v19 }
 0x218   :  { %v3352_v15 = vpack.c.bf16 %v3237_v42, %v3236_v63  ;;  %v8198_v25 = vadd.f32 %v7841_v54, %v2205_v13  ;;  %v8201_v49 = vadd.f32 %v5127_v14, %v7841_v54  ;;  %v2208_v52 = vpop.f32.mrb[103].mxu1  ;;  %v5675_v34 = vpop.eup %5674  ;;  %v2738_v5 = vmin.f32 %v8195_v4, 0.0 }
 0x219   :  { %v4590_v31 = vadd.f32 -1.0, %v5675_v34  ;;  %v3242_v58 = vsel %vm2602_vm7, %v8137_v2, %v4589_v0  ;;  %v4587_v3 = vadd.f32 -1.0, %v5673_v26  ;;  %5684 = vpow2.f32 %v2894_v57  ;;  %v5677_v37 = vpop.eup %5676 }
 0x21a   :  { %5244 = vmatprep.mubr.msk.bf16.mxu0 %vm242_vm0, %v3352_v15  ;;  %v2736_v46 = vmin.f32 %v8198_v25, 0.0  ;;  %v2904_v10 = vmul.f32 1.442695, %v2738_v5  ;;  %v2739_v16 = vmin.f32 %v8201_v49, 0.0  ;;  %v8213_v56 = vadd.f32 %v7841_v54, %v2208_v52 }
 0x21b   :  { %v3243_v8 = vsel %vm2603_vm8, %v8143_v51, %v4590_v31  ;;  %v4588_v21 = vadd.f32 -1.0, %v5677_v37  ;;  %v3240_v50 = vsel %vm2600_vm9, %v8140_v30, %v4587_v3  ;;  %vm2610_vm15 = vcmp.gt.f32.partialorder %v8195_v4, 0.0 }
 0x21c   :  { %v2900_v43 = vmul.f32 1.442695, %v2736_v46  ;;  %v3355_v23 = vpack.c.bf16 %v3243_v8, %v3242_v58  ;;  %5686 = vpow2.f32 %v2904_v10  ;;  %v2906_v33 = vmul.f32 1.442695, %v2739_v16 }
 0x21d   :  { %5245 = vmatmul.mubr.msk.bf16.gmra.mrb[88].mxu0 %vm242_vm0, %v3353_v22  ;;  %v5130_v2 = vpop.f32.mrb[104].mxu1  ;;  %v2737_v48 = vmin.f32 %v8213_v56, 0.0  ;;  %v3241_v44 = vsel %vm2601_vm10, %v8153_v41, %v4588_v21  ;;  %vm2608_vm1 = vcmp.gt.f32.partialorder %v8198_v25, 0.0  ;;  %vm2611_vm2 = vcmp.gt.f32.partialorder %v8201_v49, 0.0 }
 0x21e   :  { %5688 = vpow2.f32 %v2900_v43  ;;  %v2221_v1 = vpop.f32.mrb[105].mxu1  ;;  %v8221_v47 = vadd.f32 %v5130_v2, %v7841_v54  ;;  %v3354_v59 = vpack.c.bf16 %v3241_v44, %v3240_v50  ;;  %vm2609_vm3 = vcmp.gt.f32.partialorder %v8213_v56, 0.0 }
 0x21f   :  { %v5679_v51 = vpop.eup %5678  ;;  %v8224_v28 = vadd.f32 %v7841_v54, %v2221_v1  ;;  %v5131_v35 = vpop.f32.mrb[106].mxu1  ;;  %5690 = vpow2.f32 %v2906_v33  ;;  %v2902_v36 = vmul.f32 1.442695, %v2737_v48 }
 0x220   :  { %v5681_v61 = vpop.eup %5680  ;;  %v4593_v11 = vadd.f32 -1.0, %v5679_v51  ;;  %v2224_v12 = vpop.f32.mrb[107].mxu1  ;;  %v2742_v24 = vmin.f32 %v8221_v47, 0.0  ;;  %5248 = vmatprep.mubr.msk.bf16.mxu0 %vm242_vm0, %v3354_v59  ;;  %v8232_v40 = vadd.f32 %v5131_v35, %v7841_v54  ;;  %vm2614_vm4 = vcmp.gt.f32.partialorder %v8221_v47, 0.0 }
 0x221   :  { %v5683_v53 = vpop.eup %5682  ;;  %5692 = vpow2.f32 %v2902_v36  ;;  %v2740_v41 = vmin.f32 %v8224_v28, 0.0  ;;  %v8235_v17 = vadd.f32 %v7841_v54, %v2224_v12  ;;  %v4591_v27 = vadd.f32 -1.0, %v5681_v61 }
 0x222   :  { %v4594_v30 = vadd.f32 -1.0, %v5683_v53  ;;  %v2912_v38 = vmul.f32 1.442695, %v2742_v24  ;;  %v3246_v9 = vsel %vm2606_vm11, %v8165_v45, %v4593_v11  ;;  %v2743_v62 = vmin.f32 %v8232_v40, 0.0  ;;  %v8285_v24 = vld [vmem:[%s9535_s4] ss:$0 sm:$0xff] }
 0x223   :  { %v2908_v39 = vmul.f32 1.442695, %v2740_v41  ;;  %v5685_v29 = vpop.eup %5684  ;;  %v2741_v22 = vmin.f32 %v8235_v17, 0.0  ;;  %v3244_v14 = vsel %vm2604_vm13, %v8168_v55, %v4591_v27  ;;  %vm2612_vm5 = vcmp.gt.f32.partialorder %v8224_v28, 0.0 }
 0x224   :  { %v3247_v6 = vsel %vm2607_vm12, %v8171_v18, %v4594_v30  ;;  %5694 = vpow2.f32 %v2912_v38  ;;  %v4592_v63 = vadd.f32 -1.0, %v5685_v29  ;;  %v2914_v45 = vmul.f32 1.442695, %v2743_v62 }
 0x225   :  { %5249 = vmatmul.mubr.msk.bf16.gmra.mrb[92].mxu0 %vm242_vm0, %v3355_v23  ;;  %v3357_v60 = vpack.c.bf16 %v3247_v6, %v3246_v9  ;;  %v5134_v32 = vpop.f32.mrb[108].mxu1  ;;  %5696 = vpow2.f32 %v2908_v39  ;;  %v2910_v0 = vmul.f32 1.442695, %v2741_v22  ;;  %vm2615_vm6 = vcmp.gt.f32.partialorder %v8232_v40, 0.0 }
 0x226   :  { %v2237_v42 = vpop.f32.mrb[109].mxu1  ;;  %v5687_v13 = vpop.eup %5686  ;;  %v8245_v18 = vadd.f32 %v5134_v32, %v7841_v54  ;;  %v3245_v26 = vsel %vm2605_vm14, %v8183_v7, %v4592_v63  ;;  %5698 = vpow2.f32 %v2914_v45  ;;  %vm2613_vm7 = vcmp.gt.f32.partialorder %v8235_v17, 0.0 }
 0x227   :  { %v8248_v19 = vadd.f32 %v7841_v54, %v2237_v42  ;;  %v5135_v15 = vpop.f32.mrb[110].mxu1  ;;  %v3356_v57 = vpack.c.bf16 %v3245_v26, %v3244_v14  ;;  %v4597_v5 = vadd.f32 -1.0, %v5687_v13  ;;  %5700 = vpow2.f32 %v2910_v0 }
 0x228   :  { %v5689_v20 = vpop.eup %5688  ;;  %v8253_v52 = vadd.f32 %v5135_v15, %v7841_v54  ;;  %v2240_v34 = vpop.f32.mrb[111].mxu1  ;;  %v2746_v58 = vmin.f32 %v8245_v18, 0.0  ;;  %vm2618_vm8 = vcmp.gt.f32.partialorder %v8245_v18, 0.0 }
 0x229   :  { %v5691_v31 = vpop.eup %5690  ;;  %v4595_v46 = vadd.f32 -1.0, %v5689_v20  ;;  %v2744_v7 = vmin.f32 %v8248_v19, 0.0  ;;  %5252 = vmatprep.mubr.msk.bf16.mxu0 %vm242_vm0, %v3356_v57  ;;  %v8264_v8 = vadd.f32 %v7841_v54, %v2240_v34  ;;  %v3250_v43 = vsel %vm2610_vm15, %v8195_v4, %v4597_v5 }
 0x22a   :  { %v4598_v55 = vadd.f32 -1.0, %v5691_v31  ;;  %v2920_v10 = vmul.f32 1.442695, %v2746_v58  ;;  %v2747_v37 = vmin.f32 %v8253_v52, 0.0  ;;  %vm2619_vm9 = vcmp.gt.f32.partialorder %v8253_v52, 0.0 }
 0x22b   :  { %v5693_v3 = vpop.eup %5692  ;;  %v2916_v21 = vmul.f32 1.442695, %v2744_v7  ;;  %v3248_v2 = vsel %vm2608_vm1, %v8198_v25, %v4595_v46  ;;  %v2745_v44 = vmin.f32 %v8264_v8, 0.0  ;;  %vm2616_vm10 = vcmp.gt.f32.partialorder %v8248_v19, 0.0 }
 0x22c   :  { %v3251_v16 = vsel %vm2611_vm2, %v8201_v49, %v4598_v55  ;;  %v4596_v23 = vadd.f32 -1.0, %v5693_v3  ;;  %5702 = vpow2.f32 %v2920_v10  ;;  %v2922_v48 = vmul.f32 1.442695, %v2747_v37 }
 0x22d   :  { %5253 = vmatmul.mubr.msk.bf16.gmra.mrb[96].mxu0 %vm242_vm0, %v3357_v60  ;;  %v3359_v33 = vpack.c.bf16 %v3251_v16, %v3250_v43  ;;  %5704 = vpow2.f32 %v2916_v21  ;;  %v2918_v11 = vmul.f32 1.442695, %v2745_v44  ;;  %vm2617_vm11 = vcmp.gt.f32.partialorder %v8264_v8, 0.0 }
 0x22e   :  { %v5138_v1 = vpop.f32.mrb[112].mxu1  ;;  %v5695_v51 = vpop.eup %5694  ;;  %v3249_v50 = vsel %vm2609_vm3, %v8213_v56, %v4596_v23  ;;  %5706 = vpow2.f32 %v2922_v48 }
 0x22f   :  { %v8273_v35 = vadd.f32 %v5138_v1, %v7841_v54  ;;  %v2253_v4 = vpop.f32.mrb[113].mxu1  ;;  %v5697_v61 = vpop.eup %5696  ;;  %v3358_v49 = vpack.c.bf16 %v3249_v50, %v3248_v2  ;;  %v4601_v12 = vadd.f32 -1.0, %v5695_v51  ;;  %5708 = vpow2.f32 %v2918_v11 }
 0x230   :  { %v8276_v59 = vadd.f32 %v7841_v54, %v2253_v4  ;;  %v5139_v25 = vpop.f32.mrb[114].mxu1  ;;  %v5699_v30 = vpop.eup %5698  ;;  %v4599_v41 = vadd.f32 -1.0, %v5697_v61 }
 0x231   :  { %v2750_v36 = vmin.f32 %v8273_v35, 0.0  ;;  %v2256_v56 = vpop.f32.mrb[115].mxu1  ;;  %v8288_v54 = vadd.f32 %v8285_v24, %v5139_v25  ;;  %5256 = vmatprep.mubr.msk.bf16.mxu0 %vm242_vm0, %v3358_v49  ;;  %v5701_v27 = vpop.eup %5700  ;;  %v4602_v6 = vadd.f32 -1.0, %v5699_v30  ;;  %v3254_v32 = vsel %vm2614_vm4, %v8221_v47, %v4601_v12 }
 0x232   :  { %v2748_v53 = vmin.f32 %v8276_v59, 0.0  ;;  %v8292_v9 = vadd.f32 %v8285_v24, %v2256_v56  ;;  %v4600_v60 = vadd.f32 -1.0, %v5701_v27  ;;  %v3252_v42 = vsel %vm2612_vm5, %v8224_v28, %v4599_v41 }
 0x233   :  { %v2928_v38 = vmul.f32 1.442695, %v2750_v36  ;;  %v2751_v29 = vmin.f32 %v8288_v54, 0.0  ;;  %v3255_v63 = vsel %vm2615_vm6, %v8232_v40, %v4602_v6  ;;  %vm2622_vm12 = vcmp.gt.f32.partialorder %v8273_v35, 0.0 }
 0x234   :  { %v2924_v39 = vmul.f32 1.442695, %v2748_v53  ;;  %v2749_v62 = vmin.f32 %v8292_v9, 0.0  ;;  %v3361_v13 = vpack.c.bf16 %v3255_v63, %v3254_v32  ;;  %v3253_v45 = vsel %vm2613_vm7, %v8235_v17, %v4600_v60 }
 0x235   :  { %5257 = vmatmul.mubr.msk.bf16.gmra.mrb[100].mxu0 %vm242_vm0, %v3359_v33  ;;  %5710 = vpow2.f32 %v2928_v38  ;;  %v2930_v22 = vmul.f32 1.442695, %v2751_v29  ;;  %v3360_v14 = vpack.c.bf16 %v3253_v45, %v3252_v42  ;;  %vm2620_vm13 = vcmp.gt.f32.partialorder %v8276_v59, 0.0 }
 0x236   :  { %5712 = vpow2.f32 %v2924_v39  ;;  %v2926_v15 = vmul.f32 1.442695, %v2749_v62  ;;  %v5703_v20 = vpop.eup %5702  ;;  %vm2623_vm14 = vcmp.gt.f32.partialorder %v8288_v54, 0.0  ;;  %vm2621_vm15 = vcmp.gt.f32.partialorder %v8292_v9, 0.0 }
 0x237   :  { %5714 = vpow2.f32 %v2930_v22  ;;  %v5705_v26 = vpop.eup %5704  ;;  %v4605_v0 = vadd.f32 -1.0, %v5703_v20  ;;  %5260 = vmatprep.mubr.msk.bf16.mxu0 %vm242_vm0, %v3360_v14 }
 0x238   :  { %5716 = vpow2.f32 %v2926_v15  ;;  %v5707_v34 = vpop.eup %5706  ;;  %v4603_v57 = vadd.f32 -1.0, %v5705_v26 }
 0x239   :  { %v4606_v47 = vadd.f32 -1.0, %v5707_v34  ;;  %v5709_v5 = vpop.eup %5708  ;;  %v3258_v31 = vsel %vm2618_vm8, %v8245_v18, %v4605_v0 }
 0x23a   :  { %v4604_v3 = vadd.f32 -1.0, %v5709_v5  ;;  %v3256_v21 = vsel %vm2616_vm10, %v8248_v19, %v4603_v57 }
 0x23b   :  { %v3259_v46 = vsel %vm2619_vm9, %v8253_v52, %v4606_v47 }
 0x23c   :  { %v5142_v40 = vpop.f32.mrb[116].mxu1  ;;  %v3363_v7 = vpack.c.bf16 %v3259_v46, %v3258_v31  ;;  %v3257_v2 = vsel %vm2617_vm11, %v8264_v8, %v4604_v3 }
 0x23d   :  { %v8311_v28 = vadd.f32 %v8285_v24, %v5142_v40  ;;  %v2269_v17 = vpop.f32.mrb[117].mxu1  ;;  %5261 = vmatmul.mubr.msk.bf16.gmra.mrb[104].mxu0 %vm242_vm0, %v3361_v13  ;;  %v3362_v48 = vpack.c.bf16 %v3257_v2, %v3256_v21 }
 0x23e   :  { %v8317_v58 = vadd.f32 %v8285_v24, %v2269_v17  ;;  %v5143_v55 = vpop.f32.mrb[118].mxu1 }
 0x23f   :  { %v2754_v10 = vmin.f32 %v8311_v28, 0.0  ;;  %v2272_v37 = vpop.f32.mrb[119].mxu1  ;;  %v5711_v43 = vpop.eup %5710  ;;  %v8324_v18 = vadd.f32 %v8285_v24, %v5143_v55  ;;  %5264 = vmatprep.mubr.msk.bf16.mxu0 %vm242_vm0, %v3362_v48  ;;  %vm2626_vm1 = vcmp.gt.f32.partialorder %v8311_v28, 0.0 }
 0x240   :  { %v2752_v16 = vmin.f32 %v8317_v58, 0.0  ;;  %v8327_v52 = vadd.f32 %v8285_v24, %v2272_v37  ;;  %v5713_v23 = vpop.eup %5712  ;;  %v4609_v1 = vadd.f32 -1.0, %v5711_v43  ;;  %vm2624_vm2 = vcmp.gt.f32.partialorder %v8317_v58, 0.0 }
 0x241   :  { %v2936_v33 = vmul.f32 1.442695, %v2754_v10  ;;  %v5715_v50 = vpop.eup %5714  ;;  %v4607_v44 = vadd.f32 -1.0, %v5713_v23  ;;  %v2755_v4 = vmin.f32 %v8324_v18, 0.0  ;;  %vm2627_vm3 = vcmp.gt.f32.partialorder %v8324_v18, 0.0 }
 0x242   :  { %v2932_v51 = vmul.f32 1.442695, %v2752_v16  ;;  %v5717_v61 = vpop.eup %5716  ;;  %v4610_v49 = vadd.f32 -1.0, %v5715_v50  ;;  %v2753_v25 = vmin.f32 %v8327_v52, 0.0  ;;  %v3262_v11 = vsel %vm2622_vm12, %v8273_v35, %v4609_v1 }
 0x243   :  { %5718 = vpow2.f32 %v2936_v33  ;;  %v4608_v19 = vadd.f32 -1.0, %v5717_v61  ;;  %v2938_v8 = vmul.f32 1.442695, %v2755_v4  ;;  %v3260_v12 = vsel %vm2620_vm13, %v8276_v59, %v4607_v44 }
 0x244   :  { %5720 = vpow2.f32 %v2932_v51  ;;  %v3263_v36 = vsel %vm2623_vm14, %v8288_v54, %v4610_v49  ;;  %v2934_v56 = vmul.f32 1.442695, %v2753_v25  ;;  %vm2625_vm4 = vcmp.gt.f32.partialorder %v8327_v52, 0.0 }
 0x245   :  { %5265 = vmatmul.mubr.msk.bf16.gmra.mrb[108].mxu0 %vm242_vm0, %v3363_v7  ;;  %v3365_v53 = vpack.c.bf16 %v3263_v36, %v3262_v11  ;;  %v3261_v30 = vsel %vm2621_vm15, %v8292_v9, %v4608_v19  ;;  %5722 = vpow2.f32 %v2938_v8 }
 0x246   :  { %v3364_v41 = vpack.c.bf16 %v3261_v30, %v3260_v12  ;;  %5724 = vpow2.f32 %v2934_v56 }
 0x248   :  { %5268 = vmatprep.mubr.msk.bf16.mxu0 %vm242_vm0, %v3364_v41 }
 0x24b   :  { %v5146_v38 = vpop.f32.mrb[120].mxu1 }
 0x24c   :  { %v8345_v6 = vadd.f32 %v8285_v24, %v5146_v38  ;;  %v2285_v35 = vpop.f32.mrb[121].mxu1 }
 0x24d   :  { %v5719_v27 = vpop.eup %5718  ;;  %5269 = vmatmul.mubr.msk.bf16.gmra.mrb[112].mxu0 %vm242_vm0, %v3365_v53  ;;  %v8349_v39 = vadd.f32 %v8285_v24, %v2285_v35  ;;  %v5147_v59 = vpop.f32.mrb[122].mxu1 }
 0x24e   :  { %v5721_v54 = vpop.eup %5720  ;;  %v2758_v9 = vmin.f32 %v8345_v6, 0.0  ;;  %v2297_v29 = vadd.f32 %v8285_v24, %v5147_v59  ;;  %v2288_v60 = vpop.f32.mrb[123].mxu1  ;;  %v4613_v62 = vadd.f32 -1.0, %v5719_v27  ;;  %vm2630_vm5 = vcmp.gt.f32.partialorder %v8345_v6, 0.0 }
 0x24f   :  { %v2756_v32 = vmin.f32 %v8349_v39, 0.0  ;;  %v2289_v63 = vadd.f32 %v8285_v24, %v2288_v60  ;;  %v5723_v22 = vpop.eup %5722  ;;  %v4611_v42 = vadd.f32 -1.0, %v5721_v54  ;;  %vm2628_vm6 = vcmp.gt.f32.partialorder %v8349_v39, 0.0 }
 0x250   :  { %v2944_v13 = vmul.f32 1.442695, %v2758_v9  ;;  %v2759_v45 = vmin.f32 %v2297_v29, 0.0  ;;  %v5725_v15 = vpop.eup %5724  ;;  %v4614_v20 = vadd.f32 -1.0, %v5723_v22  ;;  %v3266_v47 = vsel %vm2626_vm1, %v8311_v28, %v4613_v62 }
 0x251   :  { %v2940_v14 = vmul.f32 1.442695, %v2756_v32  ;;  %v2757_v26 = vmin.f32 %v2289_v63, 0.0  ;;  %v4612_v0 = vadd.f32 -1.0, %v5725_v15  ;;  %v3264_v17 = vsel %vm2624_vm2, %v8317_v58, %v4611_v42 }
 0x252   :  { %5726 = vpow2.f32 %v2944_v13  ;;  %v2946_v34 = vmul.f32 1.442695, %v2759_v45  ;;  %v3267_v40 = vsel %vm2627_vm3, %v8324_v18, %v4614_v20  ;;  %vm2631_vm7 = vcmp.gt.f32.partialorder %v2297_v29, 0.0 }
 0x253   :  { %5728 = vpow2.f32 %v2940_v14  ;;  %v2942_v57 = vmul.f32 1.442695, %v2757_v26  ;;  %v3367_v5 = vpack.c.bf16 %v3267_v40, %v3266_v47  ;;  %v3265_v31 = vsel %vm2625_vm4, %v8327_v52, %v4612_v0 }
 0x254   :  { %5730 = vpow2.f32 %v2946_v34  ;;  %v3366_v46 = vpack.c.bf16 %v3265_v31, %v3264_v17  ;;  %vm2629_vm8 = vcmp.gt.f32.partialorder %v2289_v63, 0.0 }
 0x255   :  { %5732 = vpow2.f32 %v2942_v57 }
 0x256   :  { %5272 = vmatprep.mubr.msk.bf16.mxu0 %vm242_vm0, %v3366_v46 }
 0x257   :  { %5273 = vmatmul.mubr.msk.bf16.gmra.mrb[116].mxu0 %vm242_vm0, %v3367_v5 }
 0x259   :  { %v5150_v55 = vpop.f32.mrb[124].mxu1 }
 0x25a   :  { %v8370_v28 = vadd.f32 %v8285_v24, %v5150_v55  ;;  %v2301_v7 = vpop.f32.mrb[125].mxu1 }
 0x25b   :  { %v8373_v3 = vadd.f32 %v8285_v24, %v2301_v7  ;;  %v5151_v10 = vpop.f32.mrb[126].mxu1 }
 0x25c   :  { %v5727_v58 = vpop.eup %5726  ;;  %v2762_v37 = vmin.f32 %v8370_v28, 0.0  ;;  %v8377_v43 = vadd.f32 %v8285_v24, %v5151_v10  ;;  %v2304_v16 = vpop.f32.mrb[127].mxu1  ;;  %vm2634_vm9 = vcmp.gt.f32.partialorder %v8370_v28, 0.0 }
 0x25d   :  { %v5729_v18 = vpop.eup %5728  ;;  %v4617_v52 = vadd.f32 -1.0, %v5727_v58  ;;  %v2760_v23 = vmin.f32 %v8373_v3, 0.0  ;;  %v8382_v21 = vadd.f32 %v8285_v24, %v2304_v16  ;;  %vm2632_vm10 = vcmp.gt.f32.partialorder %v8373_v3, 0.0 }
 0x25e   :  { %v5731_v2 = vpop.eup %5730  ;;  %v4615_v33 = vadd.f32 -1.0, %v5729_v18  ;;  %v2952_v48 = vmul.f32 1.442695, %v2762_v37  ;;  %v2763_v1 = vmin.f32 %v8377_v43, 0.0  ;;  %vm2635_vm11 = vcmp.gt.f32.partialorder %v8377_v43, 0.0 }
 0x25f   :  { %v5733_v51 = vpop.eup %5732  ;;  %v4618_v50 = vadd.f32 -1.0, %v5731_v2  ;;  %v2948_v44 = vmul.f32 1.442695, %v2760_v23  ;;  %v3270_v4 = vsel %vm2630_vm5, %v8345_v6, %v4617_v52  ;;  %v2761_v8 = vmin.f32 %v8382_v21, 0.0 }
 0x260   :  { %v4616_v61 = vadd.f32 -1.0, %v5733_v51  ;;  %5734 = vpow2.f32 %v2952_v48  ;;  %v2954_v49 = vmul.f32 1.442695, %v2763_v1  ;;  %v3268_v25 = vsel %vm2628_vm6, %v8349_v39, %v4615_v33 }
 0x261   :  { %v3271_v19 = vsel %vm2631_vm7, %v2297_v29, %v4618_v50  ;;  %5736 = vpow2.f32 %v2948_v44  ;;  %v2950_v41 = vmul.f32 1.442695, %v2761_v8  ;;  %vm2633_vm12 = vcmp.gt.f32.partialorder %v8382_v21, 0.0 }
 0x262   :  { %v3369_v36 = vpack.c.bf16 %v3271_v19, %v3270_v4  ;;  %v3269_v56 = vsel %vm2629_vm8, %v2289_v63, %v4616_v61  ;;  %5738 = vpow2.f32 %v2954_v49 }
 0x263   :  { %v3368_v30 = vpack.c.bf16 %v3269_v56, %v3268_v25  ;;  %5740 = vpow2.f32 %v2950_v41 }
 0x264   :  { %v5154_v11 = vpop.f32.mrb[128].mxu1 }
 0x265   :  { %v8390_v12 = vadd.f32 %v8285_v24, %v5154_v11  ;;  %v2317_v53 = vpop.f32.mrb[129].mxu1  ;;  %5276 = vmatprep.mubr.msk.bf16.mxu0 %vm242_vm0, %v3368_v30 }
 0x266   :  { %v8393_v38 = vadd.f32 %v8285_v24, %v2317_v53  ;;  %v5155_v27 = vpop.f32.mrb[130].mxu1  ;;  %5277 = vmatmul.mubr.msk.bf16.gmra.mrb[120].mxu0 %vm242_vm0, %v3369_v36 }
 0x267   :  { %v2766_v6 = vmin.f32 %v8390_v12, 0.0  ;;  %v8397_v35 = vadd.f32 %v8285_v24, %v5155_v27  ;;  %v2320_v54 = vpop.f32.mrb[131].mxu1  ;;  %vm2638_vm13 = vcmp.gt.f32.partialorder %v8390_v12, 0.0 }
 0x268   :  { %v2764_v39 = vmin.f32 %v8393_v38, 0.0  ;;  %v8401_v59 = vadd.f32 %v8285_v24, %v2320_v54  ;;  %vm2636_vm14 = vcmp.gt.f32.partialorder %v8393_v38, 0.0 }
 0x269   :  { %v2960_v9 = vmul.f32 1.442695, %v2766_v6  ;;  %v2767_v29 = vmin.f32 %v8397_v35, 0.0  ;;  %vm2639_vm15 = vcmp.gt.f32.partialorder %v8397_v35, 0.0 }
 0x26a   :  { %v2956_v60 = vmul.f32 1.442695, %v2764_v39  ;;  %v2765_v62 = vmin.f32 %v8401_v59, 0.0  ;;  %v5735_v42 = vpop.eup %5734  ;;  %vm2637_vm1 = vcmp.gt.f32.partialorder %v8401_v59, 0.0 }
 0x26b   :  { %5742 = vpow2.f32 %v2960_v9  ;;  %v2962_v32 = vmul.f32 1.442695, %v2767_v29  ;;  %v5737_v15 = vpop.eup %5736  ;;  %v4621_v20 = vadd.f32 -1.0, %v5735_v42 }
 0x26c   :  { %5744 = vpow2.f32 %v2956_v60  ;;  %v2958_v63 = vmul.f32 1.442695, %v2765_v62  ;;  %v5158_v22 = vpop.f32.mrb[132].mxu1  ;;  %v5739_v0 = vpop.eup %5738  ;;  %v4619_v5 = vadd.f32 -1.0, %v5737_v15 }
 0x26d   :  { %5746 = vpow2.f32 %v2962_v32  ;;  %v8408_v13 = vadd.f32 %v8285_v24, %v5158_v22  ;;  %v2333_v45 = vpop.f32.mrb[133].mxu1  ;;  %v4622_v57 = vadd.f32 -1.0, %v5739_v0  ;;  %v5741_v55 = vpop.eup %5740  ;;  %v3274_v7 = vsel %vm2634_vm9, %v8370_v28, %v4621_v20 }
 0x26e   :  { %5748 = vpow2.f32 %v2958_v63  ;;  %v8411_v14 = vadd.f32 %v8285_v24, %v2333_v45  ;;  %v5159_v26 = vpop.f32.mrb[134].mxu1  ;;  %v4620_v18 = vadd.f32 -1.0, %v5741_v55  ;;  %v3272_v28 = vsel %vm2632_vm10, %v8373_v3, %v4619_v5 }
 0x26f   :  { %v2770_v34 = vmin.f32 %v8408_v13, 0.0  ;;  %v8415_v47 = vadd.f32 %v8285_v24, %v5159_v26  ;;  %v2336_v40 = vpop.f32.mrb[135].mxu1  ;;  %v3275_v10 = vsel %vm2635_vm11, %v8377_v43, %v4622_v57  ;;  %vm2642_vm2 = vcmp.gt.f32.partialorder %v8408_v13, 0.0 }
 0x270   :  { %v2768_v17 = vmin.f32 %v8411_v14, 0.0  ;;  %v8425_v37 = vadd.f32 %v8285_v24, %v2336_v40  ;;  %v3371_v16 = vpack.c.bf16 %v3275_v10, %v3274_v7  ;;  %v3273_v43 = vsel %vm2633_vm12, %v8382_v21, %v4620_v18 }
 0x271   :  { %v2968_v31 = vmul.f32 1.442695, %v2770_v34  ;;  %v2771_v46 = vmin.f32 %v8415_v47, 0.0  ;;  %v3370_v50 = vpack.c.bf16 %v3273_v43, %v3272_v28  ;;  %vm2643_vm3 = vcmp.gt.f32.partialorder %v8415_v47, 0.0 }
 0x272   :  { %v2964_v58 = vmul.f32 1.442695, %v2768_v17  ;;  %v2769_v23 = vmin.f32 %v8425_v37, 0.0  ;;  %vm2640_vm4 = vcmp.gt.f32.partialorder %v8411_v14, 0.0  ;;  %vm2641_vm5 = vcmp.gt.f32.partialorder %v8425_v37, 0.0 }
 0x273   :  { %5750 = vpow2.f32 %v2968_v31  ;;  %v2970_v52 = vmul.f32 1.442695, %v2771_v46  ;;  %5280 = vmatprep.mubr.msk.bf16.mxu0 %vm242_vm0, %v3370_v50 }
 0x274   :  { %5752 = vpow2.f32 %v2964_v58  ;;  %v2966_v4 = vmul.f32 1.442695, %v2769_v23  ;;  %5281 = vmatmul.mubr.msk.bf16.gmra.mrb[124].mxu0 %vm242_vm0, %v3371_v16 }
 0x275   :  { %v5162_v2 = vpop.f32.mrb[136].mxu1  ;;  %v5743_v33 = vpop.eup %5742  ;;  %5754 = vpow2.f32 %v2970_v52 }
 0x276   :  { %v8435_v48 = vadd.f32 %v8285_v24, %v5162_v2  ;;  %v2349_v1 = vpop.f32.mrb[137].mxu1  ;;  %v5745_v51 = vpop.eup %5744  ;;  %v4625_v44 = vadd.f32 -1.0, %v5743_v33  ;;  %5756 = vpow2.f32 %v2966_v4 }
 0x277   :  { %v8438_v61 = vadd.f32 %v8285_v24, %v2349_v1  ;;  %v5163_v49 = vpop.f32.mrb[138].mxu1  ;;  %v5747_v25 = vpop.eup %5746  ;;  %v4623_v19 = vadd.f32 -1.0, %v5745_v51 }
 0x278   :  { %v2774_v3 = vmin.f32 %v8435_v48, 0.0  ;;  %v8443_v21 = vadd.f32 %v8285_v24, %v5163_v49  ;;  %v2352_v8 = vpop.f32.mrb[139].mxu1  ;;  %v5749_v11 = vpop.eup %5748  ;;  %v4626_v36 = vadd.f32 -1.0, %v5747_v25  ;;  %v3278_v56 = vsel %vm2638_vm13, %v8390_v12, %v4625_v44 }
 0x279   :  { %v4624_v53 = vadd.f32 -1.0, %v5749_v11  ;;  %v2772_v41 = vmin.f32 %v8438_v61, 0.0  ;;  %v3276_v27 = vsel %vm2636_vm14, %v8393_v38, %v4623_v19  ;;  %v8459_v39 = vadd.f32 %v8285_v24, %v2352_v8 }
 0x27a   :  { %v2976_v30 = vmul.f32 1.442695, %v2774_v3  ;;  %v3279_v6 = vsel %vm2639_vm15, %v8397_v35, %v4626_v36  ;;  %v2775_v54 = vmin.f32 %v8443_v21, 0.0  ;;  %vm2646_vm6 = vcmp.gt.f32.partialorder %v8435_v48, 0.0 }
 0x27b   :  { %v3373_v9 = vpack.c.bf16 %v3279_v6, %v3278_v56  ;;  %v3277_v12 = vsel %vm2637_vm1, %v8401_v59, %v4624_v53  ;;  %v2972_v29 = vmul.f32 1.442695, %v2772_v41  ;;  %v2773_v32 = vmin.f32 %v8459_v39, 0.0 }
 0x27c   :  { %5758 = vpow2.f32 %v2976_v30  ;;  %v3372_v60 = vpack.c.bf16 %v3277_v12, %v3276_v27  ;;  %v2978_v62 = vmul.f32 1.442695, %v2775_v54  ;;  %vm2644_vm7 = vcmp.gt.f32.partialorder %v8438_v61, 0.0 }
 0x27d   :  { %v5166_v63 = vpop.f32.mrb[140].mxu1  ;;  %v5751_v22 = vpop.eup %5750  ;;  %5760 = vpow2.f32 %v2972_v29  ;;  %v2974_v15 = vmul.f32 1.442695, %v2773_v32  ;;  %vm2647_vm8 = vcmp.gt.f32.partialorder %v8443_v21, 0.0  ;;  %vm2645_vm9 = vcmp.gt.f32.partialorder %v8459_v39, 0.0 }
 0x27e   :  { %v8464_v38 = vadd.f32 %v8285_v24, %v5166_v63  ;;  %v2365_v35 = vpop.f32.mrb[141].mxu1  ;;  %v5753_v42 = vpop.eup %5752  ;;  %v4629_v45 = vadd.f32 -1.0, %v5751_v22  ;;  %5762 = vpow2.f32 %v2978_v62  ;;  %5284 = vmatprep.mubr.msk.bf16.mxu0 %vm242_vm0, %v3372_v60 }
 0x27f   :  { %v8467_v20 = vadd.f32 %v8285_v24, %v2365_v35  ;;  %v5167_v59 = vpop.f32.mrb[142].mxu1  ;;  %v5755_v26 = vpop.eup %5754  ;;  %5764 = vpow2.f32 %v2974_v15  ;;  %v4627_v17 = vadd.f32 -1.0, %v5753_v42  ;;  %5285 = vmatmul.mubr.msk.bf16.gmra.mrb[128].mxu0 %vm242_vm0, %v3373_v9 }
 0x280   :  { %v2778_v0 = vmin.f32 %v8464_v38, 0.0  ;;  %v8472_v34 = vadd.f32 %v8285_v24, %v5167_v59  ;;  %v2368_v40 = vpop.f32.mrb[143].mxu1  ;;  %v4630_v57 = vadd.f32 -1.0, %v5755_v26  ;;  %v5757_v46 = vpop.eup %5756  ;;  %v3282_v55 = vsel %vm2642_vm2, %v8408_v13, %v4629_v45 }
 0x281   :  { %v2776_v31 = vmin.f32 %v8467_v20, 0.0  ;;  %v8482_v58 = vadd.f32 %v8285_v24, %v2368_v40  ;;  %v4628_v18 = vadd.f32 -1.0, %v5757_v46  ;;  %vm2650_vm10 = vcmp.gt.f32.partialorder %v8464_v38, 0.0 }
 0x282   :  { %v2984_v5 = vmul.f32 1.442695, %v2778_v0  ;;  %v3283_v7 = vsel %vm2643_vm3, %v8415_v47, %v4630_v57  ;;  %v2779_v10 = vmin.f32 %v8472_v34, 0.0  ;;  %v3280_v47 = vsel %vm2640_vm4, %v8411_v14, %v4627_v17 }
 0x283   :  { %v3375_v16 = vpack.c.bf16 %v3283_v7, %v3282_v55  ;;  %v2980_v52 = vmul.f32 1.442695, %v2776_v31  ;;  %v2777_v2 = vmin.f32 %v8482_v58, 0.0  ;;  %v3281_v28 = vsel %vm2641_vm5, %v8425_v37, %v4628_v18 }
 0x284   :  { %5766 = vpow2.f32 %v2984_v5  ;;  %v2986_v23 = vmul.f32 1.442695, %v2779_v10  ;;  %v3374_v51 = vpack.c.bf16 %v3281_v28, %v3280_v47  ;;  %vm2648_vm11 = vcmp.gt.f32.partialorder %v8467_v20, 0.0 }
 0x285   :  { %v5170_v33 = vpop.f32.mrb[144].mxu1  ;;  %5768 = vpow2.f32 %v2980_v52  ;;  %v2982_v44 = vmul.f32 1.442695, %v2777_v2  ;;  %vm2651_vm12 = vcmp.gt.f32.partialorder %v8472_v34, 0.0  ;;  %vm2649_vm13 = vcmp.gt.f32.partialorder %v8482_v58, 0.0 }
 0x286   :  { %v5759_v13 = vpop.eup %5758  ;;  %v8490_v43 = vadd.f32 %v8285_v24, %v5170_v33  ;;  %v2381_v1 = vpop.f32.mrb[145].mxu1  ;;  %5770 = vpow2.f32 %v2986_v23  ;;  %5288 = vmatprep.mubr.msk.bf16.mxu0 %vm242_vm0, %v3374_v51 }
 0x287   :  { %v4633_v50 = vadd.f32 -1.0, %v5759_v13  ;;  %v5171_v4 = vpop.f32.mrb[146].mxu1  ;;  %v5761_v49 = vpop.eup %5760  ;;  %v8494_v19 = vadd.f32 %v8285_v24, %v2381_v1  ;;  %5772 = vpow2.f32 %v2982_v44  ;;  %5289 = vmatmul.mubr.msk.bf16.gmra.mrb[132].mxu0 %vm242_vm0, %v3375_v16 }
 0x288   :  { %v2782_v25 = vmin.f32 %v8490_v43, 0.0  ;;  %v8497_v14 = vadd.f32 %v8285_v24, %v5171_v4  ;;  %v2384_v37 = vpop.f32.mrb[147].mxu1  ;;  %v5763_v3 = vpop.eup %5762  ;;  %v4631_v11 = vadd.f32 -1.0, %v5761_v49  ;;  %vm2654_vm14 = vcmp.gt.f32.partialorder %v8490_v43, 0.0 }
 0x289   :  { %v8502_v8 = vadd.f32 %v8285_v24, %v2384_v37  ;;  %v4634_v36 = vadd.f32 -1.0, %v5763_v3  ;;  %v2780_v53 = vmin.f32 %v8494_v19, 0.0  ;;  %v5765_v30 = vpop.eup %5764  ;;  %v3286_v41 = vsel %vm2646_vm6, %v8435_v48, %v4633_v50 }
 0x28a   :  { %v2992_v56 = vmul.f32 1.442695, %v2782_v25  ;;  %v2783_v27 = vmin.f32 %v8497_v14, 0.0  ;;  %v4632_v54 = vadd.f32 -1.0, %v5765_v30  ;;  %v3284_v48 = vsel %vm2644_vm7, %v8438_v61, %v4631_v11 }
 0x28b   :  { %v3287_v6 = vsel %vm2647_vm8, %v8443_v21, %v4634_v36  ;;  %v2988_v9 = vmul.f32 1.442695, %v2780_v53  ;;  %v2781_v60 = vmin.f32 %v8502_v8, 0.0  ;;  %vm2652_vm15 = vcmp.gt.f32.partialorder %v8494_v19, 0.0 }
 0x28c   :  { %5774 = vpow2.f32 %v2992_v56  ;;  %v3377_v12 = vpack.c.bf16 %v3287_v6, %v3286_v41  ;;  %v2994_v29 = vmul.f32 1.442695, %v2783_v27  ;;  %v3285_v63 = vsel %vm2645_vm9, %v8459_v39, %v4632_v54 }
 0x28d   :  { %v5174_v62 = vpop.f32.mrb[148].mxu1  ;;  %5776 = vpow2.f32 %v2988_v9  ;;  %v3376_v35 = vpack.c.bf16 %v3285_v63, %v3284_v48  ;;  %v2990_v45 = vmul.f32 1.442695, %v2781_v60  ;;  %vm2655_vm1 = vcmp.gt.f32.partialorder %v8497_v14, 0.0 }
 0x28e   :  { %v5767_v32 = vpop.eup %5766  ;;  %v8516_v22 = vadd.f32 %v8285_v24, %v5174_v62  ;;  %v2397_v21 = vpop.f32.mrb[149].mxu1  ;;  %5778 = vpow2.f32 %v2994_v29  ;;  %vm2653_vm2 = vcmp.gt.f32.partialorder %v8502_v8, 0.0 }
 0x28f   :  { %v4637_v42 = vadd.f32 -1.0, %v5767_v32  ;;  %v5175_v15 = vpop.f32.mrb[150].mxu1  ;;  %v5769_v59 = vpop.eup %5768  ;;  %v8520_v0 = vadd.f32 %v8285_v24, %v2397_v21  ;;  %5780 = vpow2.f32 %v2990_v45  ;;  %5292 = vmatprep.mubr.msk.bf16.mxu0 %vm242_vm0, %v3376_v35 }
 0x290   :  { %v2786_v26 = vmin.f32 %v8516_v22, 0.0  ;;  %v8523_v61 = vadd.f32 %v8285_v24, %v5175_v15  ;;  %v2400_v39 = vpop.f32.mrb[151].mxu1  ;;  %v5771_v40 = vpop.eup %5770  ;;  %v4635_v17 = vadd.f32 -1.0, %v5769_v59  ;;  %5293 = vmatmul.mubr.msk.bf16.gmra.mrb[136].mxu0 %vm242_vm0, %v3377_v12  ;;  %vm2658_vm3 = vcmp.gt.f32.partialorder %v8516_v22, 0.0 }
 0x291   :  { %v8528_v57 = vadd.f32 %v8285_v24, %v2400_v39  ;;  %v4638_v5 = vadd.f32 -1.0, %v5771_v40  ;;  %v2784_v46 = vmin.f32 %v8520_v0, 0.0  ;;  %v5773_v55 = vpop.eup %5772  ;;  %v3290_v7 = vsel %vm2650_vm10, %v8464_v38, %v4637_v42 }
 0x292   :  { %v3000_v31 = vmul.f32 1.442695, %v2786_v26  ;;  %v2787_v10 = vmin.f32 %v8523_v61, 0.0  ;;  %v4636_v18 = vadd.f32 -1.0, %v5773_v55  ;;  %v3288_v38 = vsel %vm2648_vm11, %v8467_v20, %v4635_v17 }
 0x293   :  { %v3291_v16 = vsel %vm2651_vm12, %v8472_v34, %v4638_v5  ;;  %v2996_v52 = vmul.f32 1.442695, %v2784_v46  ;;  %v2785_v33 = vmin.f32 %v8528_v57, 0.0  ;;  %vm2656_vm4 = vcmp.gt.f32.partialorder %v8520_v0, 0.0 }
 0x294   :  { %5782 = vpow2.f32 %v3000_v31  ;;  %v3379_v23 = vpack.c.bf16 %v3291_v16, %v3290_v7  ;;  %v3002_v2 = vmul.f32 1.442695, %v2787_v10  ;;  %v3289_v28 = vsel %vm2649_vm13, %v8482_v58, %v4636_v18 }
 0x295   :  { %v5178_v13 = vpop.f32.mrb[152].mxu1  ;;  %5784 = vpow2.f32 %v2996_v52  ;;  %v3378_v51 = vpack.c.bf16 %v3289_v28, %v3288_v38  ;;  %v2998_v44 = vmul.f32 1.442695, %v2785_v33  ;;  %vm2659_vm5 = vcmp.gt.f32.partialorder %v8523_v61, 0.0 }
 0x296   :  { %v5775_v47 = vpop.eup %5774  ;;  %v8542_v1 = vadd.f32 %v8285_v24, %v5178_v13  ;;  %v2413_v34 = vpop.f32.mrb[153].mxu1  ;;  %5786 = vpow2.f32 %v3002_v2  ;;  %vm2657_vm6 = vcmp.gt.f32.partialorder %v8528_v57, 0.0 }
 0x297   :  { %v4641_v50 = vadd.f32 -1.0, %v5775_v47  ;;  %v5179_v4 = vpop.f32.mrb[154].mxu1  ;;  %v5777_v49 = vpop.eup %5776  ;;  %v8546_v37 = vadd.f32 %v8285_v24, %v2413_v34  ;;  %5788 = vpow2.f32 %v2998_v44  ;;  %5296 = vmatprep.mubr.msk.bf16.mxu0 %vm242_vm0, %v3378_v51 }
 0x298   :  { %v2790_v25 = vmin.f32 %v8542_v1, 0.0  ;;  %v8549_v20 = vadd.f32 %v8285_v24, %v5179_v4  ;;  %v2416_v58 = vpop.f32.mrb[155].mxu1  ;;  %v5779_v3 = vpop.eup %5778  ;;  %v4639_v36 = vadd.f32 -1.0, %v5777_v49  ;;  %5297 = vmatmul.mubr.msk.bf16.gmra.mrb[140].mxu0 %vm242_vm0, %v3379_v23  ;;  %vm2662_vm7 = vcmp.gt.f32.partialorder %v8542_v1, 0.0 }
 0x299   :  { %v8554_v11 = vadd.f32 %v8285_v24, %v2416_v58  ;;  %v4642_v56 = vadd.f32 -1.0, %v5779_v3  ;;  %v2788_v30 = vmin.f32 %v8546_v37, 0.0  ;;  %v5781_v41 = vpop.eup %5780  ;;  %v3294_v27 = vsel %vm2654_vm14, %v8490_v43, %v4641_v50 }
 0x29a   :  { %v3008_v53 = vmul.f32 1.442695, %v2790_v25  ;;  %v2791_v6 = vmin.f32 %v8549_v20, 0.0  ;;  %v4640_v9 = vadd.f32 -1.0, %v5781_v41  ;;  %v3292_v43 = vsel %vm2652_vm15, %v8494_v19, %v4639_v36 }
 0x29b   :  { %v3295_v54 = vsel %vm2655_vm1, %v8497_v14, %v4642_v56  ;;  %v3004_v12 = vmul.f32 1.442695, %v2788_v30  ;;  %v2789_v62 = vmin.f32 %v8554_v11, 0.0  ;;  %vm2660_vm8 = vcmp.gt.f32.partialorder %v8546_v37, 0.0 }
 0x29c   :  { %5790 = vpow2.f32 %v3008_v53  ;;  %v3381_v29 = vpack.c.bf16 %v3295_v54, %v3294_v27  ;;  %v3010_v60 = vmul.f32 1.442695, %v2791_v6  ;;  %v3293_v63 = vsel %vm2653_vm2, %v8502_v8, %v4640_v9 }
 0x29d   :  { %v5182_v32 = vpop.f32.mrb[156].mxu1  ;;  %5792 = vpow2.f32 %v3004_v12  ;;  %v3380_v35 = vpack.c.bf16 %v3293_v63, %v3292_v43  ;;  %v3006_v45 = vmul.f32 1.442695, %v2789_v62  ;;  %vm2663_vm9 = vcmp.gt.f32.partialorder %v8549_v20, 0.0 }
 0x29e   :  { %v5783_v48 = vpop.eup %5782  ;;  %v8568_v21 = vadd.f32 %v8285_v24, %v5182_v32  ;;  %v2429_v14 = vpop.f32.mrb[157].mxu1  ;;  %5794 = vpow2.f32 %v3010_v60  ;;  %vm2661_vm10 = vcmp.gt.f32.partialorder %v8554_v11, 0.0 }
 0x29f   :  { %v4645_v42 = vadd.f32 -1.0, %v5783_v48  ;;  %v5183_v15 = vpop.f32.mrb[158].mxu1  ;;  %v5785_v59 = vpop.eup %5784  ;;  %v8572_v39 = vadd.f32 %v8285_v24, %v2429_v14  ;;  %5796 = vpow2.f32 %v3006_v45  ;;  %5300 = vmatprep.mubr.msk.bf16.mxu0 %vm242_vm0, %v3380_v35 }
 0x2a0   :  { %v2794_v26 = vmin.f32 %v8568_v21, 0.0  ;;  %v8575_v19 = vadd.f32 %v8285_v24, %v5183_v15  ;;  %v2432_v8 = vpop.f32.mrb[159].mxu1  ;;  %v5787_v40 = vpop.eup %5786  ;;  %v4643_v5 = vadd.f32 -1.0, %v5785_v59  ;;  %5301 = vmatmul.mubr.msk.bf16.gmra.mrb[144].mxu0 %vm242_vm0, %v3381_v29  ;;  %vm2666_vm11 = vcmp.gt.f32.partialorder %v8568_v21, 0.0 }
 0x2a1   :  { %v8580_v17 = vadd.f32 %v8285_v24, %v2432_v8  ;;  %v4646_v31 = vadd.f32 -1.0, %v5787_v40  ;;  %v2792_v55 = vmin.f32 %v8572_v39, 0.0  ;;  %v5789_v7 = vpop.eup %5788  ;;  %v3298_v10 = vsel %vm2658_vm3, %v8516_v22, %v4645_v42  ;;  %v8626_v8 = vld [vmem:[%s9535_s4] ss:$0 sm:$0xff] }
 0x2a2   :  { %v3016_v46 = vmul.f32 1.442695, %v2794_v26  ;;  %v2795_v16 = vmin.f32 %v8575_v19, 0.0  ;;  %v4644_v52 = vadd.f32 -1.0, %v5789_v7  ;;  %v3296_v22 = vsel %vm2656_vm4, %v8520_v0, %v4643_v5 }
 0x2a3   :  { %v3299_v18 = vsel %vm2659_vm5, %v8523_v61, %v4646_v31  ;;  %v3012_v23 = vmul.f32 1.442695, %v2792_v55  ;;  %v2793_v13 = vmin.f32 %v8580_v17, 0.0  ;;  %vm2664_vm12 = vcmp.gt.f32.partialorder %v8572_v39, 0.0 }
 0x2a4   :  { %5798 = vpow2.f32 %v3016_v46  ;;  %v3383_v2 = vpack.c.bf16 %v3299_v18, %v3298_v10  ;;  %v3018_v33 = vmul.f32 1.442695, %v2795_v16  ;;  %v3297_v28 = vsel %vm2657_vm6, %v8528_v57, %v4644_v52 }
 0x2a5   :  { %v5186_v47 = vpop.f32.mrb[160].mxu1  ;;  %5800 = vpow2.f32 %v3012_v23  ;;  %v3382_v51 = vpack.c.bf16 %v3297_v28, %v3296_v22  ;;  %v3014_v44 = vmul.f32 1.442695, %v2793_v13  ;;  %vm2667_vm13 = vcmp.gt.f32.partialorder %v8575_v19, 0.0 }
 0x2a6   :  { %v5791_v38 = vpop.eup %5790  ;;  %v8594_v34 = vadd.f32 %v8285_v24, %v5186_v47  ;;  %v2445_v61 = vpop.f32.mrb[161].mxu1  ;;  %5802 = vpow2.f32 %v3018_v33  ;;  %vm2665_vm14 = vcmp.gt.f32.partialorder %v8580_v17, 0.0  ;;  %vm4164_vm3 = vcmask 162816  }
 0x2a7   :  { %v4649_v50 = vadd.f32 -1.0, %v5791_v38  ;;  %v5187_v4 = vpop.f32.mrb[162].mxu1  ;;  %v5793_v49 = vpop.eup %5792  ;;  %v8598_v58 = vadd.f32 %v8285_v24, %v2445_v61  ;;  %5804 = vpow2.f32 %v3014_v44  ;;  %5304 = vmatprep.mubr.msk.bf16.mxu0 %vm242_vm0, %v3382_v51 }
 0x2a8   :  { %v2798_v25 = vmin.f32 %v8594_v34, 0.0  ;;  %v8601_v0 = vadd.f32 %v8285_v24, %v5187_v4  ;;  %v2448_v57 = vpop.f32.mrb[163].mxu1  ;;  %v5795_v3 = vpop.eup %5794  ;;  %v4647_v56 = vadd.f32 -1.0, %v5793_v49  ;;  %5305 = vmatmul.mubr.msk.bf16.gmra.mrb[148].mxu0 %vm242_vm0, %v3383_v2  ;;  %vm2670_vm15 = vcmp.gt.f32.partialorder %v8594_v34, 0.0 }
 0x2a9   :  { %v8606_v36 = vadd.f32 %v8285_v24, %v2448_v57  ;;  %v4650_v53 = vadd.f32 -1.0, %v5795_v3  ;;  %v2796_v41 = vmin.f32 %v8598_v58, 0.0  ;;  %v5797_v27 = vpop.eup %5796  ;;  %v3302_v6 = vsel %vm2662_vm7, %v8542_v1, %v4649_v50 }
 0x2aa   :  { %v3024_v30 = vmul.f32 1.442695, %v2798_v25  ;;  %v2799_v54 = vmin.f32 %v8601_v0, 0.0  ;;  %v4648_v12 = vadd.f32 -1.0, %v5797_v27  ;;  %v3300_v1 = vsel %vm2660_vm8, %v8546_v37, %v4647_v56 }
 0x2ab   :  { %v3303_v9 = vsel %vm2663_vm9, %v8549_v20, %v4650_v53  ;;  %v3020_v29 = vmul.f32 1.442695, %v2796_v41  ;;  %v2797_v32 = vmin.f32 %v8606_v36, 0.0  ;;  %vm2668_vm1 = vcmp.gt.f32.partialorder %v8598_v58, 0.0 }
 0x2ac   :  { %5806 = vpow2.f32 %v3024_v30  ;;  %v3385_v60 = vpack.c.bf16 %v3303_v9, %v3302_v6  ;;  %v3026_v62 = vmul.f32 1.442695, %v2799_v54  ;;  %v3301_v63 = vsel %vm2661_vm10, %v8554_v11, %v4648_v12 }
 0x2ad   :  { %v5190_v48 = vpop.f32.mrb[164].mxu1  ;;  %5808 = vpow2.f32 %v3020_v29  ;;  %v3384_v35 = vpack.c.bf16 %v3301_v63, %v3300_v1  ;;  %v3022_v45 = vmul.f32 1.442695, %v2797_v32  ;;  %vm2671_vm2 = vcmp.gt.f32.partialorder %v8601_v0, 0.0 }
 0x2ae   :  { %v5799_v43 = vpop.eup %5798  ;;  %v8620_v14 = vadd.f32 %v8285_v24, %v5190_v48  ;;  %v2461_v20 = vpop.f32.mrb[165].mxu1  ;;  %5810 = vpow2.f32 %v3026_v62  ;;  %vm2669_vm4 = vcmp.gt.f32.partialorder %v8606_v36, 0.0 }
 0x2af   :  { %v4653_v42 = vadd.f32 -1.0, %v5799_v43  ;;  %v5191_v15 = vpop.f32.mrb[166].mxu1  ;;  %v5801_v59 = vpop.eup %5800  ;;  %v8629_v37 = vadd.f32 %v8626_v8, %v2461_v20  ;;  %5812 = vpow2.f32 %v3022_v45  ;;  %5308 = vmatprep.mubr.msk.bf16.mxu0 %vm242_vm0, %v3384_v35 }
 0x2b0   :  { %v2802_v26 = vmin.f32 %v8620_v14, 0.0  ;;  %v8632_v24 = vadd.f32 %v8626_v8, %v5191_v15  ;;  %v2464_v11 = vpop.f32.mrb[167].mxu1  ;;  %v5803_v40 = vpop.eup %5802  ;;  %v4651_v31 = vadd.f32 -1.0, %v5801_v59  ;;  %5309 = vmatmul.mubr.msk.bf16.gmra.mrb[152].mxu0 %vm242_vm0, %v3385_v60  ;;  %vm2674_vm5 = vcmp.gt.f32.partialorder %v8620_v14, 0.0 }
 0x2b1   :  { %v8637_v5 = vadd.f32 %v8626_v8, %v2464_v11  ;;  %v4654_v46 = vadd.f32 -1.0, %v5803_v40  ;;  %v2800_v7 = vmin.f32 %v8629_v37, 0.0  ;;  %v5805_v10 = vpop.eup %5804  ;;  %v3306_v16 = vsel %vm2666_vm11, %v8568_v21, %v4653_v42 }
 0x2b2   :  { %v3032_v55 = vmul.f32 1.442695, %v2802_v26  ;;  %v2803_v18 = vmin.f32 %v8632_v24, 0.0  ;;  %v4652_v23 = vadd.f32 -1.0, %v5805_v10  ;;  %v3304_v21 = vsel %vm2664_vm12, %v8572_v39, %v4651_v31  ;;  %v8695_v10 = vld [vmem:[%s9536_s6] ss:$0 sm:$0xff] }
 0x2b3   :  { %v3307_v52 = vsel %vm2667_vm13, %v8575_v19, %v4654_v46  ;;  %v3028_v2 = vmul.f32 1.442695, %v2800_v7  ;;  %v2801_v47 = vmin.f32 %v8637_v5, 0.0  ;;  %vm2672_vm6 = vcmp.gt.f32.partialorder %v8629_v37, 0.0 }
 0x2b4   :  { %5814 = vpow2.f32 %v3032_v55  ;;  %v3387_v33 = vpack.c.bf16 %v3307_v52, %v3306_v16  ;;  %v3034_v13 = vmul.f32 1.442695, %v2803_v18  ;;  %v3305_v28 = vsel %vm2665_vm14, %v8580_v17, %v4652_v23 }
 0x2b5   :  { %v5194_v38 = vpop.f32.mrb[168].mxu1  ;;  %5816 = vpow2.f32 %v3028_v2  ;;  %v3386_v51 = vpack.c.bf16 %v3305_v28, %v3304_v21  ;;  %v3030_v44 = vmul.f32 1.442695, %v2801_v47  ;;  %vm2675_vm7 = vcmp.gt.f32.partialorder %v8632_v24, 0.0 }
 0x2b6   :  { %v5807_v22 = vpop.eup %5806  ;;  %v8651_v61 = vadd.f32 %v8626_v8, %v5194_v38  ;;  %v2477_v19 = vpop.f32.mrb[169].mxu1  ;;  %5818 = vpow2.f32 %v3034_v13  ;;  %vm2673_vm8 = vcmp.gt.f32.partialorder %v8637_v5, 0.0 }
 0x2b7   :  { %v4657_v50 = vadd.f32 -1.0, %v5807_v22  ;;  %v5195_v4 = vpop.f32.mrb[170].mxu1  ;;  %v5809_v49 = vpop.eup %5808  ;;  %v8655_v57 = vadd.f32 %v8626_v8, %v2477_v19  ;;  %5820 = vpow2.f32 %v3030_v44  ;;  %5312 = vmatprep.mubr.msk.bf16.mxu0 %vm242_vm0, %v3386_v51 }
 0x2b8   :  { %v2806_v25 = vmin.f32 %v8651_v61, 0.0  ;;  %v8658_v39 = vadd.f32 %v8626_v8, %v5195_v4  ;;  %v2480_v17 = vpop.f32.mrb[171].mxu1  ;;  %v5811_v3 = vpop.eup %5810  ;;  %v4655_v53 = vadd.f32 -1.0, %v5809_v49  ;;  %5313 = vmatmul.mubr.msk.bf16.gmra.mrb[156].mxu0 %vm242_vm0, %v3387_v33  ;;  %vm2678_vm9 = vcmp.gt.f32.partialorder %v8651_v61, 0.0 }
 0x2b9   :  { %v8663_v56 = vadd.f32 %v8626_v8, %v2480_v17  ;;  %v4658_v30 = vadd.f32 -1.0, %v5811_v3  ;;  %v2804_v27 = vmin.f32 %v8655_v57, 0.0  ;;  %v5813_v6 = vpop.eup %5812  ;;  %v3310_v54 = vsel %vm2670_vm15, %v8594_v34, %v4657_v50 }
 0x2ba   :  { %v3040_v41 = vmul.f32 1.442695, %v2806_v25  ;;  %v2807_v9 = vmin.f32 %v8658_v39, 0.0  ;;  %v4656_v29 = vadd.f32 -1.0, %v5813_v6  ;;  %v3308_v1 = vsel %vm2668_vm1, %v8598_v58, %v4655_v53 }
 0x2bb   :  { %v3311_v12 = vsel %vm2671_vm2, %v8601_v0, %v4658_v30  ;;  %v3036_v60 = vmul.f32 1.442695, %v2804_v27  ;;  %v2805_v48 = vmin.f32 %v8663_v56, 0.0  ;;  %v5222_v59 = vpop.f32.mrb[64].mxu0  ;;  %vm2676_vm10 = vcmp.gt.f32.partialorder %v8655_v57, 0.0 }
 0x2bc   :  { %5822 = vpow2.f32 %v3040_v41  ;;  %v3389_v62 = vpack.c.bf16 %v3311_v12, %v3310_v54  ;;  %v3042_v32 = vmul.f32 1.442695, %v2807_v9  ;;  %v3309_v63 = vsel %vm2669_vm4, %v8606_v36, %v4656_v29  ;;  %v3653_v31 = vpop.f32.mrb[65].mxu0 }
 0x2bd   :  { %v5198_v43 = vpop.f32.mrb[172].mxu1  ;;  %5824 = vpow2.f32 %v3036_v60  ;;  %v3388_v35 = vpack.c.bf16 %v3309_v63, %v3308_v1  ;;  %v3038_v45 = vmul.f32 1.442695, %v2805_v48  ;;  %v8697_v16 = vpop.f32.mrb[66].mxu0  ;;  %v3662_v4 = vadd.f32 %v5222_v59, %v8695_v10 }
 0x2be   :  { %v5815_v34 = vpop.eup %5814  ;;  %v8677_v20 = vadd.f32 %v8626_v8, %v5198_v43  ;;  %v2493_v0 = vpop.f32.mrb[173].mxu1  ;;  %5826 = vpow2.f32 %v3042_v32  ;;  %vm2679_vm11 = vcmp.gt.f32.partialorder %v8658_v39, 0.0  ;;  %vm2677_vm12 = vcmp.gt.f32.partialorder %v8663_v56, 0.0 }
 0x2bf   :  { %v4661_v42 = vadd.f32 -1.0, %v5815_v34  ;;  %v5199_v15 = vpop.f32.mrb[174].mxu1  ;;  %v5817_v26 = vpop.eup %5816  ;;  %v8682_v58 = vadd.f32 %v8626_v8, %v2493_v0  ;;  %5828 = vpow2.f32 %v3038_v45  ;;  %5316 = vmatprep.mubr.msk.bf16.mxu0 %vm242_vm0, %v3388_v35  ;;  %4167 = vst.msk [vmem:[%s9537_s7 + $0x10] sm:$0xff] %vm4164_vm3, %v3662_v4 }
 0x2c0   :  { %v2810_v11 = vmin.f32 %v8677_v20, 0.0  ;;  %v8685_v36 = vadd.f32 %v8626_v8, %v5199_v15  ;;  %v2496_v40 = vpop.f32.mrb[175].mxu1  ;;  %v5819_v46 = vpop.eup %5818  ;;  %v4659_v55 = vadd.f32 -1.0, %v5817_v26  ;;  %5317 = vmatmul.mubr.msk.bf16.gmra.mrb[160].mxu0 %vm242_vm0, %v3389_v62  ;;  %vm2682_vm13 = vcmp.gt.f32.partialorder %v8677_v20, 0.0 }
 0x2c1   :  { %v8690_v7 = vadd.f32 %v8626_v8, %v2496_v40  ;;  %v4662_v18 = vadd.f32 -1.0, %v5819_v46  ;;  %v2808_v23 = vmin.f32 %v8682_v58, 0.0  ;;  %v8702_v2 = vpop.f32.mrb[67].mxu0  ;;  %v5821_v33 = vpop.eup %5820  ;;  %v3314_v13 = vsel %vm2674_vm5, %v8620_v14, %v4661_v42 }
 0x2c2   :  { %v3048_v52 = vmul.f32 1.442695, %v2810_v11  ;;  %v3312_v47 = vsel %vm2672_vm6, %v8629_v37, %v4659_v55  ;;  %v2811_v38 = vmin.f32 %v8685_v36, 0.0  ;;  %v4660_v21 = vadd.f32 -1.0, %v5821_v33 }
 0x2c3   :  { %v3315_v22 = vsel %vm2675_vm7, %v8632_v24, %v4662_v18  ;;  %v3044_v28 = vmul.f32 1.442695, %v2808_v23  ;;  %v2809_v50 = vmin.f32 %v8690_v7, 0.0  ;;  %v3654_v24 = vadd.f32 %v8695_v10, %v3653_v31  ;;  %v8722_v41 = vpop.f32.mrb[68].mxu0 }
 0x2c4   :  { %5830 = vpow2.f32 %v3048_v52  ;;  %v3391_v19 = vpack.c.bf16 %v3315_v22, %v3314_v13  ;;  %v3050_v51 = vmul.f32 1.442695, %v2811_v38  ;;  %v3313_v14 = vsel %vm2673_vm8, %v8637_v5, %v4660_v21  ;;  %v8736_v12 = vpop.f32.mrb[69].mxu0 }
 0x2c5   :  { %v5202_v44 = vpop.f32.mrb[176].mxu1  ;;  %5832 = vpow2.f32 %v3044_v28  ;;  %v3390_v17 = vpack.c.bf16 %v3313_v14, %v3312_v47  ;;  %v3046_v53 = vmul.f32 1.442695, %v2809_v50  ;;  %4165 = vst.msk [vmem:[%s9537_s7] sm:$0xff] %vm4164_vm3, %v3654_v24  ;;  %v8743_v32 = vpop.f32.mrb[70].mxu0  ;;  %v3665_v46 = vadd.f32 %v8697_v16, %v8695_v10 }
 0x2c6   :  { %v5823_v49 = vpop.eup %5822  ;;  %v8715_v37 = vadd.f32 %v8626_v8, %v5202_v44  ;;  %v2509_v25 = vpop.f32.mrb[177].mxu1  ;;  %5834 = vpow2.f32 %v3050_v51  ;;  %vm2680_vm14 = vcmp.gt.f32.partialorder %v8682_v58, 0.0  ;;  %vm2683_vm15 = vcmp.gt.f32.partialorder %v8685_v36, 0.0 }
 0x2c7   :  { %v4665_v3 = vadd.f32 -1.0, %v5823_v49  ;;  %v5203_v30 = vpop.f32.mrb[178].mxu1  ;;  %v5825_v5 = vpop.eup %5824  ;;  %v8727_v6 = vadd.f32 %v8626_v8, %v2509_v25  ;;  %5836 = vpow2.f32 %v3046_v53  ;;  %5320 = vmatprep.mubr.msk.bf16.mxu0 %vm242_vm0, %v3390_v17  ;;  %4168 = vst.msk [vmem:[%s9537_s7 + $0x18] sm:$0xff] %vm4164_vm3, %v3665_v46  ;;  %vm2681_vm1 = vcmp.gt.f32.partialorder %v8690_v7, 0.0 }
 0x2c8   :  { %v2814_v27 = vmin.f32 %v8715_v37, 0.0  ;;  %v8730_v54 = vadd.f32 %v8626_v8, %v5203_v30  ;;  %v2512_v9 = vpop.f32.mrb[179].mxu1  ;;  %v5827_v29 = vpop.eup %5826  ;;  %v4663_v60 = vadd.f32 -1.0, %v5825_v5  ;;  %5321 = vmatmul.mubr.msk.bf16.gmra.mrb[164].mxu0 %vm242_vm0, %v3391_v19  ;;  %vm2686_vm2 = vcmp.gt.f32.partialorder %v8715_v37, 0.0 }
 0x2c9   :  { %v8741_v62 = vadd.f32 %v8626_v8, %v2512_v9  ;;  %v4666_v48 = vadd.f32 -1.0, %v5827_v29  ;;  %v2812_v34 = vmin.f32 %v8727_v6, 0.0  ;;  %v8748_v1 = vpop.f32.mrb[71].mxu0  ;;  %v5829_v63 = vpop.eup %5828  ;;  %v3318_v0 = vsel %vm2678_vm9, %v8651_v61, %v4665_v3 }
 0x2ca   :  { %v3056_v43 = vmul.f32 1.442695, %v2814_v27  ;;  %v3316_v35 = vsel %vm2676_vm10, %v8655_v57, %v4663_v60  ;;  %v2815_v42 = vmin.f32 %v8730_v54, 0.0  ;;  %v4664_v15 = vadd.f32 -1.0, %v5829_v63 }
 0x2cb   :  { %v3319_v45 = vsel %vm2679_vm11, %v8658_v39, %v4666_v48  ;;  %v3052_v59 = vmul.f32 1.442695, %v2812_v34  ;;  %v2813_v40 = vmin.f32 %v8741_v62, 0.0  ;;  %v3657_v39 = vadd.f32 %v8695_v10, %v8702_v2 }
 0x2cc   :  { %5838 = vpow2.f32 %v3056_v43  ;;  %v3393_v26 = vpack.c.bf16 %v3319_v45, %v3318_v0  ;;  %v3058_v11 = vmul.f32 1.442695, %v2815_v42  ;;  %v3317_v57 = vsel %vm2677_vm12, %v8663_v56, %v4664_v15  ;;  %v8770_v16 = vpop.f32.mrb[72].mxu0 }
 0x2cd   :  { %v5206_v31 = vpop.f32.mrb[180].mxu1  ;;  %5840 = vpow2.f32 %v3052_v59  ;;  %v3392_v52 = vpack.c.bf16 %v3317_v57, %v3316_v35  ;;  %v3054_v33 = vmul.f32 1.442695, %v2813_v40  ;;  %4166 = vst.msk [vmem:[%s9537_s7 + $0x8] sm:$0xff] %vm4164_vm3, %v3657_v39  ;;  %v8784_v21 = vpop.f32.mrb[73].mxu0  ;;  %v3678_v48 = vadd.f32 %v8722_v41, %v8695_v10 }
 0x2ce   :  { %v5831_v61 = vpop.eup %5830  ;;  %v8762_v55 = vadd.f32 %v8626_v8, %v5206_v31  ;;  %v2525_v18 = vpop.f32.mrb[181].mxu1  ;;  %5842 = vpow2.f32 %v3058_v11  ;;  %vm2684_vm4 = vcmp.gt.f32.partialorder %v8727_v6, 0.0  ;;  %vm2687_vm5 = vcmp.gt.f32.partialorder %v8730_v54, 0.0 }
 0x2cf   :  { %v4669_v23 = vadd.f32 -1.0, %v5831_v61  ;;  %v5207_v13 = vpop.f32.mrb[182].mxu1  ;;  %v5833_v56 = vpop.eup %5832  ;;  %v8775_v38 = vadd.f32 %v8626_v8, %v2525_v18  ;;  %5844 = vpow2.f32 %v3054_v33  ;;  %5324 = vmatprep.mubr.msk.bf16.mxu0 %vm242_vm0, %v3392_v52  ;;  %4171 = vst.msk [vmem:[%s9537_s7 + $0x30] sm:$0xff] %vm4164_vm3, %v3678_v48  ;;  %vm2685_vm6 = vcmp.gt.f32.partialorder %v8741_v62, 0.0 }
 0x2d0   :  { %v2818_v47 = vmin.f32 %v8762_v55, 0.0  ;;  %v8778_v2 = vadd.f32 %v8626_v8, %v5207_v13  ;;  %v2528_v22 = vpop.f32.mrb[183].mxu1  ;;  %v5835_v28 = vpop.eup %5834  ;;  %v4667_v19 = vadd.f32 -1.0, %v5833_v56  ;;  %5325 = vmatmul.mubr.msk.bf16.gmra.mrb[168].mxu0 %vm242_vm0, %v3393_v26  ;;  %vm2690_vm7 = vcmp.gt.f32.partialorder %v8762_v55, 0.0 }
 0x2d1   :  { %v8789_v51 = vadd.f32 %v8626_v8, %v2528_v22  ;;  %v8791_v50 = vpop.f32.mrb[74].mxu0  ;;  %v4670_v44 = vadd.f32 -1.0, %v5835_v28  ;;  %v2816_v49 = vmin.f32 %v8775_v38, 0.0  ;;  %v5837_v25 = vpop.eup %5836  ;;  %v3322_v24 = vsel %vm2682_vm13, %v8677_v20, %v4669_v23 }
 0x2d2   :  { %v3064_v4 = vmul.f32 1.442695, %v2818_v47  ;;  %v8796_v14 = vpop.f32.mrb[75].mxu0  ;;  %v3320_v17 = vsel %vm2680_vm14, %v8682_v58, %v4667_v19  ;;  %v2819_v3 = vmin.f32 %v8778_v2, 0.0  ;;  %v4668_v30 = vadd.f32 -1.0, %v5837_v25 }
 0x2d3   :  { %v3323_v53 = vsel %vm2683_vm15, %v8685_v36, %v4670_v44  ;;  %v3060_v5 = vmul.f32 1.442695, %v2816_v49  ;;  %v2817_v29 = vmin.f32 %v8789_v51, 0.0  ;;  %v3670_v36 = vadd.f32 %v8695_v10, %v8736_v12 }
 0x2d4   :  { %5846 = vpow2.f32 %v3064_v4  ;;  %v3395_v27 = vpack.c.bf16 %v3323_v53, %v3322_v24  ;;  %v3066_v9 = vmul.f32 1.442695, %v2819_v3  ;;  %v3321_v58 = vsel %vm2681_vm1, %v8690_v7, %v4668_v30 }
 0x2d5   :  { %v5210_v60 = vpop.f32.mrb[184].mxu1  ;;  %5848 = vpow2.f32 %v3060_v5  ;;  %v3394_v63 = vpack.c.bf16 %v3321_v58, %v3320_v17  ;;  %v3062_v35 = vmul.f32 1.442695, %v2817_v29  ;;  %4169 = vst.msk [vmem:[%s9537_s7 + $0x20] sm:$0xff] %vm4164_vm3, %v3670_v36  ;;  %vm2688_vm8 = vcmp.gt.f32.partialorder %v8775_v38, 0.0 }
 0x2d6   :  { %v5839_v20 = vpop.eup %5838  ;;  %v8810_v43 = vadd.f32 %v8626_v8, %v5210_v60  ;;  %v2541_v34 = vpop.f32.mrb[185].mxu1  ;;  %5850 = vpow2.f32 %v3066_v9  ;;  %vm2691_vm9 = vcmp.gt.f32.partialorder %v8778_v2, 0.0  ;;  %vm2689_vm10 = vcmp.gt.f32.partialorder %v8789_v51, 0.0 }
 0x2d7   :  { %v4673_v0 = vadd.f32 -1.0, %v5839_v20  ;;  %v5211_v42 = vpop.f32.mrb[186].mxu1  ;;  %v5841_v41 = vpop.eup %5840  ;;  %v8821_v45 = vadd.f32 %v8626_v8, %v2541_v34  ;;  %5852 = vpow2.f32 %v3062_v35  ;;  %5328 = vmatprep.mubr.msk.bf16.mxu0 %vm242_vm0, %v3394_v63 }
 0x2d8   :  { %v2822_v7 = vmin.f32 %v8810_v43, 0.0  ;;  %v8824_v12 = vadd.f32 %v8626_v8, %v5211_v42  ;;  %v2544_v15 = vpop.f32.mrb[187].mxu1  ;;  %v8830_v59 = vpop.f32.mrb[76].mxu0  ;;  %v4671_v11 = vadd.f32 -1.0, %v5841_v41  ;;  %5329 = vmatmul.mubr.msk.bf16.gmra.mrb[172].mxu0 %vm242_vm0, %v3395_v27  ;;  %vm2694_vm11 = vcmp.gt.f32.partialorder %v8810_v43, 0.0 }
 0x2d9   :  { %v5843_v26 = vpop.eup %5842  ;;  %v8835_v40 = vadd.f32 %v8626_v8, %v2544_v15  ;;  %v8837_v31 = vpop.f32.mrb[77].mxu0  ;;  %v2820_v57 = vmin.f32 %v8821_v45, 0.0  ;;  %v3326_v52 = vsel %vm2686_vm2, %v8715_v37, %v4673_v0  ;;  %v3681_v37 = vadd.f32 %v8743_v32, %v8695_v10 }
 0x2da   :  { %v4674_v46 = vadd.f32 -1.0, %v5843_v26  ;;  %v3072_v61 = vmul.f32 1.442695, %v2822_v7  ;;  %v8842_v18 = vpop.f32.mrb[78].mxu0  ;;  %v5845_v39 = vpop.eup %5844  ;;  %v3324_v23 = vsel %vm2684_vm4, %v8727_v6, %v4671_v11  ;;  %v2823_v33 = vmin.f32 %v8824_v12, 0.0 }
 0x2db   :  { %v8850_v13 = vpop.f32.mrb[79].mxu0  ;;  %v4672_v47 = vadd.f32 -1.0, %v5845_v39  ;;  %v3068_v22 = vmul.f32 1.442695, %v2820_v57  ;;  %v2821_v44 = vmin.f32 %v8835_v40, 0.0  ;;  %4172 = vst.msk [vmem:[%s9537_s7 + $0x38] sm:$0xff] %vm4164_vm3, %v3681_v37  ;;  %v3686_v39 = vadd.f32 %v8695_v10, %v8784_v21 }
 0x2dc   :  { %v3327_v56 = vsel %vm2687_vm5, %v8730_v54, %v4674_v46  ;;  %5854 = vpow2.f32 %v3072_v61  ;;  %v3074_v19 = vmul.f32 1.442695, %v2823_v33  ;;  %v3673_v54 = vadd.f32 %v8695_v10, %v8748_v1 }
 0x2dd   :  { %v3397_v28 = vpack.c.bf16 %v3327_v56, %v3326_v52  ;;  %v5214_v4 = vpop.f32.mrb[188].mxu1  ;;  %v3325_v49 = vsel %vm2685_vm6, %v8741_v62, %v4672_v47  ;;  %5856 = vpow2.f32 %v3068_v22  ;;  %v3070_v53 = vmul.f32 1.442695, %v2821_v44  ;;  %4173 = vst.msk [vmem:[%s9537_s7 + $0x40] sm:$0xff] %vm4164_vm3, %v3686_v39 }
 0x2de   :  { %v5847_v6 = vpop.eup %5846  ;;  %v8858_v25 = vadd.f32 %v8626_v8, %v5214_v4  ;;  %v2557_v24 = vpop.f32.mrb[189].mxu1  ;;  %v3396_v17 = vpack.c.bf16 %v3325_v49, %v3324_v23  ;;  %5858 = vpow2.f32 %v3074_v19  ;;  %4170 = vst.msk [vmem:[%s9537_s7 + $0x28] sm:$0xff] %vm4164_vm3, %v3673_v54  ;;  %v3689_v21 = vadd.f32 %v8695_v10, %v8796_v14 }
 0x2df   :  { %v4677_v3 = vadd.f32 -1.0, %v5847_v6  ;;  %v5215_v32 = vpop.f32.mrb[190].mxu1  ;;  %v5849_v30 = vpop.eup %5848  ;;  %v8869_v5 = vadd.f32 %v8626_v8, %v2557_v24  ;;  %5860 = vpow2.f32 %v3070_v53  ;;  %v3713_v56 = vadd.f32 %v8842_v18, %v8695_v10 }
 0x2e0   :  { %v2826_v62 = vmin.f32 %v8858_v25, 0.0  ;;  %v8876_v1 = vadd.f32 %v8626_v8, %v5215_v32  ;;  %v2560_v27 = vpop.f32.mrb[191].mxu1  ;;  %v5851_v9 = vpop.eup %5850  ;;  %v4675_v29 = vadd.f32 -1.0, %v5849_v30  ;;  %5332 = vmatprep.mubr.msk.bf16.mxu0 %vm242_vm0, %v3396_v17  ;;  %4174 = vst.msk [vmem:[%s9537_s7 + $0x48] sm:$0xff] %vm4164_vm3, %v3689_v21  ;;  %vm2695_vm12 = vcmp.gt.f32.partialorder %v8824_v12, 0.0 }
 0x2e1   :  { %v8881_v60 = vadd.f32 %v8626_v8, %v2560_v27  ;;  %v5238_v48 = vpop.f32.mrb[80].mxu0  ;;  %v4678_v20 = vadd.f32 -1.0, %v5851_v9  ;;  %v2824_v34 = vmin.f32 %v8869_v5, 0.0  ;;  %5333 = vmatmul.mubr.msk.bf16.gmra.mrb[176].mxu0 %vm242_vm0, %v3397_v28  ;;  %v5853_v63 = vpop.eup %5852  ;;  %v3330_v0 = vsel %vm2690_vm7, %v8762_v55, %v4677_v3  ;;  %4180 = vst.msk [vmem:[%s9537_s7 + $0x78] sm:$0xff] %vm4164_vm3, %v3713_v56 }
 0x2e2   :  { %v3080_v58 = vmul.f32 1.442695, %v2826_v62  ;;  %v3717_v36 = vpop.f32.mrb[81].mxu0  ;;  %v3328_v35 = vsel %vm2688_vm8, %v8775_v38, %v4675_v29  ;;  %v2827_v8 = vmin.f32 %v8876_v1, 0.0  ;;  %v4676_v7 = vadd.f32 -1.0, %v5853_v63 }
 0x2e3   :  { %v5239_v42 = vpop.f32.mrb[82].mxu0  ;;  %v3331_v41 = vsel %vm2691_vm9, %v8778_v2, %v4678_v20  ;;  %v3076_v15 = vmul.f32 1.442695, %v2824_v34  ;;  %v2825_v61 = vmin.f32 %v8881_v60, 0.0  ;;  %v3694_v55 = vadd.f32 %v8770_v16, %v8695_v10 }
 0x2e4   :  { %5862 = vpow2.f32 %v3080_v58  ;;  %v3720_v26 = vpop.f32.mrb[83].mxu0  ;;  %v3399_v11 = vpack.c.bf16 %v3331_v41, %v3330_v0  ;;  %v3082_v46 = vmul.f32 1.442695, %v2827_v8  ;;  %v3329_v38 = vsel %vm2689_vm10, %v8789_v51, %v4676_v7 }
 0x2e5   :  { %5864 = vpow2.f32 %v3076_v15  ;;  %v3697_v2 = vadd.f32 %v8791_v50, %v8695_v10  ;;  %v3398_v52 = vpack.c.bf16 %v3329_v38, %v3328_v35  ;;  %v3078_v33 = vmul.f32 1.442695, %v2825_v61  ;;  %4175 = vst.msk [vmem:[%s9537_s7 + $0x50] sm:$0xff] %vm4164_vm3, %v3694_v55 }
 0x2e6   :  { %v5855_v57 = vpop.eup %5854  ;;  %5866 = vpow2.f32 %v3082_v46  ;;  %v3710_v51 = vadd.f32 %v8830_v59, %v8695_v10  ;;  %v3702_v50 = vadd.f32 %v8695_v10, %v8837_v31  ;;  %v3705_v28 = vadd.f32 %v8695_v10, %v8850_v13 }
 0x2e7   :  { %v4681_v23 = vadd.f32 -1.0, %v5855_v57  ;;  %v5857_v16 = vpop.eup %5856  ;;  %4176 = vst.msk [vmem:[%s9537_s7 + $0x58] sm:$0xff] %vm4164_vm3, %v3697_v2  ;;  %5868 = vpow2.f32 %v3078_v33  ;;  %5336 = vmatprep.mubr.msk.bf16.mxu0 %vm242_vm0, %v3398_v52  ;;  %v3726_v14 = vadd.f32 %v5238_v48, %v8695_v10  ;;  %v3718_v59 = vadd.f32 %v8695_v10, %v3717_v36 }
 0x2e8   :  { %v5859_v47 = vpop.eup %5858  ;;  %v4679_v22 = vadd.f32 -1.0, %v5857_v16  ;;  %4179 = vst.msk [vmem:[%s9537_s7 + $0x70] sm:$0xff] %vm4164_vm3, %v3710_v51  ;;  %4177 = vst.msk [vmem:[%s9537_s7 + $0x60] sm:$0xff] %vm4164_vm3, %v3702_v50  ;;  %v3729_v31 = vadd.f32 %v5239_v42, %v8695_v10  ;;  %v5242_v18 = vpop.f32.mrb[84].mxu0  ;;  %v3721_v44 = vadd.f32 %v8695_v10, %v3720_v26  ;;  %vm2692_vm13 = vcmp.gt.f32.partialorder %v8821_v45, 0.0 }
 0x2e9   :  { %v4682_v19 = vadd.f32 -1.0, %v5859_v47  ;;  %5337 = vmatmul.mubr.msk.bf16.gmra.mrb[180].mxu0 %vm242_vm0, %v3399_v11  ;;  %v5861_v13 = vpop.eup %5860  ;;  %4178 = vst.msk [vmem:[%s9537_s7 + $0x68] sm:$0xff] %vm4164_vm3, %v3705_v28  ;;  %v3742_v4 = vadd.f32 %v5242_v18, %v8695_v10  ;;  %v3733_v37 = vpop.f32.mrb[85].mxu0  ;;  %v3334_v6 = vsel %vm2694_vm11, %v8810_v43, %v4681_v23  ;;  %4183 = vst.msk [vmem:[%s9537_s7 + $0x90] sm:$0xff] %vm4164_vm3, %v3726_v14  ;;  %vm2693_vm14 = vcmp.gt.f32.partialorder %v8835_v40, 0.0 }
 0x2ea   :  { %v4680_v24 = vadd.f32 -1.0, %v5861_v13  ;;  %4181 = vst.msk [vmem:[%s9537_s7 + $0x80] sm:$0xff] %vm4164_vm3, %v3718_v59  ;;  %4184 = vst.msk [vmem:[%s9537_s7 + $0x98] sm:$0xff] %vm4164_vm3, %v3729_v31  ;;  %v3734_v43 = vadd.f32 %v8695_v10, %v3733_v37  ;;  %v5243_v54 = vpop.f32.mrb[86].mxu0  ;;  %v3332_v32 = vsel %vm2692_vm13, %v8821_v45, %v4679_v22  ;;  %vm2698_vm15 = vcmp.gt.f32.partialorder %v8858_v25, 0.0 }
 0x2eb   :  { %v3335_v49 = vsel %vm2695_vm12, %v8824_v12, %v4682_v19  ;;  %4182 = vst.msk [vmem:[%s9537_s7 + $0x88] sm:$0xff] %vm4164_vm3, %v3721_v44  ;;  %4187 = vst.msk [vmem:[%s9537_s7 + $0xb0] sm:$0xff] %vm4164_vm3, %v3742_v4  ;;  %v3745_v17 = vadd.f32 %v5243_v54, %v8695_v10  ;;  %v3736_v3 = vpop.f32.mrb[87].mxu0  ;;  %vm2699_vm1 = vcmp.gt.f32.partialorder %v8876_v1, 0.0  ;;  %vm2696_vm2 = vcmp.gt.f32.partialorder %v8869_v5, 0.0 }
 0x2ec   :  { %v3401_v12 = vpack.c.bf16 %v3335_v49, %v3334_v6  ;;  %v3333_v30 = vsel %vm2693_vm14, %v8835_v40, %v4680_v24  ;;  %4185 = vst.msk [vmem:[%s9537_s7 + $0xa0] sm:$0xff] %vm4164_vm3, %v3734_v43  ;;  %v3737_v62 = vadd.f32 %v8695_v10, %v3736_v3  ;;  %vm2697_vm4 = vcmp.gt.f32.partialorder %v8881_v60, 0.0 }
 0x2ed   :  { %v3400_v27 = vpack.c.bf16 %v3333_v30, %v3332_v32  ;;  %4188 = vst.msk [vmem:[%s9537_s7 + $0xb8] sm:$0xff] %vm4164_vm3, %v3745_v17 }
 0x2ee   :  { %v5863_v53 = vpop.eup %5862  ;;  %4186 = vst.msk [vmem:[%s9537_s7 + $0xa8] sm:$0xff] %vm4164_vm3, %v3737_v62 }
 0x2ef   :  { %v5865_v9 = vpop.eup %5864  ;;  %v4685_v29 = vadd.f32 -1.0, %v5863_v53  ;;  %5340 = vmatprep.mubr.msk.bf16.mxu0 %vm242_vm0, %v3400_v27 }
 0x2f0   :  { %v5867_v45 = vpop.eup %5866  ;;  %v4683_v40 = vadd.f32 -1.0, %v5865_v9  ;;  %v5246_v20 = vpop.f32.mrb[88].mxu0 }
 0x2f1   :  { %v4686_v48 = vadd.f32 -1.0, %v5867_v45  ;;  %5341 = vmatmul.mubr.msk.bf16.gmra.mrb[184].mxu0 %vm242_vm0, %v3401_v12  ;;  %v5869_v58 = vpop.eup %5868  ;;  %v3758_v34 = vadd.f32 %v5246_v20, %v8695_v10  ;;  %v3749_v36 = vpop.f32.mrb[89].mxu0  ;;  %v3338_v63 = vsel %vm2698_vm15, %v8858_v25, %v4685_v29 }
 0x2f2   :  { %v4684_v35 = vadd.f32 -1.0, %v5869_v58  ;;  %v3750_v8 = vadd.f32 %v8695_v10, %v3749_v36  ;;  %v5247_v42 = vpop.f32.mrb[90].mxu0  ;;  %v3336_v25 = vsel %vm2696_vm2, %v8869_v5, %v4683_v40 }
 0x2f3   :  { %v3339_v0 = vsel %vm2699_vm1, %v8876_v1, %v4686_v48  ;;  %4191 = vst.msk [vmem:[%s9537_s7 + $0xd0] sm:$0xff] %vm4164_vm3, %v3758_v34  ;;  %v3761_v7 = vadd.f32 %v5247_v42, %v8695_v10  ;;  %v3752_v15 = vpop.f32.mrb[91].mxu0 }
 0x2f4   :  { %v3403_v41 = vpack.c.bf16 %v3339_v0, %v3338_v63  ;;  %v3337_v1 = vsel %vm2697_vm4, %v8881_v60, %v4684_v35  ;;  %4189 = vst.msk [vmem:[%s9537_s7 + $0xc0] sm:$0xff] %vm4164_vm3, %v3750_v8  ;;  %v3753_v26 = vadd.f32 %v8695_v10, %v3752_v15 }
 0x2f5   :  { %v3402_v11 = vpack.c.bf16 %v3337_v1, %v3336_v25  ;;  %4192 = vst.msk [vmem:[%s9537_s7 + $0xd8] sm:$0xff] %vm4164_vm3, %v3761_v7 }
 0x2f6   :  { %4190 = vst.msk [vmem:[%s9537_s7 + $0xc8] sm:$0xff] %vm4164_vm3, %v3753_v26 }
 0x2f7   :  { %5344 = vmatprep.mubr.msk.bf16.mxu0 %vm242_vm0, %v3402_v11 }
 0x2f8   :  { %v5250_v5 = vpop.f32.mrb[92].mxu0 }
 0x2f9   :  { %5345 = vmatmul.mubr.msk.bf16.gmra.mrb[188].mxu0 %vm242_vm0, %v3403_v41  ;;  %v3774_v60 = vadd.f32 %v5250_v5, %v8695_v10  ;;  %v3765_v46 = vpop.f32.mrb[93].mxu0 }
 0x2fa   :  { %v3766_v61 = vadd.f32 %v8695_v10, %v3765_v46  ;;  %v5251_v55 = vpop.f32.mrb[94].mxu0 }
 0x2fb   :  { %4195 = vst.msk [vmem:[%s9537_s7 + $0xf0] sm:$0xff] %vm4164_vm3, %v3774_v60  ;;  %v3777_v57 = vadd.f32 %v5251_v55, %v8695_v10  ;;  %v3768_v38 = vpop.f32.mrb[95].mxu0 }
 0x2fc   :  { %4193 = vst.msk [vmem:[%s9537_s7 + $0xe0] sm:$0xff] %vm4164_vm3, %v3766_v61  ;;  %v3769_v39 = vadd.f32 %v8695_v10, %v3768_v38 }
 0x2fd   :  { %4196 = vst.msk [vmem:[%s9537_s7 + $0xf8] sm:$0xff] %vm4164_vm3, %v3777_v57 }
 0x2fe   :  { %4194 = vst.msk [vmem:[%s9537_s7 + $0xe8] sm:$0xff] %vm4164_vm3, %v3769_v39 }
 0x300   :  { %v5254_v2 = vpop.f32.mrb[96].mxu0 }
 0x301   :  { %v3790_v52 = vadd.f32 %v5254_v2, %v8695_v10  ;;  %v3781_v23 = vpop.f32.mrb[97].mxu0 }
 0x302   :  { %v3782_v33 = vadd.f32 %v8695_v10, %v3781_v23  ;;  %v5255_v16 = vpop.f32.mrb[98].mxu0 }
 0x303   :  { %4199 = vst.msk [vmem:[%s9537_s7 + $0x110] sm:$0xff] %vm4164_vm3, %v3790_v52  ;;  %v3793_v21 = vadd.f32 %v5255_v16, %v8695_v10  ;;  %v3784_v51 = vpop.f32.mrb[99].mxu0 }
 0x304   :  { %4197 = vst.msk [vmem:[%s9537_s7 + $0x100] sm:$0xff] %vm4164_vm3, %v3782_v33  ;;  %v3785_v50 = vadd.f32 %v8695_v10, %v3784_v51 }
 0x305   :  { %4200 = vst.msk [vmem:[%s9537_s7 + $0x118] sm:$0xff] %vm4164_vm3, %v3793_v21 }
 0x306   :  { %4198 = vst.msk [vmem:[%s9537_s7 + $0x108] sm:$0xff] %vm4164_vm3, %v3785_v50 }
 0x308   :  { %v5258_v56 = vpop.f32.mrb[100].mxu0 }
 0x309   :  { %v3806_v47 = vadd.f32 %v5258_v56, %v8695_v10  ;;  %v3797_v22 = vpop.f32.mrb[101].mxu0 }
 0x30a   :  { %v3798_v28 = vadd.f32 %v8695_v10, %v3797_v22  ;;  %v5259_v19 = vpop.f32.mrb[102].mxu0 }
 0x30b   :  { %4203 = vst.msk [vmem:[%s9537_s7 + $0x130] sm:$0xff] %vm4164_vm3, %v3806_v47  ;;  %v3809_v14 = vadd.f32 %v5259_v19, %v8695_v10  ;;  %v3800_v59 = vpop.f32.mrb[103].mxu0 }
 0x30c   :  { %4201 = vst.msk [vmem:[%s9537_s7 + $0x120] sm:$0xff] %vm4164_vm3, %v3798_v28  ;;  %v3801_v31 = vadd.f32 %v8695_v10, %v3800_v59 }
 0x30d   :  { %4204 = vst.msk [vmem:[%s9537_s7 + $0x138] sm:$0xff] %vm4164_vm3, %v3809_v14 }
 0x30e   :  { %4202 = vst.msk [vmem:[%s9537_s7 + $0x128] sm:$0xff] %vm4164_vm3, %v3801_v31 }
 0x310   :  { %v5262_v18 = vpop.f32.mrb[104].mxu0 }
 0x311   :  { %v3822_v13 = vadd.f32 %v5262_v18, %v8695_v10  ;;  %v3813_v44 = vpop.f32.mrb[105].mxu0 }
 0x312   :  { %v3814_v4 = vadd.f32 %v8695_v10, %v3813_v44  ;;  %v5263_v37 = vpop.f32.mrb[106].mxu0 }
 0x313   :  { %4207 = vst.msk [vmem:[%s9537_s7 + $0x150] sm:$0xff] %vm4164_vm3, %v3822_v13  ;;  %v3825_v6 = vadd.f32 %v5263_v37, %v8695_v10  ;;  %v3816_v49 = vpop.f32.mrb[107].mxu0 }
 0x314   :  { %4205 = vst.msk [vmem:[%s9537_s7 + $0x140] sm:$0xff] %vm4164_vm3, %v3814_v4  ;;  %v3817_v24 = vadd.f32 %v8695_v10, %v3816_v49 }
 0x315   :  { %4208 = vst.msk [vmem:[%s9537_s7 + $0x158] sm:$0xff] %vm4164_vm3, %v3825_v6 }
 0x316   :  { %4206 = vst.msk [vmem:[%s9537_s7 + $0x148] sm:$0xff] %vm4164_vm3, %v3817_v24 }
 0x318   :  { %v5266_v43 = vpop.f32.mrb[108].mxu0 }
 0x319   :  { %v3838_v54 = vadd.f32 %v5266_v43, %v8695_v10  ;;  %v3829_v12 = vpop.f32.mrb[109].mxu0 }
 0x31a   :  { %v3830_v17 = vadd.f32 %v8695_v10, %v3829_v12  ;;  %v5267_v3 = vpop.f32.mrb[110].mxu0 }
 0x31b   :  { %4211 = vst.msk [vmem:[%s9537_s7 + $0x170] sm:$0xff] %vm4164_vm3, %v3838_v54  ;;  %v3841_v53 = vadd.f32 %v5267_v3, %v8695_v10  ;;  %v3832_v32 = vpop.f32.mrb[111].mxu0 }
 0x31c   :  { %4209 = vst.msk [vmem:[%s9537_s7 + $0x160] sm:$0xff] %vm4164_vm3, %v3830_v17  ;;  %v3833_v30 = vadd.f32 %v8695_v10, %v3832_v32 }
 0x31d   :  { %4212 = vst.msk [vmem:[%s9537_s7 + $0x178] sm:$0xff] %vm4164_vm3, %v3841_v53 }
 0x31e   :  { %4210 = vst.msk [vmem:[%s9537_s7 + $0x168] sm:$0xff] %vm4164_vm3, %v3833_v30 }
 0x320   :  { %v5270_v62 = vpop.f32.mrb[112].mxu0 }
 0x321   :  { %v3854_v27 = vadd.f32 %v5270_v62, %v8695_v10  ;;  %v3845_v9 = vpop.f32.mrb[113].mxu0 }
 0x322   :  { %v3846_v29 = vadd.f32 %v8695_v10, %v3845_v9  ;;  %v5271_v45 = vpop.f32.mrb[114].mxu0 }
 0x323   :  { %4215 = vst.msk [vmem:[%s9537_s7 + $0x190] sm:$0xff] %vm4164_vm3, %v3854_v27  ;;  %v3857_v40 = vadd.f32 %v5271_v45, %v8695_v10  ;;  %v3848_v48 = vpop.f32.mrb[115].mxu0 }
 0x324   :  { %4213 = vst.msk [vmem:[%s9537_s7 + $0x180] sm:$0xff] %vm4164_vm3, %v3846_v29  ;;  %v3849_v20 = vadd.f32 %v8695_v10, %v3848_v48 }
 0x325   :  { %4216 = vst.msk [vmem:[%s9537_s7 + $0x198] sm:$0xff] %vm4164_vm3, %v3857_v40 }
 0x326   :  { %4214 = vst.msk [vmem:[%s9537_s7 + $0x188] sm:$0xff] %vm4164_vm3, %v3849_v20 }
 0x32a   :  { %v5274_v58 = vpop.f32.mrb[116].mxu0 }
 0x32b   :  { %v3870_v34 = vadd.f32 %v5274_v58, %v8695_v10  ;;  %v3861_v36 = vpop.f32.mrb[117].mxu0 }
 0x32c   :  { %v3862_v63 = vadd.f32 %v8695_v10, %v3861_v36  ;;  %v5275_v0 = vpop.f32.mrb[118].mxu0 }
 0x32d   :  { %4219 = vst.msk [vmem:[%s9537_s7 + $0x1b0] sm:$0xff] %vm4164_vm3, %v3870_v34  ;;  %v3873_v35 = vadd.f32 %v5275_v0, %v8695_v10  ;;  %v3864_v8 = vpop.f32.mrb[119].mxu0 }
 0x32e   :  { %4217 = vst.msk [vmem:[%s9537_s7 + $0x1a0] sm:$0xff] %vm4164_vm3, %v3862_v63  ;;  %v3865_v42 = vadd.f32 %v8695_v10, %v3864_v8 }
 0x32f   :  { %4220 = vst.msk [vmem:[%s9537_s7 + $0x1b8] sm:$0xff] %vm4164_vm3, %v3873_v35 }
 0x330   :  { %4218 = vst.msk [vmem:[%s9537_s7 + $0x1a8] sm:$0xff] %vm4164_vm3, %v3865_v42 }
 0x339   :  { %v5278_v41 = vpop.f32.mrb[120].mxu0 }
 0x33a   :  { %v3886_v7 = vadd.f32 %v5278_v41, %v8695_v10  ;;  %v3877_v15 = vpop.f32.mrb[121].mxu0 }
 0x33b   :  { %v3878_v25 = vadd.f32 %v8695_v10, %v3877_v15  ;;  %v5279_v1 = vpop.f32.mrb[122].mxu0 }
 0x33c   :  { %4223 = vst.msk [vmem:[%s9537_s7 + $0x1d0] sm:$0xff] %vm4164_vm3, %v3886_v7  ;;  %v3889_v26 = vadd.f32 %v5279_v1, %v8695_v10  ;;  %v3880_v11 = vpop.f32.mrb[123].mxu0 }
 0x33d   :  { %4221 = vst.msk [vmem:[%s9537_s7 + $0x1c0] sm:$0xff] %vm4164_vm3, %v3878_v25  ;;  %v3881_v5 = vadd.f32 %v8695_v10, %v3880_v11 }
 0x33e   :  { %4224 = vst.msk [vmem:[%s9537_s7 + $0x1d8] sm:$0xff] %vm4164_vm3, %v3889_v26 }
 0x33f   :  { %4222 = vst.msk [vmem:[%s9537_s7 + $0x1c8] sm:$0xff] %vm4164_vm3, %v3881_v5 }
 0x347   :  { %v5282_v60 = vpop.f32.mrb[124].mxu0 }
 0x348   :  { %v3902_v46 = vadd.f32 %v5282_v60, %v8695_v10  ;;  %v3893_v61 = vpop.f32.mrb[125].mxu0 }
 0x349   :  { %v3894_v55 = vadd.f32 %v8695_v10, %v3893_v61  ;;  %v5283_v57 = vpop.f32.mrb[126].mxu0 }
 0x34a   :  { %4227 = vst.msk [vmem:[%s9537_s7 + $0x1f0] sm:$0xff] %vm4164_vm3, %v3902_v46  ;;  %v3905_v38 = vadd.f32 %v5283_v57, %v8695_v10  ;;  %v3896_v39 = vpop.f32.mrb[127].mxu0 }
 0x34b   :  { %4225 = vst.msk [vmem:[%s9537_s7 + $0x1e0] sm:$0xff] %vm4164_vm3, %v3894_v55  ;;  %v3897_v2 = vadd.f32 %v8695_v10, %v3896_v39 }
 0x34c   :  { %4228 = vst.msk [vmem:[%s9537_s7 + $0x1f8] sm:$0xff] %vm4164_vm3, %v3905_v38 }
 0x34d   :  { %4226 = vst.msk [vmem:[%s9537_s7 + $0x1e8] sm:$0xff] %vm4164_vm3, %v3897_v2 }
 0x352   :  { %v5286_v52 = vpop.f32.mrb[128].mxu0 }
 0x353   :  { %v3918_v23 = vadd.f32 %v5286_v52, %v8695_v10  ;;  %v3909_v33 = vpop.f32.mrb[129].mxu0 }
 0x354   :  { %v3910_v16 = vadd.f32 %v8695_v10, %v3909_v33  ;;  %v5287_v21 = vpop.f32.mrb[130].mxu0  ;;  %v9368_v33 = vld [vmem:[%s9536_s6] ss:$0 sm:$0xff] }
 0x355   :  { %4231 = vst.msk [vmem:[%s9537_s7 + $0x210] sm:$0xff] %vm4164_vm3, %v3918_v23  ;;  %v3921_v51 = vadd.f32 %v5287_v21, %v8695_v10  ;;  %v3912_v50 = vpop.f32.mrb[131].mxu0 }
 0x356   :  { %4229 = vst.msk [vmem:[%s9537_s7 + $0x200] sm:$0xff] %vm4164_vm3, %v3910_v16  ;;  %v3913_v56 = vadd.f32 %v8695_v10, %v3912_v50 }
 0x357   :  { %4232 = vst.msk [vmem:[%s9537_s7 + $0x218] sm:$0xff] %vm4164_vm3, %v3921_v51 }
 0x358   :  { %4230 = vst.msk [vmem:[%s9537_s7 + $0x208] sm:$0xff] %vm4164_vm3, %v3913_v56 }
 0x35a   :  { %v5290_v47 = vpop.f32.mrb[132].mxu0 }
 0x35b   :  { %v3934_v22 = vadd.f32 %v5290_v47, %v8695_v10  ;;  %v3925_v28 = vpop.f32.mrb[133].mxu0 }
 0x35c   :  { %v3926_v19 = vadd.f32 %v8695_v10, %v3925_v28  ;;  %v5291_v14 = vpop.f32.mrb[134].mxu0 }
 0x35d   :  { %4235 = vst.msk [vmem:[%s9537_s7 + $0x230] sm:$0xff] %vm4164_vm3, %v3934_v22  ;;  %v3937_v59 = vadd.f32 %v5291_v14, %v8695_v10  ;;  %v3928_v31 = vpop.f32.mrb[135].mxu0 }
 0x35e   :  { %4233 = vst.msk [vmem:[%s9537_s7 + $0x220] sm:$0xff] %vm4164_vm3, %v3926_v19  ;;  %v3929_v18 = vadd.f32 %v8695_v10, %v3928_v31 }
 0x35f   :  { %4236 = vst.msk [vmem:[%s9537_s7 + $0x238] sm:$0xff] %vm4164_vm3, %v3937_v59 }
 0x360   :  { %4234 = vst.msk [vmem:[%s9537_s7 + $0x228] sm:$0xff] %vm4164_vm3, %v3929_v18 }
 0x363   :  { %v5294_v13 = vpop.f32.mrb[136].mxu0 }
 0x364   :  { %v3950_v44 = vadd.f32 %v5294_v13, %v8695_v10  ;;  %v3941_v4 = vpop.f32.mrb[137].mxu0 }
 0x365   :  { %v3942_v37 = vadd.f32 %v8695_v10, %v3941_v4  ;;  %v5295_v6 = vpop.f32.mrb[138].mxu0 }
 0x366   :  { %4239 = vst.msk [vmem:[%s9537_s7 + $0x250] sm:$0xff] %vm4164_vm3, %v3950_v44  ;;  %v3953_v49 = vadd.f32 %v5295_v6, %v8695_v10  ;;  %v3944_v24 = vpop.f32.mrb[139].mxu0 }
 0x367   :  { %4237 = vst.msk [vmem:[%s9537_s7 + $0x240] sm:$0xff] %vm4164_vm3, %v3942_v37  ;;  %v3945_v43 = vadd.f32 %v8695_v10, %v3944_v24 }
 0x368   :  { %4240 = vst.msk [vmem:[%s9537_s7 + $0x258] sm:$0xff] %vm4164_vm3, %v3953_v49 }
 0x369   :  { %4238 = vst.msk [vmem:[%s9537_s7 + $0x248] sm:$0xff] %vm4164_vm3, %v3945_v43 }
 0x36b   :  { %v5298_v54 = vpop.f32.mrb[140].mxu0 }
 0x36c   :  { %v3966_v12 = vadd.f32 %v5298_v54, %v8695_v10  ;;  %v3957_v17 = vpop.f32.mrb[141].mxu0 }
 0x36d   :  { %v3958_v3 = vadd.f32 %v8695_v10, %v3957_v17  ;;  %v5299_v53 = vpop.f32.mrb[142].mxu0 }
 0x36e   :  { %4243 = vst.msk [vmem:[%s9537_s7 + $0x270] sm:$0xff] %vm4164_vm3, %v3966_v12  ;;  %v3969_v32 = vadd.f32 %v5299_v53, %v8695_v10  ;;  %v3960_v30 = vpop.f32.mrb[143].mxu0 }
 0x36f   :  { %4241 = vst.msk [vmem:[%s9537_s7 + $0x260] sm:$0xff] %vm4164_vm3, %v3958_v3  ;;  %v3961_v62 = vadd.f32 %v8695_v10, %v3960_v30 }
 0x370   :  { %4244 = vst.msk [vmem:[%s9537_s7 + $0x278] sm:$0xff] %vm4164_vm3, %v3969_v32 }
 0x371   :  { %4242 = vst.msk [vmem:[%s9537_s7 + $0x268] sm:$0xff] %vm4164_vm3, %v3961_v62 }
 0x373   :  { %v5302_v27 = vpop.f32.mrb[144].mxu0 }
 0x374   :  { %v3982_v9 = vadd.f32 %v5302_v27, %v8695_v10  ;;  %v3973_v29 = vpop.f32.mrb[145].mxu0 }
 0x375   :  { %v3974_v45 = vadd.f32 %v8695_v10, %v3973_v29  ;;  %v5303_v40 = vpop.f32.mrb[146].mxu0 }
 0x376   :  { %4247 = vst.msk [vmem:[%s9537_s7 + $0x290] sm:$0xff] %vm4164_vm3, %v3982_v9  ;;  %v3985_v48 = vadd.f32 %v5303_v40, %v8695_v10  ;;  %v3976_v20 = vpop.f32.mrb[147].mxu0 }
 0x377   :  { %4245 = vst.msk [vmem:[%s9537_s7 + $0x280] sm:$0xff] %vm4164_vm3, %v3974_v45  ;;  %v3977_v58 = vadd.f32 %v8695_v10, %v3976_v20 }
 0x378   :  { %4248 = vst.msk [vmem:[%s9537_s7 + $0x298] sm:$0xff] %vm4164_vm3, %v3985_v48 }
 0x379   :  { %4246 = vst.msk [vmem:[%s9537_s7 + $0x288] sm:$0xff] %vm4164_vm3, %v3977_v58 }
 0x37b   :  { %v5306_v34 = vpop.f32.mrb[148].mxu0 }
 0x37c   :  { %v3998_v36 = vadd.f32 %v5306_v34, %v8695_v10  ;;  %v3989_v63 = vpop.f32.mrb[149].mxu0 }
 0x37d   :  { %v3990_v0 = vadd.f32 %v8695_v10, %v3989_v63  ;;  %v5307_v35 = vpop.f32.mrb[150].mxu0 }
 0x37e   :  { %4251 = vst.msk [vmem:[%s9537_s7 + $0x2b0] sm:$0xff] %vm4164_vm3, %v3998_v36  ;;  %v4001_v8 = vadd.f32 %v5307_v35, %v8695_v10  ;;  %v3992_v42 = vpop.f32.mrb[151].mxu0 }
 0x37f   :  { %4249 = vst.msk [vmem:[%s9537_s7 + $0x2a0] sm:$0xff] %vm4164_vm3, %v3990_v0  ;;  %v3993_v41 = vadd.f32 %v8695_v10, %v3992_v42 }
 0x380   :  { %4252 = vst.msk [vmem:[%s9537_s7 + $0x2b8] sm:$0xff] %vm4164_vm3, %v4001_v8 }
 0x381   :  { %4250 = vst.msk [vmem:[%s9537_s7 + $0x2a8] sm:$0xff] %vm4164_vm3, %v3993_v41 }
 0x383   :  { %v5310_v7 = vpop.f32.mrb[152].mxu0 }
 0x384   :  { %v4014_v15 = vadd.f32 %v5310_v7, %v8695_v10  ;;  %v4005_v25 = vpop.f32.mrb[153].mxu0 }
 0x385   :  { %v4006_v1 = vadd.f32 %v8695_v10, %v4005_v25  ;;  %v5311_v26 = vpop.f32.mrb[154].mxu0 }
 0x386   :  { %4255 = vst.msk [vmem:[%s9537_s7 + $0x2d0] sm:$0xff] %vm4164_vm3, %v4014_v15  ;;  %v4017_v11 = vadd.f32 %v5311_v26, %v8695_v10  ;;  %v4008_v5 = vpop.f32.mrb[155].mxu0 }
 0x387   :  { %4253 = vst.msk [vmem:[%s9537_s7 + $0x2c0] sm:$0xff] %vm4164_vm3, %v4006_v1  ;;  %v4009_v60 = vadd.f32 %v8695_v10, %v4008_v5 }
 0x388   :  { %4256 = vst.msk [vmem:[%s9537_s7 + $0x2d8] sm:$0xff] %vm4164_vm3, %v4017_v11 }
 0x389   :  { %4254 = vst.msk [vmem:[%s9537_s7 + $0x2c8] sm:$0xff] %vm4164_vm3, %v4009_v60 }
 0x38b   :  { %v5314_v46 = vpop.f32.mrb[156].mxu0 }
 0x38c   :  { %v4030_v61 = vadd.f32 %v5314_v46, %v8695_v10  ;;  %v4021_v55 = vpop.f32.mrb[157].mxu0 }
 0x38d   :  { %v4022_v57 = vadd.f32 %v8695_v10, %v4021_v55  ;;  %v5315_v38 = vpop.f32.mrb[158].mxu0 }
 0x38e   :  { %4259 = vst.msk [vmem:[%s9537_s7 + $0x2f0] sm:$0xff] %vm4164_vm3, %v4030_v61  ;;  %v4033_v39 = vadd.f32 %v5315_v38, %v8695_v10  ;;  %v4024_v2 = vpop.f32.mrb[159].mxu0 }
 0x38f   :  { %4257 = vst.msk [vmem:[%s9537_s7 + $0x2e0] sm:$0xff] %vm4164_vm3, %v4022_v57  ;;  %v4025_v52 = vadd.f32 %v8695_v10, %v4024_v2 }
 0x390   :  { %4260 = vst.msk [vmem:[%s9537_s7 + $0x2f8] sm:$0xff] %vm4164_vm3, %v4033_v39 }
 0x391   :  { %4258 = vst.msk [vmem:[%s9537_s7 + $0x2e8] sm:$0xff] %vm4164_vm3, %v4025_v52 }
 0x393   :  { %v5318_v23 = vpop.f32.mrb[160].mxu0 }
 0x394   :  { %v4046_v16 = vadd.f32 %v9368_v33, %v5318_v23  ;;  %v4037_v21 = vpop.f32.mrb[161].mxu0 }
 0x395   :  { %v4038_v10 = vadd.f32 %v9368_v33, %v4037_v21  ;;  %v5319_v51 = vpop.f32.mrb[162].mxu0 }
 0x396   :  { %4263 = vst.msk [vmem:[%s9537_s7 + $0x310] sm:$0xff] %vm4164_vm3, %v4046_v16  ;;  %v4049_v50 = vadd.f32 %v9368_v33, %v5319_v51  ;;  %v4040_v56 = vpop.f32.mrb[163].mxu0 }
 0x397   :  { %4261 = vst.msk [vmem:[%s9537_s7 + $0x300] sm:$0xff] %vm4164_vm3, %v4038_v10  ;;  %v4041_v47 = vadd.f32 %v9368_v33, %v4040_v56 }
 0x398   :  { %4264 = vst.msk [vmem:[%s9537_s7 + $0x318] sm:$0xff] %vm4164_vm3, %v4049_v50 }
 0x399   :  { %4262 = vst.msk [vmem:[%s9537_s7 + $0x308] sm:$0xff] %vm4164_vm3, %v4041_v47 }
 0x39b   :  { %v5322_v22 = vpop.f32.mrb[164].mxu0 }
 0x39c   :  { %v4062_v28 = vadd.f32 %v9368_v33, %v5322_v22  ;;  %v4053_v19 = vpop.f32.mrb[165].mxu0 }
 0x39d   :  { %v4054_v14 = vadd.f32 %v9368_v33, %v4053_v19  ;;  %v5323_v59 = vpop.f32.mrb[166].mxu0 }
 0x39e   :  { %4267 = vst.msk [vmem:[%s9537_s7 + $0x330] sm:$0xff] %vm4164_vm3, %v4062_v28  ;;  %v4065_v31 = vadd.f32 %v9368_v33, %v5323_v59  ;;  %v4056_v18 = vpop.f32.mrb[167].mxu0 }
 0x39f   :  { %4265 = vst.msk [vmem:[%s9537_s7 + $0x320] sm:$0xff] %vm4164_vm3, %v4054_v14  ;;  %v4057_v13 = vadd.f32 %v9368_v33, %v4056_v18 }
 0x3a0   :  { %4268 = vst.msk [vmem:[%s9537_s7 + $0x338] sm:$0xff] %vm4164_vm3, %v4065_v31 }
 0x3a1   :  { %4266 = vst.msk [vmem:[%s9537_s7 + $0x328] sm:$0xff] %vm4164_vm3, %v4057_v13 }
 0x3a3   :  { %v5326_v44 = vpop.f32.mrb[168].mxu0 }
 0x3a4   :  { %v4078_v4 = vadd.f32 %v9368_v33, %v5326_v44  ;;  %v4069_v37 = vpop.f32.mrb[169].mxu0 }
 0x3a5   :  { %v4070_v6 = vadd.f32 %v9368_v33, %v4069_v37  ;;  %v5327_v49 = vpop.f32.mrb[170].mxu0 }
 0x3a6   :  { %4271 = vst.msk [vmem:[%s9537_s7 + $0x350] sm:$0xff] %vm4164_vm3, %v4078_v4  ;;  %v4081_v24 = vadd.f32 %v9368_v33, %v5327_v49  ;;  %v4072_v43 = vpop.f32.mrb[171].mxu0 }
 0x3a7   :  { %4269 = vst.msk [vmem:[%s9537_s7 + $0x340] sm:$0xff] %vm4164_vm3, %v4070_v6  ;;  %v4073_v54 = vadd.f32 %v9368_v33, %v4072_v43 }
 0x3a8   :  { %4272 = vst.msk [vmem:[%s9537_s7 + $0x358] sm:$0xff] %vm4164_vm3, %v4081_v24 }
 0x3a9   :  { %4270 = vst.msk [vmem:[%s9537_s7 + $0x348] sm:$0xff] %vm4164_vm3, %v4073_v54 }
 0x3ab   :  { %v5330_v12 = vpop.f32.mrb[172].mxu0 }
 0x3ac   :  { %v4094_v17 = vadd.f32 %v9368_v33, %v5330_v12  ;;  %v4085_v3 = vpop.f32.mrb[173].mxu0 }
 0x3ad   :  { %v4086_v53 = vadd.f32 %v9368_v33, %v4085_v3  ;;  %v5331_v32 = vpop.f32.mrb[174].mxu0 }
 0x3ae   :  { %4275 = vst.msk [vmem:[%s9537_s7 + $0x370] sm:$0xff] %vm4164_vm3, %v4094_v17  ;;  %v4097_v30 = vadd.f32 %v9368_v33, %v5331_v32  ;;  %v4088_v62 = vpop.f32.mrb[175].mxu0 }
 0x3af   :  { %4273 = vst.msk [vmem:[%s9537_s7 + $0x360] sm:$0xff] %vm4164_vm3, %v4086_v53  ;;  %v4089_v27 = vadd.f32 %v9368_v33, %v4088_v62 }
 0x3b0   :  { %4276 = vst.msk [vmem:[%s9537_s7 + $0x378] sm:$0xff] %vm4164_vm3, %v4097_v30 }
 0x3b1   :  { %4274 = vst.msk [vmem:[%s9537_s7 + $0x368] sm:$0xff] %vm4164_vm3, %v4089_v27 }
 0x3b4   :  { %v5334_v9 = vpop.f32.mrb[176].mxu0 }
 0x3b5   :  { %v4110_v29 = vadd.f32 %v9368_v33, %v5334_v9  ;;  %v4101_v45 = vpop.f32.mrb[177].mxu0 }
 0x3b6   :  { %v4102_v40 = vadd.f32 %v9368_v33, %v4101_v45  ;;  %v5335_v48 = vpop.f32.mrb[178].mxu0 }
 0x3b7   :  { %4279 = vst.msk [vmem:[%s9537_s7 + $0x390] sm:$0xff] %vm4164_vm3, %v4110_v29  ;;  %v4113_v20 = vadd.f32 %v9368_v33, %v5335_v48  ;;  %v4104_v58 = vpop.f32.mrb[179].mxu0 }
 0x3b8   :  { %4277 = vst.msk [vmem:[%s9537_s7 + $0x380] sm:$0xff] %vm4164_vm3, %v4102_v40  ;;  %v4105_v34 = vadd.f32 %v9368_v33, %v4104_v58 }
 0x3b9   :  { %4280 = vst.msk [vmem:[%s9537_s7 + $0x398] sm:$0xff] %vm4164_vm3, %v4113_v20 }
 0x3ba   :  { %4278 = vst.msk [vmem:[%s9537_s7 + $0x388] sm:$0xff] %vm4164_vm3, %v4105_v34 }
 0x3bc   :  { %v5338_v36 = vpop.f32.mrb[180].mxu0 }
 0x3bd   :  { %v4126_v63 = vadd.f32 %v9368_v33, %v5338_v36  ;;  %v4117_v0 = vpop.f32.mrb[181].mxu0 }
 0x3be   :  { %v4118_v35 = vadd.f32 %v9368_v33, %v4117_v0  ;;  %v5339_v8 = vpop.f32.mrb[182].mxu0 }
 0x3bf   :  { %4283 = vst.msk [vmem:[%s9537_s7 + $0x3b0] sm:$0xff] %vm4164_vm3, %v4126_v63  ;;  %v4129_v42 = vadd.f32 %v9368_v33, %v5339_v8  ;;  %v4120_v41 = vpop.f32.mrb[183].mxu0 }
 0x3c0   :  { %4281 = vst.msk [vmem:[%s9537_s7 + $0x3a0] sm:$0xff] %vm4164_vm3, %v4118_v35  ;;  %v4121_v7 = vadd.f32 %v9368_v33, %v4120_v41 }
 0x3c1   :  { %4284 = vst.msk [vmem:[%s9537_s7 + $0x3b8] sm:$0xff] %vm4164_vm3, %v4129_v42 }
 0x3c2   :  { %4282 = vst.msk [vmem:[%s9537_s7 + $0x3a8] sm:$0xff] %vm4164_vm3, %v4121_v7 }
 0x3c4   :  { %v5342_v15 = vpop.f32.mrb[184].mxu0 }
 0x3c5   :  { %v4142_v25 = vadd.f32 %v9368_v33, %v5342_v15  ;;  %v4133_v1 = vpop.f32.mrb[185].mxu0 }
 0x3c6   :  { %v4134_v26 = vadd.f32 %v9368_v33, %v4133_v1  ;;  %v5343_v11 = vpop.f32.mrb[186].mxu0 }
 0x3c7   :  { %4287 = vst.msk [vmem:[%s9537_s7 + $0x3d0] sm:$0xff] %vm4164_vm3, %v4142_v25  ;;  %v4145_v5 = vadd.f32 %v9368_v33, %v5343_v11  ;;  %v4136_v60 = vpop.f32.mrb[187].mxu0 }
 0x3c8   :  { %4285 = vst.msk [vmem:[%s9537_s7 + $0x3c0] sm:$0xff] %vm4164_vm3, %v4134_v26  ;;  %v4137_v46 = vadd.f32 %v9368_v33, %v4136_v60 }
 0x3c9   :  { %4288 = vst.msk [vmem:[%s9537_s7 + $0x3d8] sm:$0xff] %vm4164_vm3, %v4145_v5 }
 0x3ca   :  { %4286 = vst.msk [vmem:[%s9537_s7 + $0x3c8] sm:$0xff] %vm4164_vm3, %v4137_v46 }
 0x3cc   :  { %v5346_v61 = vpop.f32.mrb[188].mxu0 }
 0x3cd   :  { %v4158_v55 = vadd.f32 %v9368_v33, %v5346_v61  ;;  %v4149_v57 = vpop.f32.mrb[189].mxu0 }
 0x3ce   :  { %v4150_v38 = vadd.f32 %v9368_v33, %v4149_v57  ;;  %v5347_v39 = vpop.f32.mrb[190].mxu0 }
 0x3cf   :  { %4291 = vst.msk [vmem:[%s9537_s7 + $0x3f0] sm:$0xff] %vm4164_vm3, %v4158_v55  ;;  %v4161_v2 = vadd.f32 %v9368_v33, %v5347_v39  ;;  %v4152_v52 = vpop.f32.mrb[191].mxu0 }
 0x3d0   :  { %4289 = vst.msk [vmem:[%s9537_s7 + $0x3e0] sm:$0xff] %vm4164_vm3, %v4150_v38  ;;  %v4153_v23 = vadd.f32 %v9368_v33, %v4152_v52 }
 0x3d1   :  { %4292 = vst.msk [vmem:[%s9537_s7 + $0x3f8] sm:$0xff] %vm4164_vm3, %v4161_v2 }
 0x3d2   :  { %4290 = vst.msk [vmem:[%s9537_s7 + $0x3e8] sm:$0xff] %vm4164_vm3, %v4153_v23 }

</bundles_post_ra>
